<compile_context>
chip_gen: v7x
topology: tpu7x:2x2x1
jax: 0.10.0
libtpu: 0.0.40
codegen_flags: <defaults>
</compile_context>

<pallas_src>
import jax
import jax.numpy as jnp
from jax.experimental import pallas as pl
from jax.experimental.pallas import tpu as pltpu

# ---------------------------------------------------------------- config ----
B, T, D = 2, 8, 32          # batch, time, model size
H = 4                       # attention heads
DK = D // H                 # per-head dim
FF = 64                     # feed-forward hidden units
U2 = 32                     # cgmlp linear_units // 2
CGMLP_K = 7                 # cgmlp depthwise conv kernel
MERGE_K = 3                 # merge_conv_kernel
EPS = 1e-12                 # espnet/funasr LayerNorm eps
MAX_OFF = (CGMLP_K - 1) // 2

assert D % H == 0

# fused branch-projection layout: qkv at [:, :3D], cgmlp pre-GELU at
# [:, QKV_PAD : QKV_PAD + 2*U2]  (lane-tile aligned slice starts)
QKV_PAD = 128
BR_W = QKV_PAD + 2 * U2
assert 3 * D <= QKV_PAD and QKV_PAD % 128 == 0

# packed bias slab: one row per bias vector, left-justified in 128 lanes
BIAS_LANES = 128
(ROW_B1M, ROW_B2M, ROW_BO, ROW_CGB, ROW_BP2, ROW_MGCA, ROW_MGCB,
 ROW_BMG, ROW_B1F, ROW_B2F) = range(10)
N_BIAS_ROWS = 16
assert max(FF, D, U2) <= BIAS_LANES

PARAM_ORDER = ("bias_br", "bias", "csgu_ln", "final_ln", "wbr", "wo",
               "cg_conv_w", "wp2", "mg_conv_w", "wmg", "wff1", "wff2")


# ---------------------------------------------------------------- kernel ----
def ebranchformer_kernel(x_ref, addm_ref, keep_ref, *rest):
    out_ref = rest[-1]
    p = dict(zip(PARAM_ORDER, rest[:-1]))

    BT = B * T
    x = x_ref[...]                            # (BT, D) batch-flattened slab
    biases = p["bias"][...]                   # (16, 128) packed bias slab
    bias_br = p["bias_br"][...]               # (1, BR_W) fused-projection bias

    def brow(row, width):
        return biases[row:row + 1, :width]    # (1, width)

    def norm(v):                              # LayerNorm, pre-affine part only
        mu = jnp.mean(v, axis=-1, keepdims=True)
        var = jnp.mean(jnp.square(v - mu), axis=-1, keepdims=True)
        return (v - mu) * jax.lax.rsqrt(var + EPS)

    # --- hoisted depthwise-conv validity masks (shared by all conv calls) ---
    # local time index within each batch element; offsets -3..3 cover both
    # CGMLP_K=7 and MERGE_K=3.
    tmod = jax.lax.broadcasted_iota(jnp.int32, (B, T, 1), 1).reshape(BT, 1)
    valid = {o: ((tmod + o >= 0) & (tmod + o < T)).astype(jnp.float32)
             for o in range(-MAX_OFF, MAX_OFF + 1) if o != 0}

    def dwconv(v, w, b, k):
        # Depthwise "same" conv over time on the batch-flattened (BT, C) slab.
        # pltpu.roll shifts along the flattened axis (XLU); the precomputed
        # validity masks zero taps crossing a batch boundary / padded edge.
        pad = (k - 1) // 2
        acc = v * w[pad:pad + 1, :]                     # center tap, o == 0
        for j in range(k):
            o = j - pad
            if o == 0:
                continue
            rolled = pltpu.roll(v, shift=(-o) % BT, axis=0)
            acc = acc + rolled * valid[o] * w[j:j + 1, :]
        return acc + b

    wff1 = p["wff1"][...]                     # (2, D, FF)  gamma pre-folded
    wff2 = p["wff2"][...]                     # (2, FF, D)

    # ---- macaron feed-forward (LN affine folded into wff1[0]/bias) ----
    z = norm(x)
    hid = jnp.maximum(
        jnp.dot(z, wff1[0], preferred_element_type=jnp.float32)
        + brow(ROW_B1M, FF), 0.0)
    x = x + 0.5 * (jnp.dot(hid, wff2[0], preferred_element_type=jnp.float32)
                   + brow(ROW_B2M, D))

    # ---- shared pre-affine norm + fused branch projection (QKV | cgmlp) ----
    z = norm(x)
    fused = (jnp.dot(z, p["wbr"][...], preferred_element_type=jnp.float32)
             + bias_br)                                  # (BT, BR_W)
    qkv = fused[:, :3 * D]                               # (BT, 3D)
    h12 = jax.nn.gelu(fused[:, QKV_PAD:QKV_PAD + 2 * U2],
                      approximate=True)                  # (BT, 2*U2)

    # ---- branch 1: multi-head self-attention ----
    scale = 1.0 / float(DK) ** 0.5
    wo = p["wo"][...]                                    # (H, DK, D)
    addm = addm_ref[...]                                 # (B, T) additive bias
    keep = keep_ref[...]                                 # (B, T) keep mask
    x1_rows = []
    for bb in range(B):
        addm_b = addm[bb:bb + 1, :]                      # (1, T)
        keep_b = keep[bb:bb + 1, :]
        qkv_b = qkv[bb * T:(bb + 1) * T, :]              # (T, 3D)
        acc = None
        for hh in range(H):
            qh = qkv_b[:, hh * DK:(hh + 1) * DK]
            kh = qkv_b[:, D + hh * DK:D + (hh + 1) * DK]
            vh = qkv_b[:, 2 * D + hh * DK:2 * D + (hh + 1) * DK]
            s = jax.lax.dot_general(qh, kh, (((1,), (1,)), ((), ())),
                                    preferred_element_type=jnp.float32)
            s = s * scale + addm_b
            s = s - jnp.max(s, axis=-1, keepdims=True)
            e = jnp.exp(s)
            pr = e * pl.reciprocal(jnp.sum(e, axis=-1, keepdims=True),
                                   approx=True)
            pr = pr * keep_b
            ctx = jnp.dot(pr, vh, preferred_element_type=jnp.float32)
            contrib = jnp.dot(ctx, wo[hh],
                              preferred_element_type=jnp.float32)   # (T, D)
            acc = contrib if acc is None else acc + contrib
        x1_rows.append(acc)
    x1 = jnp.concatenate(x1_rows, axis=0) + brow(ROW_BO, D)         # (BT, D)

    # ---- branch 2: convolutional gating MLP (CSGU) ----
    xr = h12[:, :U2]
    xg = h12[:, U2:]
    csgu_ln = p["csgu_ln"][...]
    xg = norm(xg) * csgu_ln[0:1] + csgu_ln[1:2]
    xg = dwconv(xg, p["cg_conv_w"][...], brow(ROW_CGB, U2), CGMLP_K)
    # gate activation = identity
    x2 = (jnp.dot(xr * xg, p["wp2"][...], preferred_element_type=jnp.float32)
          + brow(ROW_BP2, D))

    # ---- merge: per-branch depthwise fusion conv + split projection ----
    mg_w = p["mg_conv_w"][...]                           # (2, MERGE_K, D)
    wmg = p["wmg"][...]                                  # (2, D, D)
    conv1 = dwconv(x1, mg_w[0], brow(ROW_MGCA, D), MERGE_K)
    conv2 = dwconv(x2, mg_w[1], brow(ROW_MGCB, D), MERGE_K)
    merged = (jnp.dot(x1 + conv1, wmg[0], preferred_element_type=jnp.float32)
              + jnp.dot(x2 + conv2, wmg[1], preferred_element_type=jnp.float32)
              + brow(ROW_BMG, D))
    x = x + merged

    # ---- final feed-forward (folded LN affine) + final LayerNorm ----
    z = norm(x)
    hid = jnp.maximum(
        jnp.dot(z, wff1[1], preferred_element_type=jnp.float32)
        + brow(ROW_B1F, FF), 0.0)
    x = x + 0.5 * (jnp.dot(hid, wff2[1], preferred_element_type=jnp.float32)
                   + brow(ROW_B2F, D))
    fin = p["final_ln"][...]
    out_ref[...] = (norm(x) * fin[0:1] + fin[1:2]).astype(out_ref.dtype)


# --------------------------------------------------------------- wrapper ----
def ebranchformer_layer(x, mask, P):
    Bx, Tx, Dx = x.shape
    x2d = x.reshape(Bx * Tx, Dx)                         # free XLA metadata
    m = mask[:, 0, :]                                    # (B, T)
    addm = jnp.where(m == 0.0, -1e30, 0.0).astype(jnp.float32)
    keep = (m != 0.0).astype(jnp.float32)

    def full_spec(a):
        nd = a.ndim
        return pl.BlockSpec(a.shape, lambda i, _n=nd: (0,) * _n)

    out2d = pl.pallas_call(
        ebranchformer_kernel,
        out_shape=jax.ShapeDtypeStruct((Bx * Tx, Dx), jnp.float32),
        grid=(1,),                                       # single fused step
        in_specs=[full_spec(x2d), full_spec(addm), full_spec(keep)]
                 + [full_spec(P[k]) for k in PARAM_ORDER],
        out_specs=full_spec(x2d),
        compiler_params=pltpu.CompilerParams(
            dimension_semantics=("arbitrary",)),
    )(x2d, addm, keep, *[P[k] for k in PARAM_ORDER])
    return out2d.reshape(Bx, Tx, Dx), mask               # module returns (x, mask)


# ------------------------------------------------------------ parameters ----
def init_base_params(key):
    """Parameters mirroring the PyTorch module (unfolded)."""
    keys = iter(jax.random.split(key, 48))

    def rn(shape, scale=0.05):
        return scale * jax.random.normal(next(keys), shape, jnp.float32)

    P0 = {}
    for name in ("mac", "mha", "mlp", "ff", "fin"):
        P0[f"ln_{name}_g"] = 1.0 + rn((D,), 0.1)
        P0[f"ln_{name}_b"] = rn((D,), 0.1)
    P0["csgu_ln_g"] = 1.0 + rn((U2,), 0.1)
    P0["csgu_ln_b"] = rn((U2,), 0.1)
    # attention
    P0["wqkv"], P0["bqkv"] = rn((D, 3 * D)), rn((3 * D,))
    P0["wo"], P0["bo"] = rn((D, D)), rn((D,))
    # cgmlp
    P0["wp1"], P0["bp1"] = rn((D, 2 * U2)), rn((2 * U2,))
    P0["cg_conv_w"], P0["cg_conv_b"] = rn((CGMLP_K, U2)), rn((U2,))
    P0["wp2"], P0["bp2"] = rn((U2, D)), rn((D,))
    # merge module
    P0["mg_conv_w"], P0["mg_conv_b"] = rn((MERGE_K, 2 * D)), rn((2 * D,))
    P0["wmg"], P0["bmg"] = rn((2 * D, D)), rn((D,))
    # feed-forwards (macaron + final)
    P0["wff1_mac"], P0["bff1_mac"] = rn((D, FF)), rn((FF,))
    P0["wff2_mac"], P0["bff2_mac"] = rn((FF, D)), rn((D,))
    P0["wff1"], P0["bff1"] = rn((D, FF)), rn((FF,))
    P0["wff2"], P0["bff2"] = rn((FF, D)), rn((D,))
    return P0


def prepare_params(P0):
    """Host-side folding/packing of parameters into kernel slabs."""
    hi = jax.lax.Precision.HIGHEST

    def fold_bias(beta, w, b):
        return jnp.dot(beta, w, precision=hi) + b

    P = {}
    # fused branch projection: z @ [g_mha*Wqkv | pad | g_mlp*Wp1]
    wbr = jnp.zeros((D, BR_W), jnp.float32)
    wbr = wbr.at[:, :3 * D].set(P0["ln_mha_g"][:, None] * P0["wqkv"])
    wbr = wbr.at[:, QKV_PAD:QKV_PAD + 2 * U2].set(
        P0["ln_mlp_g"][:, None] * P0["wp1"])
    P["wbr"] = wbr
    bias_br = jnp.zeros((1, BR_W), jnp.float32)
    bias_br = bias_br.at[0, :3 * D].set(
        fold_bias(P0["ln_mha_b"], P0["wqkv"], P0["bqkv"]))
    bias_br = bias_br.at[0, QKV_PAD:QKV_PAD + 2 * U2].set(
        fold_bias(P0["ln_mlp_b"], P0["wp1"], P0["bp1"]))
    P["bias_br"] = bias_br

    # attention output projection as per-head row blocks
    P["wo"] = P0["wo"].reshape(H, DK, D)

    # cgmlp
    P["cg_conv_w"] = P0["cg_conv_w"]
    P["wp2"] = P0["wp2"]
    P["csgu_ln"] = jnp.stack([P0["csgu_ln_g"], P0["csgu_ln_b"]], axis=0)

    # merge module split per branch (depthwise conv is channel-separable,
    # merge_proj is row-separable over the concatenated channels)
    P["mg_conv_w"] = jnp.stack(
        [P0["mg_conv_w"][:, :D], P0["mg_conv_w"][:, D:]], axis=0)
    P["wmg"] = jnp.stack([P0["wmg"][:D, :], P0["wmg"][D:, :]], axis=0)

    # feed-forwards with LN gamma folded into the first matmul
    P["wff1"] = jnp.stack([P0["ln_mac_g"][:, None] * P0["wff1_mac"],
                           P0["ln_ff_g"][:, None] * P0["wff1"]], axis=0)
    P["wff2"] = jnp.stack([P0["wff2_mac"], P0["wff2"]], axis=0)

    # final LayerNorm affine (nothing downstream to fold into)
    P["final_ln"] = jnp.stack([P0["ln_fin_g"], P0["ln_fin_b"]], axis=0)

    # packed bias slab
    rows = {
        ROW_B1M: fold_bias(P0["ln_mac_b"], P0["wff1_mac"], P0["bff1_mac"]),
        ROW_B2M: P0["bff2_mac"],
        ROW_BO: P0["bo"],
        ROW_CGB: P0["cg_conv_b"],
        ROW_BP2: P0["bp2"],
        ROW_MGCA: P0["mg_conv_b"][:D],
        ROW_MGCB: P0["mg_conv_b"][D:],
        ROW_BMG: P0["bmg"],
        ROW_B1F: fold_bias(P0["ln_ff_b"], P0["wff1"], P0["bff1"]),
        ROW_B2F: P0["bff2"],
    }
    bias = jnp.zeros((N_BIAS_ROWS, BIAS_LANES), jnp.float32)
    for r, v in rows.items():
        bias = bias.at[r, : v.shape[0]].set(v)
    P["bias"] = bias
    return P


# ---------------------------------------------------- pure-JAX reference ----
def reference_forward(x, mask, P0):
    def layer_norm(v, g, b):
        mu = v.mean(-1, keepdims=True)
        var = jnp.square(v - mu).mean(-1, keepdims=True)
        return (v - mu) / jnp.sqrt(var + EPS) * g + b

    def dwconv(v, w, b):                      # (B, T, C), "same" zero padding
        k = w.shape[0]
        pad = (k - 1) // 2
        vp = jnp.pad(v, ((0, 0), (pad, pad), (0, 0)))
        acc = jnp.zeros_like(v)
        for j in range(k):
            acc = acc + vp[:, j:j + v.shape[1], :] * w[j]
        return acc + b

    # macaron feed-forward
    xn = layer_norm(x, P0["ln_mac_g"], P0["ln_mac_b"])
    h = jax.nn.relu(xn @ P0["wff1_mac"] + P0["bff1_mac"])
    x = x + 0.5 * (h @ P0["wff2_mac"] + P0["bff2_mac"])

    # attention branch
    xn = layer_norm(x, P0["ln_mha_g"], P0["ln_mha_b"])
    qkv = xn @ P0["wqkv"] + P0["bqkv"]
    Bb, Tt = x.shape[0], x.shape[1]
    q = qkv[..., :D].reshape(Bb, Tt, H, DK)
    k_ = qkv[..., D:2 * D].reshape(Bb, Tt, H, DK)
    v_ = qkv[..., 2 * D:].reshape(Bb, Tt, H, DK)
    s = jnp.einsum("bthe,bshe->bhts", q, k_) / jnp.sqrt(jnp.float32(DK))
    m = mask[:, :, None, :]                   # (B, 1, 1, T)
    s = jnp.where(m == 0.0, jnp.finfo(jnp.float32).min, s)
    attn = jax.nn.softmax(s, axis=-1)
    attn = jnp.where(m == 0.0, 0.0, attn)
    ctx = jnp.einsum("bhts,bshe->bthe", attn, v_).reshape(Bb, Tt, D)
    x1 = ctx @ P0["wo"] + P0["bo"]

    # cgmlp branch
    xn = layer_norm(x, P0["ln_mlp_g"], P0["ln_mlp_b"])
    h12 = jax.nn.gelu(xn @ P0["wp1"] + P0["bp1"], approximate=True)
    xr, xg = h12[..., :U2], h12[..., U2:]
    xg = layer_norm(xg, P0["csgu_ln_g"], P0["csgu_ln_b"])
    xg = dwconv(xg, P0["cg_conv_w"], P0["cg_conv_b"])
    x2 = (xr * xg) @ P0["wp2"] + P0["bp2"]

    # merge
    xcat = jnp.concatenate([x1, x2], axis=-1)
    conv = dwconv(xcat, P0["mg_conv_w"], P0["mg_conv_b"])
    x = x + (xcat + conv) @ P0["wmg"] + P0["bmg"]

    # feed-forward + final norm
    xn = layer_norm(x, P0["ln_ff_g"], P0["ln_ff_b"])
    h = jax.nn.relu(xn @ P0["wff1"] + P0["bff1"])
    x = x + 0.5 * (h @ P0["wff2"] + P0["bff2"])
    return layer_norm(x, P0["ln_fin_g"], P0["ln_fin_b"])


# ------------------------------------------------------------------ main ----
if __name__ == "__main__":
    key = jax.random.PRNGKey(0)
    kx, kp = jax.random.split(key)
    x = jax.random.normal(kx, (B, T, D), jnp.float32)
    mask = jnp.ones((B, 1, T), jnp.float32).at[1, 0, T - 2:].set(0.0)  # (B,1,T)
    P0 = init_base_params(kp)
    P = prepare_params(P0)

    out, out_mask = ebranchformer_layer(x, mask, P)
    out = jax.block_until_ready(out)

    with jax.default_matmul_precision("highest"):
        ref = reference_forward(x, mask, P0)
    err = float(jnp.max(jnp.abs(out - ref)))
    # 2e-3 tolerance: pl.reciprocal(approx=True) in the softmax denominator is
    # the only intentional numeric deviation from the exact-division reference.
    assert err < 2e-3, f"kernel/reference mismatch: max abs err = {err}"
    print("KERNEL_OK")
</pallas_src>

<mosaic_0001>
module attributes {stable_mosaic.version = 11 : i64} {
  func.func @ebranchformer_kernel(%arg0: i32, %arg1: memref<16x32xf32, #tpu.memory_space<vmem>>, %arg2: memref<2x8xf32, #tpu.memory_space<vmem>>, %arg3: memref<2x8xf32, #tpu.memory_space<vmem>>, %arg4: memref<1x192xf32, #tpu.memory_space<vmem>>, %arg5: memref<16x128xf32, #tpu.memory_space<vmem>>, %arg6: memref<2x32xf32, #tpu.memory_space<vmem>>, %arg7: memref<2x32xf32, #tpu.memory_space<vmem>>, %arg8: memref<32x192xf32, #tpu.memory_space<vmem>>, %arg9: memref<4x8x32xf32, #tpu.memory_space<vmem>>, %arg10: memref<7x32xf32, #tpu.memory_space<vmem>>, %arg11: memref<32x32xf32, #tpu.memory_space<vmem>>, %arg12: memref<2x3x32xf32, #tpu.memory_space<vmem>>, %arg13: memref<2x32x32xf32, #tpu.memory_space<vmem>>, %arg14: memref<2x32x64xf32, #tpu.memory_space<vmem>>, %arg15: memref<2x64x32xf32, #tpu.memory_space<vmem>>, %arg16: memref<16x32xf32, #tpu.memory_space<vmem>>) attributes {dimension_semantics = [#tpu.dimension_semantics<arbitrary>], iteration_bounds = array<i64: 1>, scalar_prefetch = 0 : i64, scratch_operands = 0 : i64, tpu.core_type = #tpu.core_type<tc>, window_params = [{pipeline_mode = #tpu.pipeline_mode<synchronous>, transform_indices = @transform_0, window_bounds = array<i64: 16, 32>}, {pipeline_mode = #tpu.pipeline_mode<synchronous>, transform_indices = @transform_1, window_bounds = array<i64: 2, 8>}, {pipeline_mode = #tpu.pipeline_mode<synchronous>, transform_indices = @transform_2, window_bounds = array<i64: 2, 8>}, {pipeline_mode = #tpu.pipeline_mode<synchronous>, transform_indices = @transform_3, window_bounds = array<i64: 1, 192>}, {pipeline_mode = #tpu.pipeline_mode<synchronous>, transform_indices = @transform_4, window_bounds = array<i64: 16, 128>}, {pipeline_mode = #tpu.pipeline_mode<synchronous>, transform_indices = @transform_5, window_bounds = array<i64: 2, 32>}, {pipeline_mode = #tpu.pipeline_mode<synchronous>, transform_indices = @transform_6, window_bounds = array<i64: 2, 32>}, {pipeline_mode = #tpu.pipeline_mode<synchronous>, transform_indices = @transform_7, window_bounds = array<i64: 32, 192>}, {pipeline_mode = #tpu.pipeline_mode<synchronous>, transform_indices = @transform_8, window_bounds = array<i64: 4, 8, 32>}, {pipeline_mode = #tpu.pipeline_mode<synchronous>, transform_indices = @transform_9, window_bounds = array<i64: 7, 32>}, {pipeline_mode = #tpu.pipeline_mode<synchronous>, transform_indices = @transform_10, window_bounds = array<i64: 32, 32>}, {pipeline_mode = #tpu.pipeline_mode<synchronous>, transform_indices = @transform_11, window_bounds = array<i64: 2, 3, 32>}, {pipeline_mode = #tpu.pipeline_mode<synchronous>, transform_indices = @transform_12, window_bounds = array<i64: 2, 32, 32>}, {pipeline_mode = #tpu.pipeline_mode<synchronous>, transform_indices = @transform_13, window_bounds = array<i64: 2, 32, 64>}, {pipeline_mode = #tpu.pipeline_mode<synchronous>, transform_indices = @transform_14, window_bounds = array<i64: 2, 64, 32>}, {pipeline_mode = #tpu.pipeline_mode<synchronous>, transform_indices = @transform_15, window_bounds = array<i64: 16, 32>}]} {
    %c0 = arith.constant 0 : index
    %c0_0 = arith.constant 0 : index
    %0 = vector.load %arg1[%c0, %c0_0] : memref<16x32xf32, #tpu.memory_space<vmem>>, vector<16x32xf32>
    %c0_1 = arith.constant 0 : index
    %c0_2 = arith.constant 0 : index
    %1 = vector.load %arg5[%c0_1, %c0_2] : memref<16x128xf32, #tpu.memory_space<vmem>>, vector<16x128xf32>
    %c0_3 = arith.constant 0 : index
    %c0_4 = arith.constant 0 : index
    %2 = vector.load %arg4[%c0_3, %c0_4] : memref<1x192xf32, #tpu.memory_space<vmem>>, vector<1x192xf32>
    %3 = tpu.iota {dimensions = array<i32: 1>} : vector<2x8x1xi32>
    %4 = vector.shape_cast %3 : vector<2x8x1xi32> to vector<16x1xi32>
    %c-3_i32 = arith.constant -3 : i32
    %5 = vector.broadcast %c-3_i32 : i32 to vector<16x1xi32>
    %6 = arith.addi %4, %5 : vector<16x1xi32>
    %c0_i32 = arith.constant 0 : i32
    %7 = vector.broadcast %c0_i32 : i32 to vector<16x1xi32>
    %8 = arith.cmpi sge, %6, %7 : vector<16x1xi32>
    %c-3_i32_5 = arith.constant -3 : i32
    %9 = vector.broadcast %c-3_i32_5 : i32 to vector<16x1xi32>
    %10 = arith.addi %4, %9 : vector<16x1xi32>
    %c8_i32 = arith.constant 8 : i32
    %11 = vector.broadcast %c8_i32 : i32 to vector<16x1xi32>
    %12 = arith.cmpi slt, %10, %11 : vector<16x1xi32>
    %13 = arith.andi %8, %12 : vector<16x1xi1>
    %14 = arith.extui %13 : vector<16x1xi1> to vector<16x1xi32>
    %15 = arith.sitofp %14 : vector<16x1xi32> to vector<16x1xf32>
    %c-2_i32 = arith.constant -2 : i32
    %16 = vector.broadcast %c-2_i32 : i32 to vector<16x1xi32>
    %17 = arith.addi %4, %16 : vector<16x1xi32>
    %c0_i32_6 = arith.constant 0 : i32
    %18 = vector.broadcast %c0_i32_6 : i32 to vector<16x1xi32>
    %19 = arith.cmpi sge, %17, %18 : vector<16x1xi32>
    %c-2_i32_7 = arith.constant -2 : i32
    %20 = vector.broadcast %c-2_i32_7 : i32 to vector<16x1xi32>
    %21 = arith.addi %4, %20 : vector<16x1xi32>
    %c8_i32_8 = arith.constant 8 : i32
    %22 = vector.broadcast %c8_i32_8 : i32 to vector<16x1xi32>
    %23 = arith.cmpi slt, %21, %22 : vector<16x1xi32>
    %24 = arith.andi %19, %23 : vector<16x1xi1>
    %25 = arith.extui %24 : vector<16x1xi1> to vector<16x1xi32>
    %26 = arith.sitofp %25 : vector<16x1xi32> to vector<16x1xf32>
    %c-1_i32 = arith.constant -1 : i32
    %27 = vector.broadcast %c-1_i32 : i32 to vector<16x1xi32>
    %28 = arith.addi %4, %27 : vector<16x1xi32>
    %c0_i32_9 = arith.constant 0 : i32
    %29 = vector.broadcast %c0_i32_9 : i32 to vector<16x1xi32>
    %30 = arith.cmpi sge, %28, %29 : vector<16x1xi32>
    %c-1_i32_10 = arith.constant -1 : i32
    %31 = vector.broadcast %c-1_i32_10 : i32 to vector<16x1xi32>
    %32 = arith.addi %4, %31 : vector<16x1xi32>
    %c8_i32_11 = arith.constant 8 : i32
    %33 = vector.broadcast %c8_i32_11 : i32 to vector<16x1xi32>
    %34 = arith.cmpi slt, %32, %33 : vector<16x1xi32>
    %35 = arith.andi %30, %34 : vector<16x1xi1>
    %36 = arith.extui %35 : vector<16x1xi1> to vector<16x1xi32>
    %37 = arith.sitofp %36 : vector<16x1xi32> to vector<16x1xf32>
    %c1_i32 = arith.constant 1 : i32
    %38 = vector.broadcast %c1_i32 : i32 to vector<16x1xi32>
    %39 = arith.addi %4, %38 : vector<16x1xi32>
    %c0_i32_12 = arith.constant 0 : i32
    %40 = vector.broadcast %c0_i32_12 : i32 to vector<16x1xi32>
    %41 = arith.cmpi sge, %39, %40 : vector<16x1xi32>
    %c1_i32_13 = arith.constant 1 : i32
    %42 = vector.broadcast %c1_i32_13 : i32 to vector<16x1xi32>
    %43 = arith.addi %4, %42 : vector<16x1xi32>
    %c8_i32_14 = arith.constant 8 : i32
    %44 = vector.broadcast %c8_i32_14 : i32 to vector<16x1xi32>
    %45 = arith.cmpi slt, %43, %44 : vector<16x1xi32>
    %46 = arith.andi %41, %45 : vector<16x1xi1>
    %47 = arith.extui %46 : vector<16x1xi1> to vector<16x1xi32>
    %48 = arith.sitofp %47 : vector<16x1xi32> to vector<16x1xf32>
    %c2_i32 = arith.constant 2 : i32
    %49 = vector.broadcast %c2_i32 : i32 to vector<16x1xi32>
    %50 = arith.addi %4, %49 : vector<16x1xi32>
    %c0_i32_15 = arith.constant 0 : i32
    %51 = vector.broadcast %c0_i32_15 : i32 to vector<16x1xi32>
    %52 = arith.cmpi sge, %50, %51 : vector<16x1xi32>
    %c2_i32_16 = arith.constant 2 : i32
    %53 = vector.broadcast %c2_i32_16 : i32 to vector<16x1xi32>
    %54 = arith.addi %4, %53 : vector<16x1xi32>
    %c8_i32_17 = arith.constant 8 : i32
    %55 = vector.broadcast %c8_i32_17 : i32 to vector<16x1xi32>
    %56 = arith.cmpi slt, %54, %55 : vector<16x1xi32>
    %57 = arith.andi %52, %56 : vector<16x1xi1>
    %58 = arith.extui %57 : vector<16x1xi1> to vector<16x1xi32>
    %59 = arith.sitofp %58 : vector<16x1xi32> to vector<16x1xf32>
    %c3_i32 = arith.constant 3 : i32
    %60 = vector.broadcast %c3_i32 : i32 to vector<16x1xi32>
    %61 = arith.addi %4, %60 : vector<16x1xi32>
    %c0_i32_18 = arith.constant 0 : i32
    %62 = vector.broadcast %c0_i32_18 : i32 to vector<16x1xi32>
    %63 = arith.cmpi sge, %61, %62 : vector<16x1xi32>
    %c3_i32_19 = arith.constant 3 : i32
    %64 = vector.broadcast %c3_i32_19 : i32 to vector<16x1xi32>
    %65 = arith.addi %4, %64 : vector<16x1xi32>
    %c8_i32_20 = arith.constant 8 : i32
    %66 = vector.broadcast %c8_i32_20 : i32 to vector<16x1xi32>
    %67 = arith.cmpi slt, %65, %66 : vector<16x1xi32>
    %68 = arith.andi %63, %67 : vector<16x1xi1>
    %69 = arith.extui %68 : vector<16x1xi1> to vector<16x1xi32>
    %70 = arith.sitofp %69 : vector<16x1xi32> to vector<16x1xf32>
    %c0_21 = arith.constant 0 : index
    %c0_22 = arith.constant 0 : index
    %c0_23 = arith.constant 0 : index
    %71 = vector.load %arg14[%c0_21, %c0_22, %c0_23] : memref<2x32x64xf32, #tpu.memory_space<vmem>>, vector<2x32x64xf32>
    %c0_24 = arith.constant 0 : index
    %c0_25 = arith.constant 0 : index
    %c0_26 = arith.constant 0 : index
    %72 = vector.load %arg15[%c0_24, %c0_25, %c0_26] : memref<2x64x32xf32, #tpu.memory_space<vmem>>, vector<2x64x32xf32>
    %cst = arith.constant dense<0.000000e+00> : vector<16xf32>
    %73 = vector.multi_reduction <add>, %0, %cst [1] : vector<16x32xf32> to vector<16xf32>
    %74 = vector.shape_cast %73 : vector<16xf32> to vector<16x1xf32>
    %cst_27 = arith.constant 3.200000e+01 : f32
    %75 = vector.broadcast %cst_27 : f32 to vector<16x1xf32>
    %76 = arith.divf %74, %75 : vector<16x1xf32>
    %77 = vector.broadcast %76 : vector<16x1xf32> to vector<16x32xf32>
    %78 = arith.subf %0, %77 : vector<16x32xf32>
    %79 = arith.mulf %78, %78 : vector<16x32xf32>
    %cst_28 = arith.constant dense<0.000000e+00> : vector<16xf32>
    %80 = vector.multi_reduction <add>, %79, %cst_28 [1] : vector<16x32xf32> to vector<16xf32>
    %81 = vector.shape_cast %80 : vector<16xf32> to vector<16x1xf32>
    %cst_29 = arith.constant 3.200000e+01 : f32
    %82 = vector.broadcast %cst_29 : f32 to vector<16x1xf32>
    %83 = arith.divf %81, %82 : vector<16x1xf32>
    %84 = vector.broadcast %76 : vector<16x1xf32> to vector<16x32xf32>
    %85 = arith.subf %0, %84 : vector<16x32xf32>
    %cst_30 = arith.constant 9.99999996E-13 : f32
    %86 = vector.broadcast %cst_30 : f32 to vector<16x1xf32>
    %87 = arith.addf %83, %86 : vector<16x1xf32>
    %88 = math.rsqrt %87 : vector<16x1xf32>
    %89 = vector.broadcast %88 : vector<16x1xf32> to vector<16x32xf32>
    %90 = arith.mulf %85, %89 : vector<16x32xf32>
    %91 = vector.extract_strided_slice %71 {offsets = [0, 0, 0], sizes = [1, 32, 64], strides = [1, 1, 1]} : vector<2x32x64xf32> to vector<1x32x64xf32>
    %92 = vector.shape_cast %91 : vector<1x32x64xf32> to vector<32x64xf32>
    %cst_31 = arith.constant dense<0.000000e+00> : vector<16x64xf32>
    %93 = tpu.matmul %90, %92, %cst_31 {dimension_numbers = #tpu.dot_dimension_numbers<[1], [0], [0], [1], [0, 0, 1, 1], [], []>} : vector<16x32xf32>, vector<32x64xf32>, vector<16x64xf32> -> vector<16x64xf32>
    %94 = vector.extract_strided_slice %1 {offsets = [0, 0], sizes = [1, 64], strides = [1, 1]} : vector<16x128xf32> to vector<1x64xf32>
    %95 = vector.broadcast %94 : vector<1x64xf32> to vector<16x64xf32>
    %96 = arith.addf %93, %95 : vector<16x64xf32>
    %cst_32 = arith.constant 0.000000e+00 : f32
    %97 = vector.broadcast %cst_32 : f32 to vector<16x64xf32>
    %98 = arith.maximumf %96, %97 : vector<16x64xf32>
    %99 = vector.extract_strided_slice %72 {offsets = [0, 0, 0], sizes = [1, 64, 32], strides = [1, 1, 1]} : vector<2x64x32xf32> to vector<1x64x32xf32>
    %100 = vector.shape_cast %99 : vector<1x64x32xf32> to vector<64x32xf32>
    %cst_33 = arith.constant dense<0.000000e+00> : vector<16x32xf32>
    %101 = tpu.matmul %98, %100, %cst_33 {dimension_numbers = #tpu.dot_dimension_numbers<[1], [0], [0], [1], [0, 0, 1, 1], [], []>} : vector<16x64xf32>, vector<64x32xf32>, vector<16x32xf32> -> vector<16x32xf32>
    %102 = vector.extract_strided_slice %1 {offsets = [1, 0], sizes = [1, 32], strides = [1, 1]} : vector<16x128xf32> to vector<1x32xf32>
    %103 = vector.broadcast %102 : vector<1x32xf32> to vector<16x32xf32>
    %104 = arith.addf %101, %103 : vector<16x32xf32>
    %cst_34 = arith.constant 5.000000e-01 : f32
    %105 = vector.broadcast %cst_34 : f32 to vector<16x32xf32>
    %106 = arith.mulf %105, %104 : vector<16x32xf32>
    %107 = arith.addf %0, %106 : vector<16x32xf32>
    %cst_35 = arith.constant dense<0.000000e+00> : vector<16xf32>
    %108 = vector.multi_reduction <add>, %107, %cst_35 [1] : vector<16x32xf32> to vector<16xf32>
    %109 = vector.shape_cast %108 : vector<16xf32> to vector<16x1xf32>
    %cst_36 = arith.constant 3.200000e+01 : f32
    %110 = vector.broadcast %cst_36 : f32 to vector<16x1xf32>
    %111 = arith.divf %109, %110 : vector<16x1xf32>
    %112 = vector.broadcast %111 : vector<16x1xf32> to vector<16x32xf32>
    %113 = arith.subf %107, %112 : vector<16x32xf32>
    %114 = arith.mulf %113, %113 : vector<16x32xf32>
    %cst_37 = arith.constant dense<0.000000e+00> : vector<16xf32>
    %115 = vector.multi_reduction <add>, %114, %cst_37 [1] : vector<16x32xf32> to vector<16xf32>
    %116 = vector.shape_cast %115 : vector<16xf32> to vector<16x1xf32>
    %cst_38 = arith.constant 3.200000e+01 : f32
    %117 = vector.broadcast %cst_38 : f32 to vector<16x1xf32>
    %118 = arith.divf %116, %117 : vector<16x1xf32>
    %119 = vector.broadcast %111 : vector<16x1xf32> to vector<16x32xf32>
    %120 = arith.subf %107, %119 : vector<16x32xf32>
    %cst_39 = arith.constant 9.99999996E-13 : f32
    %121 = vector.broadcast %cst_39 : f32 to vector<16x1xf32>
    %122 = arith.addf %118, %121 : vector<16x1xf32>
    %123 = math.rsqrt %122 : vector<16x1xf32>
    %124 = vector.broadcast %123 : vector<16x1xf32> to vector<16x32xf32>
    %125 = arith.mulf %120, %124 : vector<16x32xf32>
    %c0_40 = arith.constant 0 : index
    %c0_41 = arith.constant 0 : index
    %126 = vector.load %arg8[%c0_40, %c0_41] : memref<32x192xf32, #tpu.memory_space<vmem>>, vector<32x192xf32>
    %cst_42 = arith.constant dense<0.000000e+00> : vector<16x192xf32>
    %127 = tpu.matmul %125, %126, %cst_42 {dimension_numbers = #tpu.dot_dimension_numbers<[1], [0], [0], [1], [0, 0, 1, 1], [], []>} : vector<16x32xf32>, vector<32x192xf32>, vector<16x192xf32> -> vector<16x192xf32>
    %128 = vector.broadcast %2 : vector<1x192xf32> to vector<16x192xf32>
    %129 = arith.addf %127, %128 : vector<16x192xf32>
    %130 = vector.extract_strided_slice %129 {offsets = [0, 0], sizes = [16, 96], strides = [1, 1]} : vector<16x192xf32> to vector<16x96xf32>
    %131 = vector.extract_strided_slice %129 {offsets = [0, 128], sizes = [16, 64], strides = [1, 1]} : vector<16x192xf32> to vector<16x64xf32>
    %132 = arith.mulf %131, %131 : vector<16x64xf32>
    %133 = arith.mulf %131, %132 : vector<16x64xf32>
    %cst_43 = arith.constant 4.471500e-02 : f32
    %134 = vector.broadcast %cst_43 : f32 to vector<16x64xf32>
    %135 = arith.mulf %134, %133 : vector<16x64xf32>
    %136 = arith.addf %131, %135 : vector<16x64xf32>
    %cst_44 = arith.constant 0.797884583 : f32
    %137 = vector.broadcast %cst_44 : f32 to vector<16x64xf32>
    %138 = arith.mulf %137, %136 : vector<16x64xf32>
    %139 = math.tanh %138 : vector<16x64xf32>
    %cst_45 = arith.constant 1.000000e+00 : f32
    %140 = vector.broadcast %cst_45 : f32 to vector<16x64xf32>
    %141 = arith.addf %140, %139 : vector<16x64xf32>
    %cst_46 = arith.constant 5.000000e-01 : f32
    %142 = vector.broadcast %cst_46 : f32 to vector<16x64xf32>
    %143 = arith.mulf %142, %141 : vector<16x64xf32>
    %144 = arith.mulf %131, %143 : vector<16x64xf32>
    %c0_47 = arith.constant 0 : index
    %c0_48 = arith.constant 0 : index
    %c0_49 = arith.constant 0 : index
    %145 = vector.load %arg9[%c0_47, %c0_48, %c0_49] : memref<4x8x32xf32, #tpu.memory_space<vmem>>, vector<4x8x32xf32>
    %c0_50 = arith.constant 0 : index
    %c0_51 = arith.constant 0 : index
    %146 = vector.load %arg2[%c0_50, %c0_51] : memref<2x8xf32, #tpu.memory_space<vmem>>, vector<2x8xf32>
    %c0_52 = arith.constant 0 : index
    %c0_53 = arith.constant 0 : index
    %147 = vector.load %arg3[%c0_52, %c0_53] : memref<2x8xf32, #tpu.memory_space<vmem>>, vector<2x8xf32>
    %148 = vector.extract_strided_slice %146 {offsets = [0, 0], sizes = [1, 8], strides = [1, 1]} : vector<2x8xf32> to vector<1x8xf32>
    %149 = vector.extract_strided_slice %147 {offsets = [0, 0], sizes = [1, 8], strides = [1, 1]} : vector<2x8xf32> to vector<1x8xf32>
    %150 = vector.extract_strided_slice %130 {offsets = [0, 0], sizes = [8, 96], strides = [1, 1]} : vector<16x96xf32> to vector<8x96xf32>
    %151 = vector.extract_strided_slice %150 {offsets = [0, 0], sizes = [8, 8], strides = [1, 1]} : vector<8x96xf32> to vector<8x8xf32>
    %152 = vector.extract_strided_slice %150 {offsets = [0, 32], sizes = [8, 8], strides = [1, 1]} : vector<8x96xf32> to vector<8x8xf32>
    %153 = vector.extract_strided_slice %150 {offsets = [0, 64], sizes = [8, 8], strides = [1, 1]} : vector<8x96xf32> to vector<8x8xf32>
    %cst_54 = arith.constant dense<0.000000e+00> : vector<8x8xf32>
    %154 = tpu.matmul %151, %152, %cst_54 {dimension_numbers = #tpu.dot_dimension_numbers<[1], [1], [0], [0], [0, 0, 1, 0], [], []>} : vector<8x8xf32>, vector<8x8xf32>, vector<8x8xf32> -> vector<8x8xf32>
    %cst_55 = arith.constant 0.353553385 : f32
    %155 = vector.broadcast %cst_55 : f32 to vector<8x8xf32>
    %156 = arith.mulf %154, %155 : vector<8x8xf32>
    %157 = vector.broadcast %148 : vector<1x8xf32> to vector<8x8xf32>
    %158 = arith.addf %156, %157 : vector<8x8xf32>
    %cst_56 = arith.constant dense<0xFF800000> : vector<8xf32>
    %159 = vector.multi_reduction <maximumf>, %158, %cst_56 [1] : vector<8x8xf32> to vector<8xf32>
    %160 = vector.shape_cast %159 : vector<8xf32> to vector<8x1xf32>
    %161 = vector.broadcast %160 : vector<8x1xf32> to vector<8x8xf32>
    %162 = arith.subf %158, %161 : vector<8x8xf32>
    %163 = math.exp %162 : vector<8x8xf32>
    %cst_57 = arith.constant dense<0.000000e+00> : vector<8xf32>
    %164 = vector.multi_reduction <add>, %163, %cst_57 [1] : vector<8x8xf32> to vector<8xf32>
    %165 = vector.shape_cast %164 : vector<8xf32> to vector<8x1xf32>
    %166 = tpu.reciprocal %165 {approx = true} : vector<8x1xf32> -> vector<8x1xf32>
    %167 = vector.broadcast %166 : vector<8x1xf32> to vector<8x8xf32>
    %168 = arith.mulf %163, %167 : vector<8x8xf32>
    %169 = vector.broadcast %149 : vector<1x8xf32> to vector<8x8xf32>
    %170 = arith.mulf %168, %169 : vector<8x8xf32>
    %cst_58 = arith.constant dense<0.000000e+00> : vector<8x8xf32>
    %171 = tpu.matmul %170, %153, %cst_58 {dimension_numbers = #tpu.dot_dimension_numbers<[1], [0], [0], [1], [0, 0, 1, 1], [], []>} : vector<8x8xf32>, vector<8x8xf32>, vector<8x8xf32> -> vector<8x8xf32>
    %172 = vector.extract_strided_slice %145 {offsets = [0, 0, 0], sizes = [1, 8, 32], strides = [1, 1, 1]} : vector<4x8x32xf32> to vector<1x8x32xf32>
    %173 = vector.shape_cast %172 : vector<1x8x32xf32> to vector<8x32xf32>
    %cst_59 = arith.constant dense<0.000000e+00> : vector<8x32xf32>
    %174 = tpu.matmul %171, %173, %cst_59 {dimension_numbers = #tpu.dot_dimension_numbers<[1], [0], [0], [1], [0, 0, 1, 1], [], []>} : vector<8x8xf32>, vector<8x32xf32>, vector<8x32xf32> -> vector<8x32xf32>
    %175 = vector.extract_strided_slice %150 {offsets = [0, 8], sizes = [8, 8], strides = [1, 1]} : vector<8x96xf32> to vector<8x8xf32>
    %176 = vector.extract_strided_slice %150 {offsets = [0, 40], sizes = [8, 8], strides = [1, 1]} : vector<8x96xf32> to vector<8x8xf32>
    %177 = vector.extract_strided_slice %150 {offsets = [0, 72], sizes = [8, 8], strides = [1, 1]} : vector<8x96xf32> to vector<8x8xf32>
    %cst_60 = arith.constant dense<0.000000e+00> : vector<8x8xf32>
    %178 = tpu.matmul %175, %176, %cst_60 {dimension_numbers = #tpu.dot_dimension_numbers<[1], [1], [0], [0], [0, 0, 1, 0], [], []>} : vector<8x8xf32>, vector<8x8xf32>, vector<8x8xf32> -> vector<8x8xf32>
    %cst_61 = arith.constant 0.353553385 : f32
    %179 = vector.broadcast %cst_61 : f32 to vector<8x8xf32>
    %180 = arith.mulf %178, %179 : vector<8x8xf32>
    %181 = vector.broadcast %148 : vector<1x8xf32> to vector<8x8xf32>
    %182 = arith.addf %180, %181 : vector<8x8xf32>
    %cst_62 = arith.constant dense<0xFF800000> : vector<8xf32>
    %183 = vector.multi_reduction <maximumf>, %182, %cst_62 [1] : vector<8x8xf32> to vector<8xf32>
    %184 = vector.shape_cast %183 : vector<8xf32> to vector<8x1xf32>
    %185 = vector.broadcast %184 : vector<8x1xf32> to vector<8x8xf32>
    %186 = arith.subf %182, %185 : vector<8x8xf32>
    %187 = math.exp %186 : vector<8x8xf32>
    %cst_63 = arith.constant dense<0.000000e+00> : vector<8xf32>
    %188 = vector.multi_reduction <add>, %187, %cst_63 [1] : vector<8x8xf32> to vector<8xf32>
    %189 = vector.shape_cast %188 : vector<8xf32> to vector<8x1xf32>
    %190 = tpu.reciprocal %189 {approx = true} : vector<8x1xf32> -> vector<8x1xf32>
    %191 = vector.broadcast %190 : vector<8x1xf32> to vector<8x8xf32>
    %192 = arith.mulf %187, %191 : vector<8x8xf32>
    %193 = vector.broadcast %149 : vector<1x8xf32> to vector<8x8xf32>
    %194 = arith.mulf %192, %193 : vector<8x8xf32>
    %cst_64 = arith.constant dense<0.000000e+00> : vector<8x8xf32>
    %195 = tpu.matmul %194, %177, %cst_64 {dimension_numbers = #tpu.dot_dimension_numbers<[1], [0], [0], [1], [0, 0, 1, 1], [], []>} : vector<8x8xf32>, vector<8x8xf32>, vector<8x8xf32> -> vector<8x8xf32>
    %196 = vector.extract_strided_slice %145 {offsets = [1, 0, 0], sizes = [1, 8, 32], strides = [1, 1, 1]} : vector<4x8x32xf32> to vector<1x8x32xf32>
    %197 = vector.shape_cast %196 : vector<1x8x32xf32> to vector<8x32xf32>
    %cst_65 = arith.constant dense<0.000000e+00> : vector<8x32xf32>
    %198 = tpu.matmul %195, %197, %cst_65 {dimension_numbers = #tpu.dot_dimension_numbers<[1], [0], [0], [1], [0, 0, 1, 1], [], []>} : vector<8x8xf32>, vector<8x32xf32>, vector<8x32xf32> -> vector<8x32xf32>
    %199 = arith.addf %174, %198 : vector<8x32xf32>
    %200 = vector.extract_strided_slice %150 {offsets = [0, 16], sizes = [8, 8], strides = [1, 1]} : vector<8x96xf32> to vector<8x8xf32>
    %201 = vector.extract_strided_slice %150 {offsets = [0, 48], sizes = [8, 8], strides = [1, 1]} : vector<8x96xf32> to vector<8x8xf32>
    %202 = vector.extract_strided_slice %150 {offsets = [0, 80], sizes = [8, 8], strides = [1, 1]} : vector<8x96xf32> to vector<8x8xf32>
    %cst_66 = arith.constant dense<0.000000e+00> : vector<8x8xf32>
    %203 = tpu.matmul %200, %201, %cst_66 {dimension_numbers = #tpu.dot_dimension_numbers<[1], [1], [0], [0], [0, 0, 1, 0], [], []>} : vector<8x8xf32>, vector<8x8xf32>, vector<8x8xf32> -> vector<8x8xf32>
    %cst_67 = arith.constant 0.353553385 : f32
    %204 = vector.broadcast %cst_67 : f32 to vector<8x8xf32>
    %205 = arith.mulf %203, %204 : vector<8x8xf32>
    %206 = vector.broadcast %148 : vector<1x8xf32> to vector<8x8xf32>
    %207 = arith.addf %205, %206 : vector<8x8xf32>
    %cst_68 = arith.constant dense<0xFF800000> : vector<8xf32>
    %208 = vector.multi_reduction <maximumf>, %207, %cst_68 [1] : vector<8x8xf32> to vector<8xf32>
    %209 = vector.shape_cast %208 : vector<8xf32> to vector<8x1xf32>
    %210 = vector.broadcast %209 : vector<8x1xf32> to vector<8x8xf32>
    %211 = arith.subf %207, %210 : vector<8x8xf32>
    %212 = math.exp %211 : vector<8x8xf32>
    %cst_69 = arith.constant dense<0.000000e+00> : vector<8xf32>
    %213 = vector.multi_reduction <add>, %212, %cst_69 [1] : vector<8x8xf32> to vector<8xf32>
    %214 = vector.shape_cast %213 : vector<8xf32> to vector<8x1xf32>
    %215 = tpu.reciprocal %214 {approx = true} : vector<8x1xf32> -> vector<8x1xf32>
    %216 = vector.broadcast %215 : vector<8x1xf32> to vector<8x8xf32>
    %217 = arith.mulf %212, %216 : vector<8x8xf32>
    %218 = vector.broadcast %149 : vector<1x8xf32> to vector<8x8xf32>
    %219 = arith.mulf %217, %218 : vector<8x8xf32>
    %cst_70 = arith.constant dense<0.000000e+00> : vector<8x8xf32>
    %220 = tpu.matmul %219, %202, %cst_70 {dimension_numbers = #tpu.dot_dimension_numbers<[1], [0], [0], [1], [0, 0, 1, 1], [], []>} : vector<8x8xf32>, vector<8x8xf32>, vector<8x8xf32> -> vector<8x8xf32>
    %221 = vector.extract_strided_slice %145 {offsets = [2, 0, 0], sizes = [1, 8, 32], strides = [1, 1, 1]} : vector<4x8x32xf32> to vector<1x8x32xf32>
    %222 = vector.shape_cast %221 : vector<1x8x32xf32> to vector<8x32xf32>
    %cst_71 = arith.constant dense<0.000000e+00> : vector<8x32xf32>
    %223 = tpu.matmul %220, %222, %cst_71 {dimension_numbers = #tpu.dot_dimension_numbers<[1], [0], [0], [1], [0, 0, 1, 1], [], []>} : vector<8x8xf32>, vector<8x32xf32>, vector<8x32xf32> -> vector<8x32xf32>
    %224 = arith.addf %199, %223 : vector<8x32xf32>
    %225 = vector.extract_strided_slice %150 {offsets = [0, 24], sizes = [8, 8], strides = [1, 1]} : vector<8x96xf32> to vector<8x8xf32>
    %226 = vector.extract_strided_slice %150 {offsets = [0, 56], sizes = [8, 8], strides = [1, 1]} : vector<8x96xf32> to vector<8x8xf32>
    %227 = vector.extract_strided_slice %150 {offsets = [0, 88], sizes = [8, 8], strides = [1, 1]} : vector<8x96xf32> to vector<8x8xf32>
    %cst_72 = arith.constant dense<0.000000e+00> : vector<8x8xf32>
    %228 = tpu.matmul %225, %226, %cst_72 {dimension_numbers = #tpu.dot_dimension_numbers<[1], [1], [0], [0], [0, 0, 1, 0], [], []>} : vector<8x8xf32>, vector<8x8xf32>, vector<8x8xf32> -> vector<8x8xf32>
    %cst_73 = arith.constant 0.353553385 : f32
    %229 = vector.broadcast %cst_73 : f32 to vector<8x8xf32>
    %230 = arith.mulf %228, %229 : vector<8x8xf32>
    %231 = vector.broadcast %148 : vector<1x8xf32> to vector<8x8xf32>
    %232 = arith.addf %230, %231 : vector<8x8xf32>
    %cst_74 = arith.constant dense<0xFF800000> : vector<8xf32>
    %233 = vector.multi_reduction <maximumf>, %232, %cst_74 [1] : vector<8x8xf32> to vector<8xf32>
    %234 = vector.shape_cast %233 : vector<8xf32> to vector<8x1xf32>
    %235 = vector.broadcast %234 : vector<8x1xf32> to vector<8x8xf32>
    %236 = arith.subf %232, %235 : vector<8x8xf32>
    %237 = math.exp %236 : vector<8x8xf32>
    %cst_75 = arith.constant dense<0.000000e+00> : vector<8xf32>
    %238 = vector.multi_reduction <add>, %237, %cst_75 [1] : vector<8x8xf32> to vector<8xf32>
    %239 = vector.shape_cast %238 : vector<8xf32> to vector<8x1xf32>
    %240 = tpu.reciprocal %239 {approx = true} : vector<8x1xf32> -> vector<8x1xf32>
    %241 = vector.broadcast %240 : vector<8x1xf32> to vector<8x8xf32>
    %242 = arith.mulf %237, %241 : vector<8x8xf32>
    %243 = vector.broadcast %149 : vector<1x8xf32> to vector<8x8xf32>
    %244 = arith.mulf %242, %243 : vector<8x8xf32>
    %cst_76 = arith.constant dense<0.000000e+00> : vector<8x8xf32>
    %245 = tpu.matmul %244, %227, %cst_76 {dimension_numbers = #tpu.dot_dimension_numbers<[1], [0], [0], [1], [0, 0, 1, 1], [], []>} : vector<8x8xf32>, vector<8x8xf32>, vector<8x8xf32> -> vector<8x8xf32>
    %246 = vector.extract_strided_slice %145 {offsets = [3, 0, 0], sizes = [1, 8, 32], strides = [1, 1, 1]} : vector<4x8x32xf32> to vector<1x8x32xf32>
    %247 = vector.shape_cast %246 : vector<1x8x32xf32> to vector<8x32xf32>
    %cst_77 = arith.constant dense<0.000000e+00> : vector<8x32xf32>
    %248 = tpu.matmul %245, %247, %cst_77 {dimension_numbers = #tpu.dot_dimension_numbers<[1], [0], [0], [1], [0, 0, 1, 1], [], []>} : vector<8x8xf32>, vector<8x32xf32>, vector<8x32xf32> -> vector<8x32xf32>
    %249 = arith.addf %224, %248 : vector<8x32xf32>
    %250 = vector.extract_strided_slice %146 {offsets = [1, 0], sizes = [1, 8], strides = [1, 1]} : vector<2x8xf32> to vector<1x8xf32>
    %251 = vector.extract_strided_slice %147 {offsets = [1, 0], sizes = [1, 8], strides = [1, 1]} : vector<2x8xf32> to vector<1x8xf32>
    %252 = vector.extract_strided_slice %130 {offsets = [8, 0], sizes = [8, 96], strides = [1, 1]} : vector<16x96xf32> to vector<8x96xf32>
    %253 = vector.extract_strided_slice %252 {offsets = [0, 0], sizes = [8, 8], strides = [1, 1]} : vector<8x96xf32> to vector<8x8xf32>
    %254 = vector.extract_strided_slice %252 {offsets = [0, 32], sizes = [8, 8], strides = [1, 1]} : vector<8x96xf32> to vector<8x8xf32>
    %255 = vector.extract_strided_slice %252 {offsets = [0, 64], sizes = [8, 8], strides = [1, 1]} : vector<8x96xf32> to vector<8x8xf32>
    %cst_78 = arith.constant dense<0.000000e+00> : vector<8x8xf32>
    %256 = tpu.matmul %253, %254, %cst_78 {dimension_numbers = #tpu.dot_dimension_numbers<[1], [1], [0], [0], [0, 0, 1, 0], [], []>} : vector<8x8xf32>, vector<8x8xf32>, vector<8x8xf32> -> vector<8x8xf32>
    %cst_79 = arith.constant 0.353553385 : f32
    %257 = vector.broadcast %cst_79 : f32 to vector<8x8xf32>
    %258 = arith.mulf %256, %257 : vector<8x8xf32>
    %259 = vector.broadcast %250 : vector<1x8xf32> to vector<8x8xf32>
    %260 = arith.addf %258, %259 : vector<8x8xf32>
    %cst_80 = arith.constant dense<0xFF800000> : vector<8xf32>
    %261 = vector.multi_reduction <maximumf>, %260, %cst_80 [1] : vector<8x8xf32> to vector<8xf32>
    %262 = vector.shape_cast %261 : vector<8xf32> to vector<8x1xf32>
    %263 = vector.broadcast %262 : vector<8x1xf32> to vector<8x8xf32>
    %264 = arith.subf %260, %263 : vector<8x8xf32>
    %265 = math.exp %264 : vector<8x8xf32>
    %cst_81 = arith.constant dense<0.000000e+00> : vector<8xf32>
    %266 = vector.multi_reduction <add>, %265, %cst_81 [1] : vector<8x8xf32> to vector<8xf32>
    %267 = vector.shape_cast %266 : vector<8xf32> to vector<8x1xf32>
    %268 = tpu.reciprocal %267 {approx = true} : vector<8x1xf32> -> vector<8x1xf32>
    %269 = vector.broadcast %268 : vector<8x1xf32> to vector<8x8xf32>
    %270 = arith.mulf %265, %269 : vector<8x8xf32>
    %271 = vector.broadcast %251 : vector<1x8xf32> to vector<8x8xf32>
    %272 = arith.mulf %270, %271 : vector<8x8xf32>
    %cst_82 = arith.constant dense<0.000000e+00> : vector<8x8xf32>
    %273 = tpu.matmul %272, %255, %cst_82 {dimension_numbers = #tpu.dot_dimension_numbers<[1], [0], [0], [1], [0, 0, 1, 1], [], []>} : vector<8x8xf32>, vector<8x8xf32>, vector<8x8xf32> -> vector<8x8xf32>
    %274 = vector.extract_strided_slice %145 {offsets = [0, 0, 0], sizes = [1, 8, 32], strides = [1, 1, 1]} : vector<4x8x32xf32> to vector<1x8x32xf32>
    %275 = vector.shape_cast %274 : vector<1x8x32xf32> to vector<8x32xf32>
    %cst_83 = arith.constant dense<0.000000e+00> : vector<8x32xf32>
    %276 = tpu.matmul %273, %275, %cst_83 {dimension_numbers = #tpu.dot_dimension_numbers<[1], [0], [0], [1], [0, 0, 1, 1], [], []>} : vector<8x8xf32>, vector<8x32xf32>, vector<8x32xf32> -> vector<8x32xf32>
    %277 = vector.extract_strided_slice %252 {offsets = [0, 8], sizes = [8, 8], strides = [1, 1]} : vector<8x96xf32> to vector<8x8xf32>
    %278 = vector.extract_strided_slice %252 {offsets = [0, 40], sizes = [8, 8], strides = [1, 1]} : vector<8x96xf32> to vector<8x8xf32>
    %279 = vector.extract_strided_slice %252 {offsets = [0, 72], sizes = [8, 8], strides = [1, 1]} : vector<8x96xf32> to vector<8x8xf32>
    %cst_84 = arith.constant dense<0.000000e+00> : vector<8x8xf32>
    %280 = tpu.matmul %277, %278, %cst_84 {dimension_numbers = #tpu.dot_dimension_numbers<[1], [1], [0], [0], [0, 0, 1, 0], [], []>} : vector<8x8xf32>, vector<8x8xf32>, vector<8x8xf32> -> vector<8x8xf32>
    %cst_85 = arith.constant 0.353553385 : f32
    %281 = vector.broadcast %cst_85 : f32 to vector<8x8xf32>
    %282 = arith.mulf %280, %281 : vector<8x8xf32>
    %283 = vector.broadcast %250 : vector<1x8xf32> to vector<8x8xf32>
    %284 = arith.addf %282, %283 : vector<8x8xf32>
    %cst_86 = arith.constant dense<0xFF800000> : vector<8xf32>
    %285 = vector.multi_reduction <maximumf>, %284, %cst_86 [1] : vector<8x8xf32> to vector<8xf32>
    %286 = vector.shape_cast %285 : vector<8xf32> to vector<8x1xf32>
    %287 = vector.broadcast %286 : vector<8x1xf32> to vector<8x8xf32>
    %288 = arith.subf %284, %287 : vector<8x8xf32>
    %289 = math.exp %288 : vector<8x8xf32>
    %cst_87 = arith.constant dense<0.000000e+00> : vector<8xf32>
    %290 = vector.multi_reduction <add>, %289, %cst_87 [1] : vector<8x8xf32> to vector<8xf32>
    %291 = vector.shape_cast %290 : vector<8xf32> to vector<8x1xf32>
    %292 = tpu.reciprocal %291 {approx = true} : vector<8x1xf32> -> vector<8x1xf32>
    %293 = vector.broadcast %292 : vector<8x1xf32> to vector<8x8xf32>
    %294 = arith.mulf %289, %293 : vector<8x8xf32>
    %295 = vector.broadcast %251 : vector<1x8xf32> to vector<8x8xf32>
    %296 = arith.mulf %294, %295 : vector<8x8xf32>
    %cst_88 = arith.constant dense<0.000000e+00> : vector<8x8xf32>
    %297 = tpu.matmul %296, %279, %cst_88 {dimension_numbers = #tpu.dot_dimension_numbers<[1], [0], [0], [1], [0, 0, 1, 1], [], []>} : vector<8x8xf32>, vector<8x8xf32>, vector<8x8xf32> -> vector<8x8xf32>
    %298 = vector.extract_strided_slice %145 {offsets = [1, 0, 0], sizes = [1, 8, 32], strides = [1, 1, 1]} : vector<4x8x32xf32> to vector<1x8x32xf32>
    %299 = vector.shape_cast %298 : vector<1x8x32xf32> to vector<8x32xf32>
    %cst_89 = arith.constant dense<0.000000e+00> : vector<8x32xf32>
    %300 = tpu.matmul %297, %299, %cst_89 {dimension_numbers = #tpu.dot_dimension_numbers<[1], [0], [0], [1], [0, 0, 1, 1], [], []>} : vector<8x8xf32>, vector<8x32xf32>, vector<8x32xf32> -> vector<8x32xf32>
    %301 = arith.addf %276, %300 : vector<8x32xf32>
    %302 = vector.extract_strided_slice %252 {offsets = [0, 16], sizes = [8, 8], strides = [1, 1]} : vector<8x96xf32> to vector<8x8xf32>
    %303 = vector.extract_strided_slice %252 {offsets = [0, 48], sizes = [8, 8], strides = [1, 1]} : vector<8x96xf32> to vector<8x8xf32>
    %304 = vector.extract_strided_slice %252 {offsets = [0, 80], sizes = [8, 8], strides = [1, 1]} : vector<8x96xf32> to vector<8x8xf32>
    %cst_90 = arith.constant dense<0.000000e+00> : vector<8x8xf32>
    %305 = tpu.matmul %302, %303, %cst_90 {dimension_numbers = #tpu.dot_dimension_numbers<[1], [1], [0], [0], [0, 0, 1, 0], [], []>} : vector<8x8xf32>, vector<8x8xf32>, vector<8x8xf32> -> vector<8x8xf32>
    %cst_91 = arith.constant 0.353553385 : f32
    %306 = vector.broadcast %cst_91 : f32 to vector<8x8xf32>
    %307 = arith.mulf %305, %306 : vector<8x8xf32>
    %308 = vector.broadcast %250 : vector<1x8xf32> to vector<8x8xf32>
    %309 = arith.addf %307, %308 : vector<8x8xf32>
    %cst_92 = arith.constant dense<0xFF800000> : vector<8xf32>
    %310 = vector.multi_reduction <maximumf>, %309, %cst_92 [1] : vector<8x8xf32> to vector<8xf32>
    %311 = vector.shape_cast %310 : vector<8xf32> to vector<8x1xf32>
    %312 = vector.broadcast %311 : vector<8x1xf32> to vector<8x8xf32>
    %313 = arith.subf %309, %312 : vector<8x8xf32>
    %314 = math.exp %313 : vector<8x8xf32>
    %cst_93 = arith.constant dense<0.000000e+00> : vector<8xf32>
    %315 = vector.multi_reduction <add>, %314, %cst_93 [1] : vector<8x8xf32> to vector<8xf32>
    %316 = vector.shape_cast %315 : vector<8xf32> to vector<8x1xf32>
    %317 = tpu.reciprocal %316 {approx = true} : vector<8x1xf32> -> vector<8x1xf32>
    %318 = vector.broadcast %317 : vector<8x1xf32> to vector<8x8xf32>
    %319 = arith.mulf %314, %318 : vector<8x8xf32>
    %320 = vector.broadcast %251 : vector<1x8xf32> to vector<8x8xf32>
    %321 = arith.mulf %319, %320 : vector<8x8xf32>
    %cst_94 = arith.constant dense<0.000000e+00> : vector<8x8xf32>
    %322 = tpu.matmul %321, %304, %cst_94 {dimension_numbers = #tpu.dot_dimension_numbers<[1], [0], [0], [1], [0, 0, 1, 1], [], []>} : vector<8x8xf32>, vector<8x8xf32>, vector<8x8xf32> -> vector<8x8xf32>
    %323 = vector.extract_strided_slice %145 {offsets = [2, 0, 0], sizes = [1, 8, 32], strides = [1, 1, 1]} : vector<4x8x32xf32> to vector<1x8x32xf32>
    %324 = vector.shape_cast %323 : vector<1x8x32xf32> to vector<8x32xf32>
    %cst_95 = arith.constant dense<0.000000e+00> : vector<8x32xf32>
    %325 = tpu.matmul %322, %324, %cst_95 {dimension_numbers = #tpu.dot_dimension_numbers<[1], [0], [0], [1], [0, 0, 1, 1], [], []>} : vector<8x8xf32>, vector<8x32xf32>, vector<8x32xf32> -> vector<8x32xf32>
    %326 = arith.addf %301, %325 : vector<8x32xf32>
    %327 = vector.extract_strided_slice %252 {offsets = [0, 24], sizes = [8, 8], strides = [1, 1]} : vector<8x96xf32> to vector<8x8xf32>
    %328 = vector.extract_strided_slice %252 {offsets = [0, 56], sizes = [8, 8], strides = [1, 1]} : vector<8x96xf32> to vector<8x8xf32>
    %329 = vector.extract_strided_slice %252 {offsets = [0, 88], sizes = [8, 8], strides = [1, 1]} : vector<8x96xf32> to vector<8x8xf32>
    %cst_96 = arith.constant dense<0.000000e+00> : vector<8x8xf32>
    %330 = tpu.matmul %327, %328, %cst_96 {dimension_numbers = #tpu.dot_dimension_numbers<[1], [1], [0], [0], [0, 0, 1, 0], [], []>} : vector<8x8xf32>, vector<8x8xf32>, vector<8x8xf32> -> vector<8x8xf32>
    %cst_97 = arith.constant 0.353553385 : f32
    %331 = vector.broadcast %cst_97 : f32 to vector<8x8xf32>
    %332 = arith.mulf %330, %331 : vector<8x8xf32>
    %333 = vector.broadcast %250 : vector<1x8xf32> to vector<8x8xf32>
    %334 = arith.addf %332, %333 : vector<8x8xf32>
    %cst_98 = arith.constant dense<0xFF800000> : vector<8xf32>
    %335 = vector.multi_reduction <maximumf>, %334, %cst_98 [1] : vector<8x8xf32> to vector<8xf32>
    %336 = vector.shape_cast %335 : vector<8xf32> to vector<8x1xf32>
    %337 = vector.broadcast %336 : vector<8x1xf32> to vector<8x8xf32>
    %338 = arith.subf %334, %337 : vector<8x8xf32>
    %339 = math.exp %338 : vector<8x8xf32>
    %cst_99 = arith.constant dense<0.000000e+00> : vector<8xf32>
    %340 = vector.multi_reduction <add>, %339, %cst_99 [1] : vector<8x8xf32> to vector<8xf32>
    %341 = vector.shape_cast %340 : vector<8xf32> to vector<8x1xf32>
    %342 = tpu.reciprocal %341 {approx = true} : vector<8x1xf32> -> vector<8x1xf32>
    %343 = vector.broadcast %342 : vector<8x1xf32> to vector<8x8xf32>
    %344 = arith.mulf %339, %343 : vector<8x8xf32>
    %345 = vector.broadcast %251 : vector<1x8xf32> to vector<8x8xf32>
    %346 = arith.mulf %344, %345 : vector<8x8xf32>
    %cst_100 = arith.constant dense<0.000000e+00> : vector<8x8xf32>
    %347 = tpu.matmul %346, %329, %cst_100 {dimension_numbers = #tpu.dot_dimension_numbers<[1], [0], [0], [1], [0, 0, 1, 1], [], []>} : vector<8x8xf32>, vector<8x8xf32>, vector<8x8xf32> -> vector<8x8xf32>
    %348 = vector.extract_strided_slice %145 {offsets = [3, 0, 0], sizes = [1, 8, 32], strides = [1, 1, 1]} : vector<4x8x32xf32> to vector<1x8x32xf32>
    %349 = vector.shape_cast %348 : vector<1x8x32xf32> to vector<8x32xf32>
    %cst_101 = arith.constant dense<0.000000e+00> : vector<8x32xf32>
    %350 = tpu.matmul %347, %349, %cst_101 {dimension_numbers = #tpu.dot_dimension_numbers<[1], [0], [0], [1], [0, 0, 1, 1], [], []>} : vector<8x8xf32>, vector<8x32xf32>, vector<8x32xf32> -> vector<8x32xf32>
    %351 = arith.addf %326, %350 : vector<8x32xf32>
    %352 = tpu.concatenate %249, %351 in 0 : vector<8x32xf32>, vector<8x32xf32> -> vector<16x32xf32>
    %353 = vector.extract_strided_slice %1 {offsets = [2, 0], sizes = [1, 32], strides = [1, 1]} : vector<16x128xf32> to vector<1x32xf32>
    %354 = vector.broadcast %353 : vector<1x32xf32> to vector<16x32xf32>
    %355 = arith.addf %352, %354 : vector<16x32xf32>
    %356 = vector.extract_strided_slice %144 {offsets = [0, 0], sizes = [16, 32], strides = [1, 1]} : vector<16x64xf32> to vector<16x32xf32>
    %357 = vector.extract_strided_slice %144 {offsets = [0, 32], sizes = [16, 32], strides = [1, 1]} : vector<16x64xf32> to vector<16x32xf32>
    %c0_102 = arith.constant 0 : index
    %c0_103 = arith.constant 0 : index
    %358 = vector.load %arg6[%c0_102, %c0_103] : memref<2x32xf32, #tpu.memory_space<vmem>>, vector<2x32xf32>
    %cst_104 = arith.constant dense<0.000000e+00> : vector<16xf32>
    %359 = vector.multi_reduction <add>, %357, %cst_104 [1] : vector<16x32xf32> to vector<16xf32>
    %360 = vector.shape_cast %359 : vector<16xf32> to vector<16x1xf32>
    %cst_105 = arith.constant 3.200000e+01 : f32
    %361 = vector.broadcast %cst_105 : f32 to vector<16x1xf32>
    %362 = arith.divf %360, %361 : vector<16x1xf32>
    %363 = vector.broadcast %362 : vector<16x1xf32> to vector<16x32xf32>
    %364 = arith.subf %357, %363 : vector<16x32xf32>
    %365 = arith.mulf %364, %364 : vector<16x32xf32>
    %cst_106 = arith.constant dense<0.000000e+00> : vector<16xf32>
    %366 = vector.multi_reduction <add>, %365, %cst_106 [1] : vector<16x32xf32> to vector<16xf32>
    %367 = vector.shape_cast %366 : vector<16xf32> to vector<16x1xf32>
    %cst_107 = arith.constant 3.200000e+01 : f32
    %368 = vector.broadcast %cst_107 : f32 to vector<16x1xf32>
    %369 = arith.divf %367, %368 : vector<16x1xf32>
    %370 = vector.broadcast %362 : vector<16x1xf32> to vector<16x32xf32>
    %371 = arith.subf %357, %370 : vector<16x32xf32>
    %cst_108 = arith.constant 9.99999996E-13 : f32
    %372 = vector.broadcast %cst_108 : f32 to vector<16x1xf32>
    %373 = arith.addf %369, %372 : vector<16x1xf32>
    %374 = math.rsqrt %373 : vector<16x1xf32>
    %375 = vector.broadcast %374 : vector<16x1xf32> to vector<16x32xf32>
    %376 = arith.mulf %371, %375 : vector<16x32xf32>
    %377 = vector.extract_strided_slice %358 {offsets = [0, 0], sizes = [1, 32], strides = [1, 1]} : vector<2x32xf32> to vector<1x32xf32>
    %378 = vector.broadcast %377 : vector<1x32xf32> to vector<16x32xf32>
    %379 = arith.mulf %376, %378 : vector<16x32xf32>
    %380 = vector.extract_strided_slice %358 {offsets = [1, 0], sizes = [1, 32], strides = [1, 1]} : vector<2x32xf32> to vector<1x32xf32>
    %381 = vector.broadcast %380 : vector<1x32xf32> to vector<16x32xf32>
    %382 = arith.addf %379, %381 : vector<16x32xf32>
    %c0_109 = arith.constant 0 : index
    %c0_110 = arith.constant 0 : index
    %383 = vector.load %arg10[%c0_109, %c0_110] : memref<7x32xf32, #tpu.memory_space<vmem>>, vector<7x32xf32>
    %384 = vector.extract_strided_slice %1 {offsets = [3, 0], sizes = [1, 32], strides = [1, 1]} : vector<16x128xf32> to vector<1x32xf32>
    %385 = vector.extract_strided_slice %383 {offsets = [3, 0], sizes = [1, 32], strides = [1, 1]} : vector<7x32xf32> to vector<1x32xf32>
    %386 = vector.broadcast %385 : vector<1x32xf32> to vector<16x32xf32>
    %387 = arith.mulf %382, %386 : vector<16x32xf32>
    %c3_i32_111 = arith.constant 3 : i32
    %388 = tpu.dynamic_rotate %382 by %c3_i32_111 dim 0 : vector<16x32xf32>, i32 -> vector<16x32xf32>
    %389 = vector.broadcast %15 : vector<16x1xf32> to vector<16x32xf32>
    %390 = arith.mulf %388, %389 : vector<16x32xf32>
    %391 = vector.extract_strided_slice %383 {offsets = [0, 0], sizes = [1, 32], strides = [1, 1]} : vector<7x32xf32> to vector<1x32xf32>
    %392 = vector.broadcast %391 : vector<1x32xf32> to vector<16x32xf32>
    %393 = arith.mulf %390, %392 : vector<16x32xf32>
    %394 = arith.addf %387, %393 : vector<16x32xf32>
    %c2_i32_112 = arith.constant 2 : i32
    %395 = tpu.dynamic_rotate %382 by %c2_i32_112 dim 0 : vector<16x32xf32>, i32 -> vector<16x32xf32>
    %396 = vector.broadcast %26 : vector<16x1xf32> to vector<16x32xf32>
    %397 = arith.mulf %395, %396 : vector<16x32xf32>
    %398 = vector.extract_strided_slice %383 {offsets = [1, 0], sizes = [1, 32], strides = [1, 1]} : vector<7x32xf32> to vector<1x32xf32>
    %399 = vector.broadcast %398 : vector<1x32xf32> to vector<16x32xf32>
    %400 = arith.mulf %397, %399 : vector<16x32xf32>
    %401 = arith.addf %394, %400 : vector<16x32xf32>
    %c1_i32_113 = arith.constant 1 : i32
    %402 = tpu.dynamic_rotate %382 by %c1_i32_113 dim 0 : vector<16x32xf32>, i32 -> vector<16x32xf32>
    %403 = vector.broadcast %37 : vector<16x1xf32> to vector<16x32xf32>
    %404 = arith.mulf %402, %403 : vector<16x32xf32>
    %405 = vector.extract_strided_slice %383 {offsets = [2, 0], sizes = [1, 32], strides = [1, 1]} : vector<7x32xf32> to vector<1x32xf32>
    %406 = vector.broadcast %405 : vector<1x32xf32> to vector<16x32xf32>
    %407 = arith.mulf %404, %406 : vector<16x32xf32>
    %408 = arith.addf %401, %407 : vector<16x32xf32>
    %c15_i32 = arith.constant 15 : i32
    %409 = tpu.dynamic_rotate %382 by %c15_i32 dim 0 : vector<16x32xf32>, i32 -> vector<16x32xf32>
    %410 = vector.broadcast %48 : vector<16x1xf32> to vector<16x32xf32>
    %411 = arith.mulf %409, %410 : vector<16x32xf32>
    %412 = vector.extract_strided_slice %383 {offsets = [4, 0], sizes = [1, 32], strides = [1, 1]} : vector<7x32xf32> to vector<1x32xf32>
    %413 = vector.broadcast %412 : vector<1x32xf32> to vector<16x32xf32>
    %414 = arith.mulf %411, %413 : vector<16x32xf32>
    %415 = arith.addf %408, %414 : vector<16x32xf32>
    %c14_i32 = arith.constant 14 : i32
    %416 = tpu.dynamic_rotate %382 by %c14_i32 dim 0 : vector<16x32xf32>, i32 -> vector<16x32xf32>
    %417 = vector.broadcast %59 : vector<16x1xf32> to vector<16x32xf32>
    %418 = arith.mulf %416, %417 : vector<16x32xf32>
    %419 = vector.extract_strided_slice %383 {offsets = [5, 0], sizes = [1, 32], strides = [1, 1]} : vector<7x32xf32> to vector<1x32xf32>
    %420 = vector.broadcast %419 : vector<1x32xf32> to vector<16x32xf32>
    %421 = arith.mulf %418, %420 : vector<16x32xf32>
    %422 = arith.addf %415, %421 : vector<16x32xf32>
    %c13_i32 = arith.constant 13 : i32
    %423 = tpu.dynamic_rotate %382 by %c13_i32 dim 0 : vector<16x32xf32>, i32 -> vector<16x32xf32>
    %424 = vector.broadcast %70 : vector<16x1xf32> to vector<16x32xf32>
    %425 = arith.mulf %423, %424 : vector<16x32xf32>
    %426 = vector.extract_strided_slice %383 {offsets = [6, 0], sizes = [1, 32], strides = [1, 1]} : vector<7x32xf32> to vector<1x32xf32>
    %427 = vector.broadcast %426 : vector<1x32xf32> to vector<16x32xf32>
    %428 = arith.mulf %425, %427 : vector<16x32xf32>
    %429 = arith.addf %422, %428 : vector<16x32xf32>
    %430 = vector.broadcast %384 : vector<1x32xf32> to vector<16x32xf32>
    %431 = arith.addf %429, %430 : vector<16x32xf32>
    %432 = arith.mulf %356, %431 : vector<16x32xf32>
    %c0_114 = arith.constant 0 : index
    %c0_115 = arith.constant 0 : index
    %433 = vector.load %arg11[%c0_114, %c0_115] : memref<32x32xf32, #tpu.memory_space<vmem>>, vector<32x32xf32>
    %cst_116 = arith.constant dense<0.000000e+00> : vector<16x32xf32>
    %434 = tpu.matmul %432, %433, %cst_116 {dimension_numbers = #tpu.dot_dimension_numbers<[1], [0], [0], [1], [0, 0, 1, 1], [], []>} : vector<16x32xf32>, vector<32x32xf32>, vector<16x32xf32> -> vector<16x32xf32>
    %435 = vector.extract_strided_slice %1 {offsets = [4, 0], sizes = [1, 32], strides = [1, 1]} : vector<16x128xf32> to vector<1x32xf32>
    %436 = vector.broadcast %435 : vector<1x32xf32> to vector<16x32xf32>
    %437 = arith.addf %434, %436 : vector<16x32xf32>
    %c0_117 = arith.constant 0 : index
    %c0_118 = arith.constant 0 : index
    %c0_119 = arith.constant 0 : index
    %438 = vector.load %arg12[%c0_117, %c0_118, %c0_119] : memref<2x3x32xf32, #tpu.memory_space<vmem>>, vector<2x3x32xf32>
    %c0_120 = arith.constant 0 : index
    %c0_121 = arith.constant 0 : index
    %c0_122 = arith.constant 0 : index
    %439 = vector.load %arg13[%c0_120, %c0_121, %c0_122] : memref<2x32x32xf32, #tpu.memory_space<vmem>>, vector<2x32x32xf32>
    %440 = vector.extract_strided_slice %438 {offsets = [0, 0, 0], sizes = [1, 3, 32], strides = [1, 1, 1]} : vector<2x3x32xf32> to vector<1x3x32xf32>
    %441 = vector.shape_cast %440 : vector<1x3x32xf32> to vector<3x32xf32>
    %442 = vector.extract_strided_slice %1 {offsets = [5, 0], sizes = [1, 32], strides = [1, 1]} : vector<16x128xf32> to vector<1x32xf32>
    %443 = vector.extract_strided_slice %441 {offsets = [1, 0], sizes = [1, 32], strides = [1, 1]} : vector<3x32xf32> to vector<1x32xf32>
    %444 = vector.broadcast %443 : vector<1x32xf32> to vector<16x32xf32>
    %445 = arith.mulf %355, %444 : vector<16x32xf32>
    %c1_i32_123 = arith.constant 1 : i32
    %446 = tpu.dynamic_rotate %355 by %c1_i32_123 dim 0 : vector<16x32xf32>, i32 -> vector<16x32xf32>
    %447 = vector.broadcast %37 : vector<16x1xf32> to vector<16x32xf32>
    %448 = arith.mulf %446, %447 : vector<16x32xf32>
    %449 = vector.extract_strided_slice %441 {offsets = [0, 0], sizes = [1, 32], strides = [1, 1]} : vector<3x32xf32> to vector<1x32xf32>
    %450 = vector.broadcast %449 : vector<1x32xf32> to vector<16x32xf32>
    %451 = arith.mulf %448, %450 : vector<16x32xf32>
    %452 = arith.addf %445, %451 : vector<16x32xf32>
    %c15_i32_124 = arith.constant 15 : i32
    %453 = tpu.dynamic_rotate %355 by %c15_i32_124 dim 0 : vector<16x32xf32>, i32 -> vector<16x32xf32>
    %454 = vector.broadcast %48 : vector<16x1xf32> to vector<16x32xf32>
    %455 = arith.mulf %453, %454 : vector<16x32xf32>
    %456 = vector.extract_strided_slice %441 {offsets = [2, 0], sizes = [1, 32], strides = [1, 1]} : vector<3x32xf32> to vector<1x32xf32>
    %457 = vector.broadcast %456 : vector<1x32xf32> to vector<16x32xf32>
    %458 = arith.mulf %455, %457 : vector<16x32xf32>
    %459 = arith.addf %452, %458 : vector<16x32xf32>
    %460 = vector.broadcast %442 : vector<1x32xf32> to vector<16x32xf32>
    %461 = arith.addf %459, %460 : vector<16x32xf32>
    %462 = vector.extract_strided_slice %438 {offsets = [1, 0, 0], sizes = [1, 3, 32], strides = [1, 1, 1]} : vector<2x3x32xf32> to vector<1x3x32xf32>
    %463 = vector.shape_cast %462 : vector<1x3x32xf32> to vector<3x32xf32>
    %464 = vector.extract_strided_slice %1 {offsets = [6, 0], sizes = [1, 32], strides = [1, 1]} : vector<16x128xf32> to vector<1x32xf32>
    %465 = vector.extract_strided_slice %463 {offsets = [1, 0], sizes = [1, 32], strides = [1, 1]} : vector<3x32xf32> to vector<1x32xf32>
    %466 = vector.broadcast %465 : vector<1x32xf32> to vector<16x32xf32>
    %467 = arith.mulf %437, %466 : vector<16x32xf32>
    %c1_i32_125 = arith.constant 1 : i32
    %468 = tpu.dynamic_rotate %437 by %c1_i32_125 dim 0 : vector<16x32xf32>, i32 -> vector<16x32xf32>
    %469 = vector.broadcast %37 : vector<16x1xf32> to vector<16x32xf32>
    %470 = arith.mulf %468, %469 : vector<16x32xf32>
    %471 = vector.extract_strided_slice %463 {offsets = [0, 0], sizes = [1, 32], strides = [1, 1]} : vector<3x32xf32> to vector<1x32xf32>
    %472 = vector.broadcast %471 : vector<1x32xf32> to vector<16x32xf32>
    %473 = arith.mulf %470, %472 : vector<16x32xf32>
    %474 = arith.addf %467, %473 : vector<16x32xf32>
    %c15_i32_126 = arith.constant 15 : i32
    %475 = tpu.dynamic_rotate %437 by %c15_i32_126 dim 0 : vector<16x32xf32>, i32 -> vector<16x32xf32>
    %476 = vector.broadcast %48 : vector<16x1xf32> to vector<16x32xf32>
    %477 = arith.mulf %475, %476 : vector<16x32xf32>
    %478 = vector.extract_strided_slice %463 {offsets = [2, 0], sizes = [1, 32], strides = [1, 1]} : vector<3x32xf32> to vector<1x32xf32>
    %479 = vector.broadcast %478 : vector<1x32xf32> to vector<16x32xf32>
    %480 = arith.mulf %477, %479 : vector<16x32xf32>
    %481 = arith.addf %474, %480 : vector<16x32xf32>
    %482 = vector.broadcast %464 : vector<1x32xf32> to vector<16x32xf32>
    %483 = arith.addf %481, %482 : vector<16x32xf32>
    %484 = arith.addf %355, %461 : vector<16x32xf32>
    %485 = vector.extract_strided_slice %439 {offsets = [0, 0, 0], sizes = [1, 32, 32], strides = [1, 1, 1]} : vector<2x32x32xf32> to vector<1x32x32xf32>
    %486 = vector.shape_cast %485 : vector<1x32x32xf32> to vector<32x32xf32>
    %cst_127 = arith.constant dense<0.000000e+00> : vector<16x32xf32>
    %487 = tpu.matmul %484, %486, %cst_127 {dimension_numbers = #tpu.dot_dimension_numbers<[1], [0], [0], [1], [0, 0, 1, 1], [], []>} : vector<16x32xf32>, vector<32x32xf32>, vector<16x32xf32> -> vector<16x32xf32>
    %488 = arith.addf %437, %483 : vector<16x32xf32>
    %489 = vector.extract_strided_slice %439 {offsets = [1, 0, 0], sizes = [1, 32, 32], strides = [1, 1, 1]} : vector<2x32x32xf32> to vector<1x32x32xf32>
    %490 = vector.shape_cast %489 : vector<1x32x32xf32> to vector<32x32xf32>
    %cst_128 = arith.constant dense<0.000000e+00> : vector<16x32xf32>
    %491 = tpu.matmul %488, %490, %cst_128 {dimension_numbers = #tpu.dot_dimension_numbers<[1], [0], [0], [1], [0, 0, 1, 1], [], []>} : vector<16x32xf32>, vector<32x32xf32>, vector<16x32xf32> -> vector<16x32xf32>
    %492 = arith.addf %487, %491 : vector<16x32xf32>
    %493 = vector.extract_strided_slice %1 {offsets = [7, 0], sizes = [1, 32], strides = [1, 1]} : vector<16x128xf32> to vector<1x32xf32>
    %494 = vector.broadcast %493 : vector<1x32xf32> to vector<16x32xf32>
    %495 = arith.addf %492, %494 : vector<16x32xf32>
    %496 = arith.addf %107, %495 : vector<16x32xf32>
    %cst_129 = arith.constant dense<0.000000e+00> : vector<16xf32>
    %497 = vector.multi_reduction <add>, %496, %cst_129 [1] : vector<16x32xf32> to vector<16xf32>
    %498 = vector.shape_cast %497 : vector<16xf32> to vector<16x1xf32>
    %cst_130 = arith.constant 3.200000e+01 : f32
    %499 = vector.broadcast %cst_130 : f32 to vector<16x1xf32>
    %500 = arith.divf %498, %499 : vector<16x1xf32>
    %501 = vector.broadcast %500 : vector<16x1xf32> to vector<16x32xf32>
    %502 = arith.subf %496, %501 : vector<16x32xf32>
    %503 = arith.mulf %502, %502 : vector<16x32xf32>
    %cst_131 = arith.constant dense<0.000000e+00> : vector<16xf32>
    %504 = vector.multi_reduction <add>, %503, %cst_131 [1] : vector<16x32xf32> to vector<16xf32>
    %505 = vector.shape_cast %504 : vector<16xf32> to vector<16x1xf32>
    %cst_132 = arith.constant 3.200000e+01 : f32
    %506 = vector.broadcast %cst_132 : f32 to vector<16x1xf32>
    %507 = arith.divf %505, %506 : vector<16x1xf32>
    %508 = vector.broadcast %500 : vector<16x1xf32> to vector<16x32xf32>
    %509 = arith.subf %496, %508 : vector<16x32xf32>
    %cst_133 = arith.constant 9.99999996E-13 : f32
    %510 = vector.broadcast %cst_133 : f32 to vector<16x1xf32>
    %511 = arith.addf %507, %510 : vector<16x1xf32>
    %512 = math.rsqrt %511 : vector<16x1xf32>
    %513 = vector.broadcast %512 : vector<16x1xf32> to vector<16x32xf32>
    %514 = arith.mulf %509, %513 : vector<16x32xf32>
    %515 = vector.extract_strided_slice %71 {offsets = [1, 0, 0], sizes = [1, 32, 64], strides = [1, 1, 1]} : vector<2x32x64xf32> to vector<1x32x64xf32>
    %516 = vector.shape_cast %515 : vector<1x32x64xf32> to vector<32x64xf32>
    %cst_134 = arith.constant dense<0.000000e+00> : vector<16x64xf32>
    %517 = tpu.matmul %514, %516, %cst_134 {dimension_numbers = #tpu.dot_dimension_numbers<[1], [0], [0], [1], [0, 0, 1, 1], [], []>} : vector<16x32xf32>, vector<32x64xf32>, vector<16x64xf32> -> vector<16x64xf32>
    %518 = vector.extract_strided_slice %1 {offsets = [8, 0], sizes = [1, 64], strides = [1, 1]} : vector<16x128xf32> to vector<1x64xf32>
    %519 = vector.broadcast %518 : vector<1x64xf32> to vector<16x64xf32>
    %520 = arith.addf %517, %519 : vector<16x64xf32>
    %cst_135 = arith.constant 0.000000e+00 : f32
    %521 = vector.broadcast %cst_135 : f32 to vector<16x64xf32>
    %522 = arith.maximumf %520, %521 : vector<16x64xf32>
    %523 = vector.extract_strided_slice %72 {offsets = [1, 0, 0], sizes = [1, 64, 32], strides = [1, 1, 1]} : vector<2x64x32xf32> to vector<1x64x32xf32>
    %524 = vector.shape_cast %523 : vector<1x64x32xf32> to vector<64x32xf32>
    %cst_136 = arith.constant dense<0.000000e+00> : vector<16x32xf32>
    %525 = tpu.matmul %522, %524, %cst_136 {dimension_numbers = #tpu.dot_dimension_numbers<[1], [0], [0], [1], [0, 0, 1, 1], [], []>} : vector<16x64xf32>, vector<64x32xf32>, vector<16x32xf32> -> vector<16x32xf32>
    %526 = vector.extract_strided_slice %1 {offsets = [9, 0], sizes = [1, 32], strides = [1, 1]} : vector<16x128xf32> to vector<1x32xf32>
    %527 = vector.broadcast %526 : vector<1x32xf32> to vector<16x32xf32>
    %528 = arith.addf %525, %527 : vector<16x32xf32>
    %cst_137 = arith.constant 5.000000e-01 : f32
    %529 = vector.broadcast %cst_137 : f32 to vector<16x32xf32>
    %530 = arith.mulf %529, %528 : vector<16x32xf32>
    %531 = arith.addf %496, %530 : vector<16x32xf32>
    %c0_138 = arith.constant 0 : index
    %c0_139 = arith.constant 0 : index
    %532 = vector.load %arg7[%c0_138, %c0_139] : memref<2x32xf32, #tpu.memory_space<vmem>>, vector<2x32xf32>
    %cst_140 = arith.constant dense<0.000000e+00> : vector<16xf32>
    %533 = vector.multi_reduction <add>, %531, %cst_140 [1] : vector<16x32xf32> to vector<16xf32>
    %534 = vector.shape_cast %533 : vector<16xf32> to vector<16x1xf32>
    %cst_141 = arith.constant 3.200000e+01 : f32
    %535 = vector.broadcast %cst_141 : f32 to vector<16x1xf32>
    %536 = arith.divf %534, %535 : vector<16x1xf32>
    %537 = vector.broadcast %536 : vector<16x1xf32> to vector<16x32xf32>
    %538 = arith.subf %531, %537 : vector<16x32xf32>
    %539 = arith.mulf %538, %538 : vector<16x32xf32>
    %cst_142 = arith.constant dense<0.000000e+00> : vector<16xf32>
    %540 = vector.multi_reduction <add>, %539, %cst_142 [1] : vector<16x32xf32> to vector<16xf32>
    %541 = vector.shape_cast %540 : vector<16xf32> to vector<16x1xf32>
    %cst_143 = arith.constant 3.200000e+01 : f32
    %542 = vector.broadcast %cst_143 : f32 to vector<16x1xf32>
    %543 = arith.divf %541, %542 : vector<16x1xf32>
    %544 = vector.broadcast %536 : vector<16x1xf32> to vector<16x32xf32>
    %545 = arith.subf %531, %544 : vector<16x32xf32>
    %cst_144 = arith.constant 9.99999996E-13 : f32
    %546 = vector.broadcast %cst_144 : f32 to vector<16x1xf32>
    %547 = arith.addf %543, %546 : vector<16x1xf32>
    %548 = math.rsqrt %547 : vector<16x1xf32>
    %549 = vector.broadcast %548 : vector<16x1xf32> to vector<16x32xf32>
    %550 = arith.mulf %545, %549 : vector<16x32xf32>
    %551 = vector.extract_strided_slice %532 {offsets = [0, 0], sizes = [1, 32], strides = [1, 1]} : vector<2x32xf32> to vector<1x32xf32>
    %552 = vector.broadcast %551 : vector<1x32xf32> to vector<16x32xf32>
    %553 = arith.mulf %550, %552 : vector<16x32xf32>
    %554 = vector.extract_strided_slice %532 {offsets = [1, 0], sizes = [1, 32], strides = [1, 1]} : vector<2x32xf32> to vector<1x32xf32>
    %555 = vector.broadcast %554 : vector<1x32xf32> to vector<16x32xf32>
    %556 = arith.addf %553, %555 : vector<16x32xf32>
    %c0_145 = arith.constant 0 : index
    %c0_146 = arith.constant 0 : index
    %557 = vector.load %arg16[%c0_145, %c0_146] : memref<16x32xf32, #tpu.memory_space<vmem>>, vector<16x32xf32>
    tpu.vector_store %arg16[%c0_145, %c0_146], %556 {strides = array<i32>} : memref<16x32xf32, #tpu.memory_space<vmem>>, vector<16x32xf32>,
    return
  }
  func.func @transform_0(%arg0: i32) -> (i32, i32) {
    %c0_i32 = arith.constant 0 : i32
    %c0_i32_0 = arith.constant 0 : i32
    %c0_i32_1 = arith.constant 0 : i32
    return %c0_i32, %c0_i32_0 : i32, i32
  }
  func.func @transform_1(%arg0: i32) -> (i32, i32) {
    %c0_i32 = arith.constant 0 : i32
    %c0_i32_0 = arith.constant 0 : i32
    %c0_i32_1 = arith.constant 0 : i32
    return %c0_i32, %c0_i32_0 : i32, i32
  }
  func.func @transform_2(%arg0: i32) -> (i32, i32) {
    %c0_i32 = arith.constant 0 : i32
    %c0_i32_0 = arith.constant 0 : i32
    %c0_i32_1 = arith.constant 0 : i32
    return %c0_i32, %c0_i32_0 : i32, i32
  }
  func.func @transform_3(%arg0: i32) -> (i32, i32) {
    %c0_i32 = arith.constant 0 : i32
    %c0_i32_0 = arith.constant 0 : i32
    %c0_i32_1 = arith.constant 0 : i32
    return %c0_i32, %c0_i32_0 : i32, i32
  }
  func.func @transform_4(%arg0: i32) -> (i32, i32) {
    %c0_i32 = arith.constant 0 : i32
    %c0_i32_0 = arith.constant 0 : i32
    %c0_i32_1 = arith.constant 0 : i32
    return %c0_i32, %c0_i32_0 : i32, i32
  }
  func.func @transform_5(%arg0: i32) -> (i32, i32) {
    %c0_i32 = arith.constant 0 : i32
    %c0_i32_0 = arith.constant 0 : i32
    %c0_i32_1 = arith.constant 0 : i32
    return %c0_i32, %c0_i32_0 : i32, i32
  }
  func.func @transform_6(%arg0: i32) -> (i32, i32) {
    %c0_i32 = arith.constant 0 : i32
    %c0_i32_0 = arith.constant 0 : i32
    %c0_i32_1 = arith.constant 0 : i32
    return %c0_i32, %c0_i32_0 : i32, i32
  }
  func.func @transform_7(%arg0: i32) -> (i32, i32) {
    %c0_i32 = arith.constant 0 : i32
    %c0_i32_0 = arith.constant 0 : i32
    %c0_i32_1 = arith.constant 0 : i32
    return %c0_i32, %c0_i32_0 : i32, i32
  }
  func.func @transform_8(%arg0: i32) -> (i32, i32, i32) {
    %c0_i32 = arith.constant 0 : i32
    %c0_i32_0 = arith.constant 0 : i32
    %c0_i32_1 = arith.constant 0 : i32
    %c0_i32_2 = arith.constant 0 : i32
    return %c0_i32, %c0_i32_0, %c0_i32_1 : i32, i32, i32
  }
  func.func @transform_9(%arg0: i32) -> (i32, i32) {
    %c0_i32 = arith.constant 0 : i32
    %c0_i32_0 = arith.constant 0 : i32
    %c0_i32_1 = arith.constant 0 : i32
    return %c0_i32, %c0_i32_0 : i32, i32
  }
  func.func @transform_10(%arg0: i32) -> (i32, i32) {
    %c0_i32 = arith.constant 0 : i32
    %c0_i32_0 = arith.constant 0 : i32
    %c0_i32_1 = arith.constant 0 : i32
    return %c0_i32, %c0_i32_0 : i32, i32
  }
  func.func @transform_11(%arg0: i32) -> (i32, i32, i32) {
    %c0_i32 = arith.constant 0 : i32
    %c0_i32_0 = arith.constant 0 : i32
    %c0_i32_1 = arith.constant 0 : i32
    %c0_i32_2 = arith.constant 0 : i32
    return %c0_i32, %c0_i32_0, %c0_i32_1 : i32, i32, i32
  }
  func.func @transform_12(%arg0: i32) -> (i32, i32, i32) {
    %c0_i32 = arith.constant 0 : i32
    %c0_i32_0 = arith.constant 0 : i32
    %c0_i32_1 = arith.constant 0 : i32
    %c0_i32_2 = arith.constant 0 : i32
    return %c0_i32, %c0_i32_0, %c0_i32_1 : i32, i32, i32
  }
  func.func @transform_13(%arg0: i32) -> (i32, i32, i32) {
    %c0_i32 = arith.constant 0 : i32
    %c0_i32_0 = arith.constant 0 : i32
    %c0_i32_1 = arith.constant 0 : i32
    %c0_i32_2 = arith.constant 0 : i32
    return %c0_i32, %c0_i32_0, %c0_i32_1 : i32, i32, i32
  }
  func.func @transform_14(%arg0: i32) -> (i32, i32, i32) {
    %c0_i32 = arith.constant 0 : i32
    %c0_i32_0 = arith.constant 0 : i32
    %c0_i32_1 = arith.constant 0 : i32
    %c0_i32_2 = arith.constant 0 : i32
    return %c0_i32, %c0_i32_0, %c0_i32_1 : i32, i32, i32
  }
  func.func @transform_15(%arg0: i32) -> (i32, i32) {
    %c0_i32 = arith.constant 0 : i32
    %c0_i32_0 = arith.constant 0 : i32
    %c0_i32_1 = arith.constant 0 : i32
    return %c0_i32, %c0_i32_0 : i32, i32
  }
}

</mosaic_0001>

<bundles_post_ra>
// kernel: tpu_custom_call.1
= control target key start
LH: loop header
LB: loop body
LE: loop exit
PB: predicated region body
PF: predicated region fallthrough
CT: control target
= control target key end

     0   :  { %20 = vsyncpa [#allocation3], 0  ;;  %s5042_s0 = inlined_call_operand.hbm [shape: f32[16,32], index: 0, kind: input, shape index: {}]   ;;  %s5043_s1 = inlined_call_operand.vmem [shape: f32[2,8], index: 1, kind: input, shape index: {}]   ;;  %s5044_s2 = inlined_call_operand.hbm [shape: f32[2,8], index: 2, kind: input, shape index: {}]   ;;  %s5045_s3 = inlined_call_operand.hbm [shape: f32[1,192], index: 3, kind: input, shape index: {}]   ;;  %s5046_s4 = inlined_call_operand.hbm [shape: f32[16,128], index: 4, kind: input, shape index: {}]   ;;  %s5047_s5 = inlined_call_operand.hbm [shape: f32[2,32], index: 5, kind: input, shape index: {}]   ;;  %s5048_s6 = inlined_call_operand.hbm [shape: f32[2,32], index: 6, kind: input, shape index: {}]   ;;  %s5049_s7 = inlined_call_operand.vmem [shape: f32[32,192], index: 7, kind: input, shape index: {}]   ;;  %s5050_s8 = inlined_call_operand.hbm [shape: f32[4,8,32], index: 8, kind: input, shape index: {}]   ;;  %s5051_s9 = inlined_call_operand.hbm [shape: f32[7,32], index: 9, kind: input, shape index: {}]   ;;  %s5052_s10 = inlined_call_operand.hbm [shape: f32[32,32], index: 10, kind: input, shape index: {}]   ;;  %s5053_s11 = inlined_call_operand.vmem [shape: f32[2,3,32], index: 11, kind: input, shape index: {}]   ;;  %s5054_s12 = inlined_call_operand.vmem [shape: f32[2,32,32], index: 12, kind: input, shape index: {}]   ;;  %s5055_s13 = inlined_call_operand.vmem [shape: f32[2,32,64], index: 13, kind: input, shape index: {}]   ;;  %s5056_s14 = inlined_call_operand.vmem [shape: f32[2,64,32], index: 14, kind: input, shape index: {}]   ;;  %s5057_s15 = inlined_call_operand.hbm [shape: f32[16,32], index: 15, kind: output, shape index: {}]  }
   0x1   :  { %21 = vsyncpa [#allocation6], 0 }
   0x2   :  { %22 = vsyncpa [#allocation9], 0 }
   0x3   :  { %23 = vsyncpa [#allocation12], 0 }
   0x4   :  { %24 = vsyncpa [#allocation15], 0 }
   0x5   :  { %25 = vsyncpa [#allocation4], 0  ;;  %s4159_s18 = smov [#allocation5]   ;;  %s3927_s22 = scalar_lea.hbm %s5044_s2, 32 }
   0x6   :  { %s46_s19 = sshll.u32 %s4159_s18, 4  ;;  %p3928_p0 = scmp.ne.s32.totalorder %s5044_s2, %s3927_s22  ;;  %s47_s19 = int_to_ptr.vmem [resolvable:$true] %s46_s19 }
   0x7   :  { %p3931_p1 = scmp.lt.u32.totalorder %s3927_s22, %s5044_s2 }
   0x9   :  { %p3933_p2 = pnand %p3931_p1, %p3928_p0 }
   0xb   :  { %3936 = shalt.err (!%p3933_p2)
}
   0xc   :  { %s3937_s27 = scalar_lea.vmem %s47_s19, 32  ;;  %p3942_p4 = scmp.lt.s32.totalorder %s47_s19, %s47_s19 }
   0xd   :  { %p3938_p3 = scmp.ne.s32.totalorder %s47_s19, %s3937_s27  ;;  %p3943_p5 = scmp.lt.s32.totalorder %s3937_s27, %s3937_s27 }
   0xf   :  { %p3944_p6 = por %p3943_p5, %p3942_p4 }
  0x11   :  { %p3945_p7 = pnand %p3944_p6, %p3938_p3 }
  0x13   :  { %3948 = shalt.err (!%p3945_p7)
}
  0x14   :  { %49 = dma.hbm_to_vmem [thread:$0]  %s5044_s2, 32, %s47_s19, [#allocation6]  }
  0x15   :  { %s4160_s30 = smov [#allocation8]   ;;  %s4161_s17 = smov [#allocation11]  }
  0x16   :  { %s65_s16 = sshll.u32 %s4160_s30, 4  ;;  %s88_s18 = sshll.u32 %s4161_s17, 4  ;;  %s66_s16 = int_to_ptr.vmem [resolvable:$true] %s65_s16  ;;  %s89_s18 = int_to_ptr.vmem [resolvable:$true] %s88_s18 }
  0x17   :  { %s3949_s22 = scalar_lea.hbm %s5046_s4, 256 }
  0x18   :  { %p3950_p8 = scmp.ne.s32.totalorder %s5046_s4, %s3949_s22  ;;  %p3953_p9 = scmp.lt.u32.totalorder %s3949_s22, %s5046_s4 }
  0x1a   :  { %p3955_p10 = pnand %p3953_p9, %p3950_p8 }
  0x1c   :  { %3958 = shalt.err (!%p3955_p10)
}
  0x1d   :  { %s3959_s2 = scalar_lea.vmem %s66_s16, 256  ;;  %p3964_p12 = scmp.lt.s32.totalorder %s66_s16, %s66_s16 }
  0x1e   :  { %p3960_p11 = scmp.ne.s32.totalorder %s66_s16, %s3959_s2  ;;  %p3965_p13 = scmp.lt.s32.totalorder %s3959_s2, %s3959_s2 }
  0x20   :  { %p3966_p0 = por %p3965_p13, %p3964_p12 }
  0x22   :  { %p3967_p1 = pnand %p3966_p0, %p3960_p11 }
  0x24   :  { %3970 = shalt.err (!%p3967_p1)
}
  0x25   :  { %s4162_s19 = smov 128   ;;  %s4163_s27 = smov 8  }
  0x26   :  { %71 = dma.hbm_to_vmem [thread:$0]  %s5046_s4, 256, %s66_s16, [#allocation9], %s4162_s19, %s4162_s19, %s4163_s27  }
  0x27   :  { %s3971_s20 = scalar_lea.hbm %s5048_s6, 32 }
  0x28   :  { %p3972_p2 = scmp.ne.s32.totalorder %s5048_s6, %s3971_s20  ;;  %p3975_p3 = scmp.lt.u32.totalorder %s3971_s20, %s5048_s6 }
  0x2a   :  { %p3977_p4 = pnand %p3975_p3, %p3972_p2 }
  0x2c   :  { %3980 = shalt.err (!%p3977_p4)
}
  0x2d   :  { %s3981_s25 = scalar_lea.vmem %s89_s18, 32  ;;  %p3986_p6 = scmp.lt.s32.totalorder %s89_s18, %s89_s18 }
  0x2e   :  { %p3982_p5 = scmp.ne.s32.totalorder %s89_s18, %s3981_s25  ;;  %p3987_p7 = scmp.lt.s32.totalorder %s3981_s25, %s3981_s25 }
  0x30   :  { %p3988_p8 = por %p3987_p7, %p3986_p6 }
  0x32   :  { %p3989_p9 = pnand %p3988_p8, %p3982_p5 }
  0x34   :  { %3992 = shalt.err (!%p3989_p9)
}
  0x35   :  { %91 = dma.hbm_to_vmem [thread:$0]  %s5048_s6, 32, %s89_s18, [#allocation12]  }
  0x36   :  { %s4164_s26 = smov [#allocation14]   ;;  %s4165_s28 = smov [#allocation2]  }
  0x37   :  { %s112_s2 = sshll.u32 %s4164_s26, 4  ;;  %s31_s29 = sshll.u32 %s4165_s28, 4  ;;  %s113_s2 = int_to_ptr.vmem [resolvable:$true] %s112_s2  ;;  %s32_s29 = int_to_ptr.vmem [resolvable:$true] %s31_s29 }
  0x38   :  { %s3993_s20 = scalar_lea.hbm %s5051_s9, 128 }
  0x39   :  { %p3994_p10 = scmp.ne.s32.totalorder %s5051_s9, %s3993_s20  ;;  %p3997_p11 = scmp.lt.u32.totalorder %s3993_s20, %s5051_s9 }
  0x3b   :  { %p3999_p12 = pnand %p3997_p11, %p3994_p10 }
  0x3d   :  { %4002 = shalt.err (!%p3999_p12)
}
  0x3e   :  { %s4003_s6 = scalar_lea.vmem %s113_s2, 128  ;;  %p4008_p0 = scmp.lt.s32.totalorder %s113_s2, %s113_s2 }
  0x3f   :  { %p4004_p13 = scmp.ne.s32.totalorder %s113_s2, %s4003_s6  ;;  %p4009_p1 = scmp.lt.s32.totalorder %s4003_s6, %s4003_s6 }
  0x41   :  { %p4010_p2 = por %p4009_p1, %p4008_p0 }
  0x43   :  { %p4011_p3 = pnand %p4010_p2, %p4004_p13 }
  0x45   :  { %4014 = shalt.err (!%p4011_p3)
}
  0x46   :  { %115 = dma.hbm_to_vmem [thread:$0]  %s5051_s9, 128, %s113_s2, [#allocation15]  }
  0x47   :  { %s4015_s26 = scalar_lea.hbm %s5042_s0, 256 }
  0x48   :  { %p4016_p4 = scmp.ne.s32.totalorder %s5042_s0, %s4015_s26  ;;  %p4019_p5 = scmp.lt.u32.totalorder %s4015_s26, %s5042_s0 }
  0x4a   :  { %p4021_p6 = pnand %p4019_p5, %p4016_p4 }
  0x4c   :  { %4024 = shalt.err (!%p4021_p6)
}
  0x4d   :  { %s4025_s21 = scalar_lea.vmem %s32_s29, 256  ;;  %p4030_p8 = scmp.lt.s32.totalorder %s32_s29, %s32_s29 }
  0x4e   :  { %p4026_p7 = scmp.ne.s32.totalorder %s32_s29, %s4025_s21  ;;  %p4031_p9 = scmp.lt.s32.totalorder %s4025_s21, %s4025_s21 }
  0x50   :  { %p4032_p10 = por %p4031_p9, %p4030_p8 }
  0x52   :  { %p4033_p11 = pnand %p4032_p10, %p4026_p7 }
  0x54   :  { %4036 = shalt.err (!%p4033_p11)
}
  0x55   :  { %37 = dma.hbm_to_vmem [thread:$0]  %s5042_s0, 256, %s32_s29, [#allocation3], %s4162_s19, %s4162_s19, %s4163_s27  }
  0x56   :  { %s4166_s22 = smov [#allocation7]   ;;  %s4167_s24 = smov [#allocation10]  }
  0x57   :  { %s56_s23 = sshll.u32 %s4166_s22, 4  ;;  %s78_s6 = sshll.u32 %s4167_s24, 4  ;;  %s57_s23 = int_to_ptr.vmem [resolvable:$true] %s56_s23  ;;  %s79_s6 = int_to_ptr.vmem [resolvable:$true] %s78_s6 }
  0x58   :  { %s4037_s4 = scalar_lea.hbm %s5045_s3, 32 }
  0x59   :  { %p4038_p12 = scmp.ne.s32.totalorder %s5045_s3, %s4037_s4  ;;  %p4041_p13 = scmp.lt.u32.totalorder %s4037_s4, %s5045_s3 }
  0x5b   :  { %p4043_p0 = pnand %p4041_p13, %p4038_p12 }
  0x5d   :  { %4046 = shalt.err (!%p4043_p0)
}
  0x5e   :  { %s4047_s0 = scalar_lea.vmem %s57_s23, 32  ;;  %p4052_p2 = scmp.lt.s32.totalorder %s57_s23, %s57_s23 }
  0x5f   :  { %p4048_p1 = scmp.ne.s32.totalorder %s57_s23, %s4047_s0  ;;  %p4053_p3 = scmp.lt.s32.totalorder %s4047_s0, %s4047_s0 }
  0x61   :  { %p4054_p4 = por %p4053_p3, %p4052_p2 }
  0x63   :  { %p4055_p5 = pnand %p4054_p4, %p4048_p1 }
  0x65   :  { %4058 = shalt.err (!%p4055_p5)
}
  0x66   :  { %59 = dma.hbm_to_vmem [thread:$0]  %s5045_s3, 32, %s57_s23, [#allocation6]  }
  0x67   :  { %s4059_s9 = scalar_lea.hbm %s5047_s5, 32 }
  0x68   :  { %p4060_p6 = scmp.ne.s32.totalorder %s5047_s5, %s4059_s9  ;;  %p4063_p7 = scmp.lt.u32.totalorder %s4059_s9, %s5047_s5 }
  0x6a   :  { %p4065_p8 = pnand %p4063_p7, %p4060_p6 }
  0x6c   :  { %4068 = shalt.err (!%p4065_p8)
}
  0x6d   :  { %s4069_s25 = scalar_lea.vmem %s79_s6, 32  ;;  %p4074_p10 = scmp.lt.s32.totalorder %s79_s6, %s79_s6 }
  0x6e   :  { %p4070_p9 = scmp.ne.s32.totalorder %s79_s6, %s4069_s25  ;;  %p4075_p11 = scmp.lt.s32.totalorder %s4069_s25, %s4069_s25 }
  0x70   :  { %p4076_p12 = por %p4075_p11, %p4074_p10 }
  0x72   :  { %p4077_p13 = pnand %p4076_p12, %p4070_p9 }
  0x74   :  { %4080 = shalt.err (!%p4077_p13)
}
  0x75   :  { %81 = dma.hbm_to_vmem [thread:$0]  %s5047_s5, 32, %s79_s6, [#allocation9]  }
  0x76   :  { %s4168_s4 = smov [#allocation13]   ;;  %s4169_s26 = smov [#allocation16]  }
  0x77   :  { %s99_s16 = sshll.u32 %s4168_s4, 4  ;;  %s121_s28 = sshll.u32 %s4169_s26, 4  ;;  %s100_s16 = int_to_ptr.vmem [resolvable:$true] %s99_s16  ;;  %s122_s28 = int_to_ptr.vmem [resolvable:$true] %s121_s28 }
  0x78   :  { %s4081_s29 = scalar_lea.hbm %s5050_s8, 512 }
  0x79   :  { %p4082_p0 = scmp.ne.s32.totalorder %s5050_s8, %s4081_s29  ;;  %p4085_p1 = scmp.lt.u32.totalorder %s4081_s29, %s5050_s8 }
  0x7b   :  { %p4087_p2 = pnand %p4085_p1, %p4082_p0 }
  0x7d   :  { %4090 = shalt.err (!%p4087_p2)
}
  0x7e   :  { %s4091_s5 = scalar_lea.vmem %s100_s16, 512  ;;  %p4096_p4 = scmp.lt.s32.totalorder %s100_s16, %s100_s16 }
  0x7f   :  { %p4092_p3 = scmp.ne.s32.totalorder %s100_s16, %s4091_s5  ;;  %p4097_p5 = scmp.lt.s32.totalorder %s4091_s5, %s4091_s5 }
  0x81   :  { %p4098_p6 = por %p4097_p5, %p4096_p4 }
  0x83   :  { %p4099_p7 = pnand %p4098_p6, %p4092_p3 }
  0x85   :  { %4102 = shalt.err (!%p4099_p7)
}
  0x86   :  { %105 = dma.hbm_to_vmem [thread:$0]  %s5050_s8, 512, %s100_s16, [#allocation12], %s4162_s19, %s4162_s19, %s4163_s27  }
  0x87   :  { %s4103_s18 = scalar_lea.hbm %s5052_s10, 512 }
  0x88   :  { %p4104_p8 = scmp.ne.s32.totalorder %s5052_s10, %s4103_s18  ;;  %p4107_p9 = scmp.lt.u32.totalorder %s4103_s18, %s5052_s10 }
  0x8a   :  { %p4109_p10 = pnand %p4107_p9, %p4104_p8 }
  0x8c   :  { %4112 = shalt.err (!%p4109_p10)
}
  0x8d   :  { %s4113_s26 = scalar_lea.vmem %s122_s28, 512  ;;  %p4118_p12 = scmp.lt.s32.totalorder %s122_s28, %s122_s28 }
  0x8e   :  { %p4114_p11 = scmp.ne.s32.totalorder %s122_s28, %s4113_s26  ;;  %p4119_p13 = scmp.lt.s32.totalorder %s4113_s26, %s4113_s26 }
  0x90   :  { %p4120_p0 = por %p4119_p13, %p4118_p12 }
  0x92   :  { %p4121_p1 = pnand %p4120_p0, %p4114_p11 }
  0x94   :  { %4124 = shalt.err (!%p4121_p1)
}
  0x95   :  { %127 = dma.hbm_to_vmem [thread:$0]  %s5052_s10, 512, %s122_s28, [#allocation15], %s4162_s19, %s4162_s19, %s4163_s27  }
  0x96   :  { %4147 = dma.done.wait [#allocation3], 256  }
  0x97   :  { %4148 = vsyncadd [#allocation3], 4294967040 }
  0x98   :  { %4149 = dma.done.wait [#allocation6], 64  }
  0x99   :  { %4150 = vsyncadd [#allocation6], 4294967232 }
  0x9a   :  { %4151 = dma.done.wait [#allocation9], 288  }
  0x9b   :  { %4152 = vsyncadd [#allocation9], 4294967008 }
  0x9c   :  { %4153 = dma.done.wait [#allocation12], 544  }
  0x9d   :  { %4154 = vsyncadd [#allocation12], 4294966752 }
  0x9e   :  { %4155 = dma.done.wait [#allocation15], 640  }
  0x9f   :  { %4156 = vsyncadd [#allocation15], 4294966656  ;;  %vm230_vm0 = vcmask 261120   ;;  %v4385_v0 = vld [vmem:[#allocation2] sm:$0xff]  ;;  %v4387_v1 = vld [vmem:[#allocation2 + $0x8] sm:$0xff]  ;;  %v168_v42 = vlaneseq  ;;  %vm349_vm1 = vcmask 523264  }
  0xa0   :  { %v231_v2 = vsel %vm230_vm0, %v4385_v0, 0.0  ;;  %v234_v3 = vsel %vm230_vm0, %v4387_v1, 0.0  ;;  %v206_v14 = vld [vmem:[%s5055_s13] sm:$0xff]  ;;  %v207_v15 = vld [vmem:[%s5055_s13 + $0x8] sm:$0xff]  ;;  %v208_v16 = vld [vmem:[%s5055_s13 + $0x10] sm:$0xff]  ;;  %vm4171_vm2 = vmmov 0  }
  0xa1   :  { %232 = vadd.xlane.f32.xlu0 %v231_v2  ;;  %v3762_v17 = vpack.c.bf16 %v207_v15, %v206_v14  ;;  %v209_v18 = vld [vmem:[%s5055_s13 + $0x18] sm:$0xff]  ;;  %v214_v20 = vld [vmem:[%s5056_s14] sm:$0xff]  ;;  %v215_v21 = vld [vmem:[%s5056_s14 + $0x8] sm:$0xff]  ;;  %v4435_v43 = vshrl.u32 %v168_v42, 7  ;;  %s4173_s4 = smov 88   ;;  %s4174_s26 = smov 120  }
  0xa2   :  { %v3766_v19 = vpack.c.bf16 %v209_v18, %v208_v16  ;;  %v216_v22 = vld [vmem:[%s5056_s14 + $0x10] sm:$0xff]  ;;  %v3770_v23 = vpack.c.bf16 %v215_v21, %v214_v20  ;;  %v217_v24 = vld [vmem:[%s5056_s14 + $0x18] sm:$0xff]  ;;  %v218_v26 = vld [vmem:[%s5056_s14 + $0x20] sm:$0xff]  ;;  %vm590_vm3 = vcmask 64512   ;;  %s4176_s10 = smov 80   ;;  %s4177_s28 = smov 112  }
  0xa3   :  { %3763 = vmatprep.subr.bf16.mxu0 %v3762_v17  ;;  %v3774_v25 = vpack.c.bf16 %v217_v24, %v216_v22  ;;  %v219_v27 = vld [vmem:[%s5056_s14 + $0x28] sm:$0xff]  ;;  %v220_v39 = vld [vmem:[%s5056_s14 + $0x30] sm:$0xff]  ;;  %v221_v40 = vld [vmem:[%s5056_s14 + $0x38] sm:$0xff]  ;;  %v4438_v44 = vsub.s32 0, %v4435_v43  ;;  %v4444_v53 = vsub.s32 1, %v4435_v43  ;;  %v4170_v22 = vmov 0.0  }
  0xa4   :  { %3765 = vmatpush3.bf16.msra.mxu0 %v3762_v17  ;;  %3771 = vmatprep.subr.bf16.mxu1 %v3770_v23  ;;  %v3778_v28 = vpack.c.bf16 %v219_v27, %v218_v26  ;;  %v3782_v41 = vpack.c.bf16 %v221_v40, %v220_v39  ;;  %v165_v45 = vld [vmem:[#allocation8] sm:$0xff]  ;;  %v461_v14 = vld [vmem:[%s5049_s7] sm:$0xff]  ;;  %v466_v17 = vld [vmem:[%s5049_s7 + $0x28] sm:$0xff]  ;;  %s4178_s30 = smov 56   ;;  %s4179_s0 = smov 72   ;;  %vm2624_vm6 = vcmp.lt.s32.totalorder %v4435_v43, 3 }
  0xa5   :  { %235 = vadd.xlane.f32.xlu0 %v234_v3  ;;  %3767 = vmatprep.subr.bf16.mxu0 %v3766_v19  ;;  %v261_v46 = vrot.slane %v165_v45, %v4438_v44  ;;  %v348_v54 = vrot.slane %v165_v45, %v4444_v53  ;;  %v463_v15 = vld [vmem:[%s5049_s7 + $0x10] sm:$0xff]  ;;  %v468_v18 = vld [vmem:[%s5049_s7 + $0x38] sm:$0xff]  ;;  %s4180_s29 = smov 104   ;;  %s4181_s17 = smov 48   ;;  %vm2647_vm7 = vcmp.lt.s32.totalorder %v4435_v43, 2  ;;  %vm2670_vm9 = vcmp.lt.s32.totalorder %v4435_v43, 1 }
  0xa6   :  { %3773 = vmatpush3.bf16.msra.mxu1 %v3770_v23  ;;  %v3788_v16 = vpack.c.bf16 %v463_v15, %v461_v14  ;;  %v3790_v20 = vpack.c.bf16 %v468_v18, %v466_v17  ;;  %v467_v21 = vld [vmem:[%s5049_s7 + $0x30] sm:$0xff]  ;;  %s4182_s20 = smov 40   ;;  %s4183_s21 = smov 32   ;;  %vm2693_vm11 = vcmp.lt.s32.totalorder %v4435_v43, 7  ;;  %vm2716_vm13 = vcmp.lt.s32.totalorder %v4435_v43, 6 }
  0xa7   :  { %3775 = vmatprep.subr.bf16.mxu1 %v3774_v25  ;;  %v4553_v14 = vld [vmem:[#allocation5] sm:$0x3]  ;;  %vm2739_vm15 = vcmp.lt.s32.totalorder %v4435_v43, 5 }
  0xa8   :  { %3769 = vmatpush3.bf16.msra.mxu0 %v3766_v19  ;;  %v465_v19 = vld [vmem:[%s5049_s7 + $0x20] sm:$0xff]  ;;  %v4557_v15 = vrot.slane %v4553_v14, %v4438_v44 }
  0xa9   :  { %v3792_v23 = vpack.c.bf16 %v467_v21, %v465_v19 }
  0xaa   :  { %3777 = vmatpush3.bf16.msra.mxu1 %v3774_v25 }
  0xab   :  { %3779 = vmatprep.subr.bf16.mxu1 %v3778_v28 }
  0xae   :  { %3781 = vmatpush3.bf16.msra.mxu1 %v3778_v28 }
  0xaf   :  { %3783 = vmatprep.subr.bf16.mxu1 %v3782_v41 }
  0xb2   :  { %3785 = vmatpush3.bf16.msra.mxu1 %v3782_v41 }
  0xb3   :  { %3589 = vmatprep.subr.mxu1 %v4170_v22 }
 0x12e   :  { %v233_v4 = vpop.xlane.xlu0 %232 }
 0x12f   :  { %v238_v5 = vmul.f32 0.03125, %v233_v4 }
 0x131   :  { %v240_v6 = vsub.f32 %v4385_v0, %v238_v5 }
 0x132   :  { %v236_v7 = vpop.xlane.xlu0 %235 }
 0x133   :  { %v239_v8 = vmul.f32 0.03125, %v236_v7  ;;  %v242_v9 = vmul.f32 %v240_v6, %v240_v6 }
 0x135   :  { %v241_v10 = vsub.f32 %v4387_v1, %v239_v8  ;;  %v244_v11 = vsel %vm230_vm0, %v242_v9, 0.0 }
 0x136   :  { %245 = vadd.xlane.f32.xlu1 %v244_v11  ;;  %v462_v11 = vld [vmem:[%s5049_s7 + $0x8] sm:$0xff] }
 0x137   :  { %v243_v12 = vmul.f32 %v241_v10, %v241_v10 }
 0x139   :  { %v247_v13 = vsel %vm230_vm0, %v243_v12, 0.0  ;;  %v464_v12 = vld [vmem:[%s5049_s7 + $0x18] sm:$0xff]  ;;  %s4172_s7 = smov 96  }
 0x13a   :  { %248 = vadd.xlane.f32.xlu1 %v247_v13  ;;  %v3786_v13 = vpack.c.bf16 %v464_v12, %v462_v11  ;;  %v4549_v11 = vld [vmem:[#allocation13 + $0x8] sm:$0xff] }
 0x13c   :  { %3787 = vmatprep.subr.bf16.mxu0 %v3786_v13 }
 0x1c3   :  { %v246_v29 = vpop.xlane.xlu1 %245 }
 0x1c4   :  { %v250_v30 = vmul.f32 0.03125, %v246_v29 }
 0x1c6   :  { %v252_v31 = vadd.f32 1e-12, %v250_v30 }
 0x1c7   :  { %v249_v32 = vpop.xlane.xlu1 %248 }
 0x1c8   :  { %3870 = vrsqrt.f32 %v252_v31  ;;  %v251_v33 = vmul.f32 0.03125, %v249_v32 }
 0x1ca   :  { %v253_v34 = vadd.f32 1e-12, %v251_v33 }
 0x1cc   :  { %3872 = vrsqrt.f32 %v253_v34  ;;  %v167_v34 = vld [vmem:[#allocation7] sm:$0x3] }
 0x1d2   :  { %v3871_v35 = vpop.eup %3870 }
 0x1d3   :  { %v256_v36 = vmul.f32 %v3871_v35, %v240_v6  ;;  %v473_v35 = vrot.slane %v167_v34, %v4438_v44 }
 0x1d5   :  { %3557 = vmatprep.mubr.msk.f32.mxu0 %vm230_vm0, %v256_v36  ;;  %v4497_v36 = vrot.slane %v167_v34, %v4444_v53 }
 0x1d6   :  { %v3873_v37 = vpop.eup %3872 }
 0x1d7   :  { %v257_v38 = vmul.f32 %v3873_v37, %v241_v10 }
 0x1d9   :  { %3558 = vmatmul.mubr.msk.f32.vlgmr.msra.gmra.mrb[0].mxu0 %vm230_vm0, %v257_v38 }
 0x1da   :  { %550 = vmatprep.mubr.f32.mxu0 %v4170_v22  ;;  %3789 = vmatpush1.bf16.msra.mxu0 %v3788_v16 }
 0x1db   :  { %3791 = vmatprep.subr.bf16.mxu0 %v3790_v20 }
 0x1de   :  { %3793 = vmatpush1.bf16.msra.mxu0 %v3792_v23 }
 0x1df   :  { %3579 = vmatprep.subr.mxu0 %v4170_v22 }
 0x2ac   :  { %v3559_v47 = vpop.f32.mrb[0].mxu0 }
 0x2ad   :  { %v340_v48 = vadd.f32 %v3559_v47, %v261_v46  ;;  %v334_v49 = vpop.f32.mrb[1].mxu0 }
 0x2ae   :  { %v335_v50 = vadd.f32 %v334_v49, %v261_v46  ;;  %v4528_v49 = vld [vmem:[%s5043_s1] sm:$0x3]  ;;  %s4175_s1 = smov 64  }
 0x2af   :  { %v344_v52 = vmax.f32 %v340_v48, 0.0 }
 0x2b0   :  { %v343_v51 = vmax.f32 %v335_v50, 0.0  ;;  %v4532_v50 = vrot.slane %v4528_v49, %v4438_v44 }
 0x2b2   :  { %3576 = vmatprep.mubr.msk.f32.mxu1 %vm349_vm1, %v343_v51 }
 0x2b3   :  { %3577 = vmatmul.mubr.msk.f32.vlgmr.msra.gmra.mrb[0].mxu1 %vm349_vm1, %v344_v52 }
 0x2b4   :  { %3591 = vmatprep.mubr.msk.f32.mxu1 %vm4171_vm2, %v4170_v22 }
 0x386   :  { %v3578_v55 = vpop.f32.mrb[0].mxu1 }
 0x387   :  { %v428_v56 = vadd.f32 %v3578_v55, %v348_v54  ;;  %v422_v57 = vpop.f32.mrb[1].mxu1 }
 0x388   :  { %v423_v58 = vadd.f32 %v422_v57, %v348_v54 }
 0x389   :  { %v432_v59 = vmul.f32 0.5, %v428_v56 }
 0x38a   :  { %v431_v60 = vmul.f32 0.5, %v423_v58 }
 0x38b   :  { %v4451_v62 = vadd.f32 %v432_v59, %v4387_v1 }
 0x38c   :  { %v4448_v61 = vadd.f32 %v431_v60, %v4385_v0 }
 0x38d   :  { %v438_v2 = vsel %vm230_vm0, %v4451_v62, 0.0 }
 0x38e   :  { %v435_v63 = vsel %vm230_vm0, %v4448_v61, 0.0 }
 0x38f   :  { %436 = vadd.xlane.f32.xlu0 %v435_v63 }
 0x393   :  { %439 = vadd.xlane.f32.xlu0 %v438_v2 }
 0x41c   :  { %v437_v3 = vpop.xlane.xlu0 %436 }
 0x41d   :  { %v441_v4 = vmul.f32 0.03125, %v437_v3 }
 0x41f   :  { %v443_v5 = vsub.f32 %v4448_v61, %v441_v4 }
 0x420   :  { %v440_v6 = vpop.xlane.xlu0 %439 }
 0x421   :  { %v442_v7 = vmul.f32 0.03125, %v440_v6  ;;  %v445_v8 = vmul.f32 %v443_v5, %v443_v5 }
 0x423   :  { %v444_v0 = vsub.f32 %v4451_v62, %v442_v7  ;;  %v447_v1 = vsel %vm230_vm0, %v445_v8, 0.0 }
 0x424   :  { %448 = vadd.xlane.f32.xlu1 %v447_v1 }
 0x425   :  { %v446_v9 = vmul.f32 %v444_v0, %v444_v0 }
 0x427   :  { %v450_v10 = vsel %vm230_vm0, %v446_v9, 0.0 }
 0x428   :  { %451 = vadd.xlane.f32.xlu1 %v450_v10 }
 0x4b1   :  { %v449_v24 = vpop.xlane.xlu1 %448 }
 0x4b2   :  { %v453_v25 = vmul.f32 0.03125, %v449_v24  ;;  %v4568_v24 = vld [vmem:[#allocation13] sm:$0xff] }
 0x4b4   :  { %v455_v26 = vadd.f32 1e-12, %v453_v25 }
 0x4b5   :  { %v452_v27 = vpop.xlane.xlu1 %451 }
 0x4b6   :  { %3874 = vrsqrt.f32 %v455_v26  ;;  %v454_v28 = vmul.f32 0.03125, %v452_v27 }
 0x4b8   :  { %v456_v29 = vadd.f32 1e-12, %v454_v28 }
 0x4ba   :  { %3876 = vrsqrt.f32 %v456_v29 }
 0x4c0   :  { %v3875_v30 = vpop.eup %3874 }
 0x4c1   :  { %v459_v31 = vmul.f32 %v3875_v30, %v443_v5 }
 0x4c3   :  { %3407 = vmatmul.mubr.msk.f32.vlgmr.msra.gmra.mrb[2].mxu0 %vm230_vm0, %v459_v31 }
 0x4c4   :  { %v3877_v32 = vpop.eup %3876  ;;  %556 = vmatprep.mubr.f32.mxu0 %v4170_v22 }
 0x4c5   :  { %v460_v33 = vmul.f32 %v3877_v32, %v444_v0 }
 0x4c7   :  { %3408 = vmatmul.mubr.msk.f32.gmra.mrb[4].mxu0 %vm230_vm0, %v460_v33 }
 0x4c8   :  { %3581 = vmatprep.mubr.msk.f32.mxu0 %vm4171_vm2, %v4170_v22 }
 0x596   :  { %v552_v37 = vpop.f32.mrb[2].mxu0 }
 0x597   :  { %v4499_v38 = vadd.f32 %v552_v37, %v473_v35  ;;  %v554_v39 = vpop.f32.mrb[3].mxu0 }
 0x598   :  { %v4502_v40 = vadd.f32 %v554_v39, %v4497_v36 }
 0x599   :  { %588 = vrot.lane.b32.xlu0 %v4499_v38, %s4172_s7  ;;  %765 = vrot.lane.b32.xlu1 %v4499_v38, %s4173_s4 }
 0x59a   :  { %v558_v41 = vpop.f32.mrb[4].mxu0 }
 0x59b   :  { %v4508_v42 = vadd.f32 %v558_v41, %v473_v35  ;;  %v4510_v45 = vpop.f32.mrb[5].mxu0 }
 0x59d   :  { %763 = vrot.lane.b32.xlu1 %v4499_v38, %s4174_s26 }
 0x60b   :  { %v766_v46 = vpop.permute.xlu1 %765  ;;  %v589_v47 = vpop.permute.xlu0 %588 }
 0x60c   :  { %3580 = vmatpush3.xpose.msk.msra.mxu0 %vm590_vm3, %v589_v47  ;;  %3590 = vmatpush3.xpose.msk.msra.mxu1 %vm590_vm3, %v766_v46 }
 0x60d   :  { %3584 = vmatprep.subr.mxu0 %v4170_v22  ;;  %3599 = vmatprep.subr.mxu1 %v4170_v22 }
 0x60f   :  { %v764_v48 = vpop.permute.xlu1 %763  ;;  %3582 = vmatmul.mubr.msk.f32.vlgmr.msra.gmra.mrb[6].mxu0 %vm590_vm3, %v4499_v38 }
 0x610   :  { %3592 = vmatmul.mubr.msk.f32.vlgmr.msra.gmra.mrb[2].mxu1 %vm590_vm3, %v764_v48  ;;  %3586 = vmatprep.mubr.msk.f32.mxu0 %vm4171_vm2, %v4170_v22 }
 0x611   :  { %3601 = vmatprep.mubr.msk.f32.mxu1 %vm4171_vm2, %v4170_v22  ;;  %3600 = vmatpush3.msra.mxu1 %v4549_v11 }
 0x612   :  { %3609 = vmatprep.subr.mxu1 %v4170_v22 }
 0x6e2   :  { %v661_v51 = vpop.f32.mrb[6].mxu0 }
 0x6e3   :  { %v665_v52 = vmul.f32 0.35355338, %v661_v51  ;;  %v3583_v54 = vpop.f32.mrb[7].mxu0  ;;  %v837_v55 = vpop.f32.mrb[2].mxu1 }
 0x6e4   :  { %v841_v56 = vmul.f32 0.35355338, %v837_v55  ;;  %v3593_v57 = vpop.f32.mrb[3].mxu1 }
 0x6e5   :  { %v670_v58 = vadd.f32 %v4532_v50, %v665_v52 }
 0x6e6   :  { %v842_v59 = vadd.f32 %v841_v56, %v4532_v50 }
 0x6e7   :  { %v671_v60 = vsel %vm590_vm3, %v670_v58, -inf }
 0x6e8   :  { %672 = vmax.xlane.f32.xlu1 %v671_v60  ;;  %v843_v63 = vsel %vm590_vm3, %v842_v59, -inf }
 0x6e9   :  { %844 = vmax.xlane.f32.xlu0 %v843_v63 }
 0x6f9   :  { %687 = vrot.lane.b32.xlu1 %v4499_v38, %s4175_s1 }
 0x6fd   :  { %1079 = vrot.lane.b32.xlu1 %v4499_v38, %s4176_s10 }
 0x701   :  { %1077 = vrot.lane.b32.xlu1 %v4499_v38, %s4177_s28 }
 0x775   :  { %v673_v2 = vpop.xlane.xlu1 %672 }
 0x776   :  { %v674_v3 = vsub.f32 %v670_v58, %v673_v2  ;;  %v845_v4 = vpop.xlane.xlu0 %844 }
 0x777   :  { %v846_v5 = vsub.f32 %v842_v59, %v845_v4 }
 0x778   :  { %v675_v6 = vmul.f32 1.442695, %v674_v3  ;;  %v4604_v3 = vld [vmem:[#allocation13 + $0x10] sm:$0xff] }
 0x779   :  { %v847_v7 = vmul.f32 1.442695, %v846_v5  ;;  %v688_v8 = vpop.permute.xlu1 %687 }
 0x77a   :  { %3878 = vpow2.f32 %v675_v6  ;;  %3585 = vmatpush3.msra.mxu0 %v688_v8 }
 0x77b   :  { %3594 = vmatprep.subr.mxu0 %v4170_v22  ;;  %3880 = vpow2.f32 %v847_v7 }
 0x77d   :  { %v1080_v27 = vpop.permute.xlu1 %1079 }
 0x781   :  { %v1078_v30 = vpop.permute.xlu1 %1077 }
 0x784   :  { %v3879_v0 = vpop.eup %3878 }
 0x785   :  { %v677_v1 = vsel %vm590_vm3, %v3879_v0, 0.0  ;;  %v3881_v9 = vpop.eup %3880 }
 0x786   :  { %678 = vadd.xlane.f32.xlu0 %v677_v1  ;;  %v849_v10 = vsel %vm590_vm3, %v3881_v9, 0.0 }
 0x78a   :  { %850 = vadd.xlane.f32.xlu0 %v849_v10 }
 0x7a0   :  { %855 = vrot.lane.b32.xlu0 %v4499_v38, %s4178_s30 }
 0x813   :  { %v679_v12 = vpop.xlane.xlu0 %678 }
 0x814   :  { %3882 = vrcp.f32 %v679_v12 }
 0x817   :  { %v851_v13 = vpop.xlane.xlu0 %850 }
 0x818   :  { %3884 = vrcp.f32 %v851_v13 }
 0x81b   :  { %v856_v21 = vpop.permute.xlu0 %855 }
 0x81e   :  { %v3883_v16 = vpop.eup %3882 }
 0x81f   :  { %v681_v17 = vmul.f32 %v3883_v16, %v3879_v0 }
 0x821   :  { %v686_v18 = vmul.f32 %v4557_v15, %v681_v17 }
 0x822   :  { %v3885_v19 = vpop.eup %3884 }
 0x823   :  { %v853_v20 = vmul.f32 %v3885_v19, %v3881_v9  ;;  %3587 = vmatmul.mubr.msk.f32.vlgmr.msra.gmra.mrb[8].mxu0 %vm590_vm3, %v686_v18 }
 0x824   :  { %3595 = vmatpush3.msra.mxu0 %v856_v21  ;;  %3596 = vmatprep.mubr.msk.f32.mxu0 %vm4171_vm2, %v4170_v22 }
 0x825   :  { %v854_v23 = vmul.f32 %v853_v20, %v4557_v15  ;;  %3604 = vmatprep.subr.mxu0 %v4170_v22 }
 0x827   :  { %3597 = vmatmul.mubr.msk.f32.vlgmr.msra.gmra.mrb[10].mxu0 %vm590_vm3, %v854_v23 }
 0x828   :  { %3606 = vmatprep.mubr.msk.f32.mxu0 %vm4171_vm2, %v4170_v22  ;;  %3605 = vmatpush3.msra.mxu0 %v4568_v24 }
 0x829   :  { %3614 = vmatprep.subr.mxu0 %v4170_v22 }
 0x8f6   :  { %v759_v25 = vpop.f32.mrb[8].mxu0 }
 0x8f7   :  { %v3588_v26 = vpop.f32.mrb[9].mxu0  ;;  %3607 = vmatmul.mubr.msk.f32.vlgmr.msra.gmra.mrb[12].mxu0 %vm590_vm3, %v759_v25 }
 0x8f8   :  { %3616 = vmatprep.mubr.msk.f32.mxu0 %vm4171_vm2, %v4170_v22 }
 0x8fa   :  { %v927_v28 = vpop.f32.mrb[10].mxu0 }
 0x8fb   :  { %v3598_v29 = vpop.f32.mrb[11].mxu0  ;;  %3602 = vmatmul.mubr.msk.f32.vlgmr.msra.gmra.mrb[4].mxu1 %vm590_vm3, %v927_v28 }
 0x8fc   :  { %3610 = vmatpush3.xpose.msk.msra.mxu1 %vm590_vm3, %v1080_v27  ;;  %3611 = vmatprep.mubr.msk.f32.mxu1 %vm4171_vm2, %v4170_v22  ;;  %v4641_v27 = vld [vmem:[#allocation13 + $0x18] sm:$0xff] }
 0x8fd   :  { %3619 = vmatprep.subr.mxu1 %v4170_v22 }
 0x8ff   :  { %3612 = vmatmul.mubr.msk.f32.vlgmr.msra.gmra.mrb[6].mxu1 %vm590_vm3, %v1078_v30 }
 0x900   :  { %3621 = vmatprep.mubr.msk.f32.mxu1 %vm4171_vm2, %v4170_v22  ;;  %3620 = vmatpush3.msra.mxu1 %v4604_v3 }
 0x901   :  { %3629 = vmatprep.subr.mxu1 %v4170_v22 }
 0x9ca   :  { %v1073_v31 = vpop.f32.mrb[12].mxu0 }
 0x9cb   :  { %v3608_v32 = vpop.f32.mrb[13].mxu0 }
 0x9ce   :  { %v1000_v33 = vpop.f32.mrb[4].mxu1 }
 0x9cf   :  { %v4583_v34 = vadd.f32 %v1073_v31, %v1000_v33  ;;  %v3603_v35 = vpop.f32.mrb[5].mxu1 }
 0x9d2   :  { %v1151_v37 = vpop.f32.mrb[6].mxu1 }
 0x9d3   :  { %v1155_v39 = vmul.f32 0.35355338, %v1151_v37  ;;  %v3613_v41 = vpop.f32.mrb[7].mxu1 }
 0x9d5   :  { %v1156_v46 = vadd.f32 %v1155_v39, %v4532_v50 }
 0x9d7   :  { %v1157_v47 = vsel %vm590_vm3, %v1156_v46, -inf }
 0x9d8   :  { %1158 = vmax.xlane.f32.xlu1 %v1157_v47 }
 0x9e9   :  { %1321 = vrot.lane.b32.xlu1 %v4499_v38, %s4179_s0 }
 0x9ed   :  { %1319 = vrot.lane.b32.xlu1 %v4499_v38, %s4180_s29 }
 0xa65   :  { %v1159_v48 = vpop.xlane.xlu1 %1158 }
 0xa66   :  { %v1160_v51 = vsub.f32 %v1156_v46, %v1159_v48 }
 0xa68   :  { %v1161_v52 = vmul.f32 1.442695, %v1160_v51 }
 0xa69   :  { %v1322_v60 = vpop.permute.xlu1 %1321 }
 0xa6a   :  { %3886 = vpow2.f32 %v1161_v52 }
 0xa6d   :  { %v1320_v2 = vpop.permute.xlu1 %1319 }
 0xa74   :  { %v3887_v54 = vpop.eup %3886 }
 0xa75   :  { %v1163_v55 = vsel %vm590_vm3, %v3887_v54, 0.0 }
 0xa76   :  { %1164 = vadd.xlane.f32.xlu0 %v1163_v55 }
 0xa8c   :  { %1169 = vrot.lane.b32.xlu0 %v4499_v38, %s4181_s17 }
 0xb03   :  { %v1165_v56 = vpop.xlane.xlu0 %1164 }
 0xb04   :  { %3888 = vrcp.f32 %v1165_v56 }
 0xb07   :  { %v1170_v57 = vpop.permute.xlu0 %1169 }
 0xb08   :  { %3615 = vmatpush3.msra.mxu0 %v1170_v57 }
 0xb09   :  { %3624 = vmatprep.subr.mxu0 %v4170_v22 }
 0xb0e   :  { %v3889_v58 = vpop.eup %3888 }
 0xb0f   :  { %v1167_v59 = vmul.f32 %v3889_v58, %v3887_v54 }
 0xb11   :  { %v1168_v63 = vmul.f32 %v1167_v59, %v4557_v15 }
 0xb13   :  { %3617 = vmatmul.mubr.msk.f32.vlgmr.msra.gmra.mrb[14].mxu0 %vm590_vm3, %v1168_v63 }
 0xb14   :  { %3625 = vmatpush3.xpose.msk.msra.mxu0 %vm590_vm3, %v1322_v60  ;;  %3626 = vmatprep.mubr.msk.f32.mxu0 %vm4171_vm2, %v4170_v22 }
 0xb15   :  { %3634 = vmatprep.subr.mxu0 %v4170_v22 }
 0xb17   :  { %3627 = vmatmul.mubr.msk.f32.vlgmr.msra.gmra.mrb[16].mxu0 %vm590_vm3, %v1320_v2 }
 0xb18   :  { %3636 = vmatprep.mubr.msk.f32.mxu0 %vm4171_vm2, %v4170_v22  ;;  %3635 = vmatpush3.msra.mxu0 %v4641_v27 }
 0xb19   :  { %3644 = vmatprep.subr.mxu0 %v4170_v22 }
 0xbe6   :  { %v1241_v4 = vpop.f32.mrb[14].mxu0 }
 0xbe7   :  { %v3618_v5 = vpop.f32.mrb[15].mxu0  ;;  %3622 = vmatmul.mubr.msk.f32.vlgmr.msra.gmra.mrb[8].mxu1 %vm590_vm3, %v1241_v4 }
 0xbe8   :  { %3631 = vmatprep.mubr.msk.f32.mxu1 %vm4171_vm2, %v4170_v22 }
 0xbea   :  { %v1393_v6 = vpop.f32.mrb[16].mxu0 }
 0xbeb   :  { %v1397_v7 = vmul.f32 0.35355338, %v1393_v6  ;;  %v3628_v8 = vpop.f32.mrb[17].mxu0  ;;  %v4671_v6 = vrot.slane %v4553_v14, %v4444_v53 }
 0xbed   :  { %v1398_v0 = vadd.f32 %v1397_v7, %v4532_v50 }
 0xbef   :  { %v1399_v1 = vsel %vm590_vm3, %v1398_v0, -inf }
 0xbf0   :  { %1400 = vmax.xlane.f32.xlu0 %v1399_v1 }
 0xc06   :  { %1411 = vrot.lane.b32.xlu0 %v4499_v38, %s4182_s20 }
 0xc0a   :  { %1738 = vrot.lane.b32.xlu0 %v4508_v42, %s4173_s4 }
 0xc7d   :  { %v1401_v9 = vpop.xlane.xlu0 %1400 }
 0xc7e   :  { %v1402_v10 = vsub.f32 %v1398_v0, %v1401_v9 }
 0xc80   :  { %v1403_v12 = vmul.f32 1.442695, %v1402_v10 }
 0xc81   :  { %v1412_v13 = vpop.permute.xlu0 %1411 }
 0xc82   :  { %3890 = vpow2.f32 %v1403_v12  ;;  %3630 = vmatpush3.msra.mxu1 %v1412_v13 }
 0xc83   :  { %3639 = vmatprep.subr.mxu1 %v4170_v22 }
 0xc85   :  { %v1739_v26 = vpop.permute.xlu0 %1738 }
 0xc8c   :  { %v3891_v16 = vpop.eup %3890 }
 0xc8d   :  { %v1405_v50 = vsel %vm590_vm3, %v3891_v16, 0.0 }
 0xc8e   :  { %1406 = vadd.xlane.f32.xlu1 %v1405_v50 }
 0xc9f   :  { %1562 = vrot.lane.b32.xlu1 %v4508_v42, %s4172_s7 }
 0xca3   :  { %1736 = vrot.lane.b32.xlu1 %v4508_v42, %s4174_s26 }
 0xcba   :  { %v1314_v38 = vpop.f32.mrb[8].mxu1 }
 0xcbb   :  { %v1318_v17 = vadd.f32 %v1314_v38, %v4583_v34  ;;  %v3623_v18 = vpop.f32.mrb[9].mxu1 }
 0xd1b   :  { %v1407_v19 = vpop.xlane.xlu1 %1406 }
 0xd1c   :  { %3892 = vrcp.f32 %v1407_v19 }
 0xd1f   :  { %v1563_v25 = vpop.permute.xlu1 %1562 }
 0xd26   :  { %v3893_v20 = vpop.eup %3892 }
 0xd27   :  { %v1409_v21 = vmul.f32 %v3893_v20, %v3891_v16 }
 0xd29   :  { %v1410_v23 = vmul.f32 %v1409_v21, %v4557_v15  ;;  %v1737_v15 = vpop.permute.xlu1 %1736 }
 0xd2b   :  { %3632 = vmatmul.mubr.msk.f32.vlgmr.msra.gmra.mrb[10].mxu1 %vm590_vm3, %v1410_v23 }
 0xd2c   :  { %3640 = vmatpush3.xpose.msk.msra.mxu1 %vm590_vm3, %v1563_v25  ;;  %3641 = vmatprep.mubr.msk.f32.mxu1 %vm4171_vm2, %v4170_v22 }
 0xd2d   :  { %3649 = vmatprep.subr.mxu1 %v4170_v22 }
 0xd2f   :  { %3642 = vmatmul.mubr.msk.f32.vlgmr.msra.gmra.mrb[12].mxu1 %vm590_vm3, %v4508_v42 }
 0xd30   :  { %3650 = vmatpush3.xpose.msk.msra.mxu1 %vm590_vm3, %v1739_v26  ;;  %3651 = vmatprep.mubr.msk.f32.mxu1 %vm4171_vm2, %v4170_v22 }
 0xd31   :  { %3659 = vmatprep.subr.mxu1 %v4170_v22 }
 0xd33   :  { %3652 = vmatmul.mubr.msk.f32.vlgmr.msra.gmra.mrb[14].mxu1 %vm590_vm3, %v1737_v15 }
 0xd34   :  { %3660 = vmatpush3.msra.mxu1 %v4549_v11  ;;  %3661 = vmatprep.mubr.msk.f32.mxu1 %vm4171_vm2, %v4170_v22  ;;  %v4650_v11 = vrot.slane %v4528_v49, %v4444_v53 }
 0xd35   :  { %3669 = vmatprep.subr.mxu1 %v4170_v22 }
 0xdfe   :  { %v1483_v28 = vpop.f32.mrb[10].mxu1 }
 0xdff   :  { %v3633_v29 = vpop.f32.mrb[11].mxu1  ;;  %3637 = vmatmul.mubr.msk.f32.vlgmr.msra.gmra.mrb[18].mxu0 %vm590_vm3, %v1483_v28 }
 0xe00   :  { %3646 = vmatprep.mubr.msk.f32.mxu0 %vm4171_vm2, %v4170_v22 }
 0xe02   :  { %v1634_v30 = vpop.f32.mrb[12].mxu1 }
 0xe03   :  { %v1638_v31 = vmul.f32 0.35355338, %v1634_v30  ;;  %v3643_v32 = vpop.f32.mrb[13].mxu1 }
 0xe05   :  { %v1643_v33 = vadd.f32 %v4650_v11, %v1638_v31 }
 0xe06   :  { %v1810_v34 = vpop.f32.mrb[14].mxu1 }
 0xe07   :  { %v1814_v35 = vmul.f32 0.35355338, %v1810_v34  ;;  %v3653_v37 = vpop.f32.mrb[15].mxu1  ;;  %v1644_v39 = vsel %vm590_vm3, %v1643_v33, -inf }
 0xe08   :  { %1645 = vmax.xlane.f32.xlu0 %v1644_v39  ;;  %v563_v37 = vmul.f32 %v4502_v40, %v4502_v40 }
 0xe09   :  { %v1815_v41 = vadd.f32 %v1814_v35, %v4650_v11 }
 0xe0a   :  { %v565_v39 = vmul.f32 %v563_v37, %v4502_v40 }
 0xe0b   :  { %v1816_v46 = vsel %vm590_vm3, %v1815_v41, -inf }
 0xe0c   :  { %1817 = vmax.xlane.f32.xlu1 %v1816_v46 }
 0xe1d   :  { %1828 = vrot.lane.b32.xlu1 %v4508_v42, %s4178_s30 }
 0xe21   :  { %2052 = vrot.lane.b32.xlu1 %v4508_v42, %s4176_s10 }
 0xe25   :  { %2050 = vrot.lane.b32.xlu1 %v4508_v42, %s4177_s28 }
 0xe95   :  { %v1646_v49 = vpop.xlane.xlu0 %1645 }
 0xe96   :  { %v1647_v47 = vsub.f32 %v1643_v33, %v1646_v49  ;;  %v567_v49 = vmul.f32 0.044715, %v565_v39 }
 0xe98   :  { %v1648_v48 = vmul.f32 1.442695, %v1647_v47 }
 0xe99   :  { %v1818_v51 = vpop.xlane.xlu1 %1817 }
 0xe9a   :  { %3894 = vpow2.f32 %v1648_v48  ;;  %v1819_v52 = vsub.f32 %v1815_v41, %v1818_v51  ;;  %v569_v51 = vadd.f32 %v567_v49, %v4502_v40 }
 0xe9c   :  { %v1820_v54 = vmul.f32 1.442695, %v1819_v52 }
 0xe9d   :  { %v1829_v9 = vpop.permute.xlu1 %1828 }
 0xe9e   :  { %3896 = vpow2.f32 %v1820_v54  ;;  %v571_v54 = vmul.f32 0.7978846, %v569_v51 }
 0xea1   :  { %v2053_v16 = vpop.permute.xlu1 %2052 }
 0xea4   :  { %v3895_v55 = vpop.eup %3894 }
 0xea5   :  { %v1650_v56 = vsel %vm590_vm3, %v3895_v55, 0.0 }
 0xea6   :  { %1651 = vadd.xlane.f32.xlu0 %v1650_v56 }
 0xea8   :  { %v3897_v57 = vpop.eup %3896 }
 0xea9   :  { %v1822_v58 = vsel %vm590_vm3, %v3897_v57, 0.0 }
 0xeaa   :  { %1823 = vadd.xlane.f32.xlu0 %v1822_v58 }
 0xec0   :  { %1660 = vrot.lane.b32.xlu0 %v4508_v42, %s4175_s1 }
 0xed2   :  { %v1556_v59 = vpop.f32.mrb[18].mxu0 }
 0xed3   :  { %v4666_v60 = vadd.f32 %v1556_v59, %v1318_v17  ;;  %v3638_v63 = vpop.f32.mrb[19].mxu0  ;;  %v561_v17 = vadd.f32 %v4510_v45, %v4497_v36 }
 0xed5   :  { %v564_v19 = vmul.f32 %v561_v17, %v561_v17 }
 0xed7   :  { %v566_v23 = vmul.f32 %v564_v19, %v561_v17 }
 0xed9   :  { %v568_v28 = vmul.f32 0.044715, %v566_v23 }
 0xedb   :  { %v570_v31 = vadd.f32 %v568_v28, %v561_v17 }
 0xedd   :  { %v572_v33 = vmul.f32 0.7978846, %v570_v31 }
 0xf33   :  { %v1652_v2 = vpop.xlane.xlu0 %1651 }
 0xf34   :  { %3898 = vrcp.f32 %v1652_v2 }
 0xf37   :  { %v1824_v4 = vpop.xlane.xlu0 %1823 }
 0xf38   :  { %3900 = vrcp.f32 %v1824_v4 }
 0xf39   :  { %3902 = vtanh.f32 %v572_v33  ;;  %v2540_v33 = vld [vmem:[#allocation10] sm:$0x3] }
 0xf3a   :  { %v2596_v37 = vrot.slane %v2540_v33, %v4444_v53 }
 0xf3b   :  { %v1661_v5 = vpop.permute.xlu0 %1660 }
 0xf3c   :  { %3645 = vmatpush3.msra.mxu0 %v1661_v5 }
 0xf3d   :  { %3654 = vmatprep.subr.mxu0 %v4170_v22 }
 0xf3e   :  { %v3899_v7 = vpop.eup %3898 }
 0xf3f   :  { %v1654_v8 = vmul.f32 %v3899_v7, %v3895_v55 }
 0xf41   :  { %v1659_v0 = vmul.f32 %v4671_v6, %v1654_v8 }
 0xf42   :  { %v3901_v1 = vpop.eup %3900 }
 0xf43   :  { %v1826_v10 = vmul.f32 %v3901_v1, %v3897_v57  ;;  %3647 = vmatmul.mubr.msk.f32.vlgmr.msra.gmra.mrb[20].mxu0 %vm590_vm3, %v1659_v0  ;;  %v3903_v36 = vpop.eup %3902 }
 0xf44   :  { %3655 = vmatpush3.msra.mxu0 %v1829_v9  ;;  %3656 = vmatprep.mubr.msk.f32.mxu0 %vm4171_vm2, %v4170_v22  ;;  %v576_v45 = vadd.f32 1.0, %v3903_v36  ;;  %v2586_v36 = vrot.slane %v2540_v33, %v4438_v44 }
 0xf45   :  { %v1827_v12 = vmul.f32 %v1826_v10, %v4671_v6  ;;  %3664 = vmatprep.subr.mxu0 %v4170_v22 }
 0xf46   :  { %v578_v34 = vmul.f32 0.5, %v576_v45  ;;  %v2606_v45 = vsub.s32 3, %v4435_v43 }
 0xf47   :  { %3657 = vmatmul.mubr.msk.f32.vlgmr.msra.gmra.mrb[22].mxu0 %vm590_vm3, %v1827_v12 }
 0xf48   :  { %3665 = vmatpush3.msra.mxu0 %v4568_v24  ;;  %3666 = vmatprep.mubr.msk.f32.mxu0 %vm4171_vm2, %v4170_v22  ;;  %v2051_v24 = vpop.permute.xlu1 %2050  ;;  %v4707_v35 = vmul.f32 %v578_v34, %v561_v17  ;;  %v4756_v34 = vld [vmem:[#allocation14] sm:$0x7f] }
 0xf49   :  { %3674 = vmatprep.subr.mxu0 %v4170_v22  ;;  %v2607_v39 = vrot.slane %v4756_v34, %v2606_v45 }
0x1016   :  { %v1732_v14 = vpop.f32.mrb[20].mxu0 }
0x1017   :  { %v3648_v13 = vpop.f32.mrb[21].mxu0  ;;  %3667 = vmatmul.mubr.msk.f32.vlgmr.msra.gmra.mrb[24].mxu0 %vm590_vm3, %v1732_v14 }
0x1018   :  { %3676 = vmatprep.mubr.msk.f32.mxu0 %vm4171_vm2, %v4170_v22 }
0x101a   :  { %v1900_v50 = vpop.f32.mrb[22].mxu0 }
0x101b   :  { %v3658_v38 = vpop.f32.mrb[23].mxu0  ;;  %3662 = vmatmul.mubr.msk.f32.vlgmr.msra.gmra.mrb[16].mxu1 %vm590_vm3, %v1900_v50 }
0x101c   :  { %3670 = vmatpush3.xpose.msk.msra.mxu1 %vm590_vm3, %v2053_v16  ;;  %3671 = vmatprep.mubr.msk.f32.mxu1 %vm4171_vm2, %v4170_v22 }
0x101d   :  { %3679 = vmatprep.subr.mxu1 %v4170_v22 }
0x101f   :  { %3672 = vmatmul.mubr.msk.f32.vlgmr.msra.gmra.mrb[18].mxu1 %vm590_vm3, %v2051_v24 }
0x1020   :  { %3680 = vmatpush3.msra.mxu1 %v4604_v3  ;;  %3681 = vmatprep.mubr.msk.f32.mxu1 %vm4171_vm2, %v4170_v22 }
0x1021   :  { %3689 = vmatprep.subr.mxu1 %v4170_v22 }
0x10ea   :  { %v2046_v18 = vpop.f32.mrb[24].mxu0 }
0x10eb   :  { %v3668_v20 = vpop.f32.mrb[25].mxu0 }
0x10ee   :  { %v1973_v21 = vpop.f32.mrb[16].mxu1 }
0x10ef   :  { %v4699_v25 = vadd.f32 %v2046_v18, %v1973_v21  ;;  %v3663_v26 = vpop.f32.mrb[17].mxu1 }
0x10f2   :  { %v2124_v15 = vpop.f32.mrb[18].mxu1 }
0x10f3   :  { %v2128_v29 = vmul.f32 0.35355338, %v2124_v15  ;;  %v3673_v3 = vpop.f32.mrb[19].mxu1 }
0x10f5   :  { %v2129_v30 = vadd.f32 %v2128_v29, %v4650_v11 }
0x10f7   :  { %v2130_v32 = vsel %vm590_vm3, %v2129_v30, -inf }
0x10f8   :  { %2131 = vmax.xlane.f32.xlu0 %v2130_v32 }
0x110e   :  { %2142 = vrot.lane.b32.xlu0 %v4508_v42, %s4181_s17 }
0x1112   :  { %2292 = vrot.lane.b32.xlu0 %v4508_v42, %s4180_s29 }
0x1116   :  { %2545 = vrot.lane.b32.xlu0 %v4707_v35, %s4172_s7 }
0x1185   :  { %v2132_v41 = vpop.xlane.xlu0 %2131 }
0x1186   :  { %v2133_v46 = vsub.f32 %v2129_v30, %v2132_v41 }
0x1188   :  { %v2134_v47 = vmul.f32 1.442695, %v2133_v46 }
0x1189   :  { %v2143_v48 = vpop.permute.xlu0 %2142 }
0x118a   :  { %3904 = vpow2.f32 %v2134_v47  ;;  %3675 = vmatpush3.msra.mxu0 %v2143_v48 }
0x118b   :  { %3684 = vmatprep.subr.mxu0 %v4170_v22  ;;  %3906 = vtanh.f32 %v571_v54 }
0x118d   :  { %v2293_v52 = vpop.permute.xlu0 %2292 }
0x1191   :  { %v2546_v55 = vpop.permute.xlu0 %2545 }
0x1192   :  { %v2552_v56 = vsel %vm230_vm0, %v2546_v55, 0.0 }
0x1193   :  { %2553 = vadd.xlane.f32.xlu0 %v2552_v56 }
0x1194   :  { %v3905_v57 = vpop.eup %3904 }
0x1195   :  { %v2136_v58 = vsel %vm590_vm3, %v3905_v57, 0.0  ;;  %v3907_v59 = vpop.eup %3906 }
0x1196   :  { %2137 = vadd.xlane.f32.xlu1 %v2136_v58  ;;  %v575_v63 = vadd.f32 1.0, %v3907_v59 }
0x1198   :  { %v577_v2 = vmul.f32 0.5, %v575_v63 }
0x119a   :  { %v4721_v4 = vmul.f32 %v577_v2, %v4502_v40 }
0x11a7   :  { %2294 = vrot.lane.b32.xlu1 %v4508_v42, %s4179_s0 }
0x11ab   :  { %2543 = vrot.lane.b32.xlu1 %v4721_v4, %s4172_s7 }
0x1220   :  { %v2554_v10 = vpop.xlane.xlu0 %2553 }
0x1221   :  { %v2556_v14 = vmul.f32 0.03125, %v2554_v10 }
0x1223   :  { %v2138_v5 = vpop.xlane.xlu1 %2137  ;;  %v4734_v40 = vsub.f32 %v4707_v35, %v2556_v14  ;;  %v176_v14 = vadd.s32 4294967294, %v4435_v43 }
0x1224   :  { %3908 = vrcp.f32 %v2138_v5 }
0x1225   :  { %v2560_v13 = vmul.f32 %v4734_v40, %v4734_v40  ;;  %vm177_vm5 = vcmp.ge.s32.totalorder %v176_v14, 0 }
0x1227   :  { %v2295_v7 = vpop.permute.xlu1 %2294 }
0x122b   :  { %v2544_v8 = vpop.permute.xlu1 %2543 }
0x122c   :  { %v2549_v0 = vsel %vm230_vm0, %v2544_v8, 0.0 }
0x122d   :  { %2550 = vadd.xlane.f32.xlu1 %v2549_v0 }
0x122e   :  { %v3909_v1 = vpop.eup %3908 }
0x122f   :  { %v2140_v9 = vmul.f32 %v3909_v1, %v3905_v57 }
0x1231   :  { %v2141_v12 = vmul.f32 %v2140_v9, %v4671_v6 }
0x1233   :  { %3677 = vmatmul.mubr.msk.f32.vlgmr.msra.gmra.mrb[26].mxu0 %vm590_vm3, %v2141_v12  ;;  %v170_v12 = vadd.s32 4294967293, %v4435_v43 }
0x1234   :  { %3685 = vmatpush3.xpose.msk.msra.mxu0 %vm590_vm3, %v2295_v7  ;;  %3686 = vmatprep.mubr.msk.f32.mxu0 %vm4171_vm2, %v4170_v22 }
0x1235   :  { %3694 = vmatprep.subr.mxu0 %v4170_v22  ;;  %vm171_vm4 = vcmp.ge.s32.totalorder %v170_v12, 0 }
0x1237   :  { %3687 = vmatmul.mubr.msk.f32.vlgmr.msra.gmra.mrb[28].mxu0 %vm590_vm3, %v2293_v52 }
0x1238   :  { %3695 = vmatpush3.msra.mxu0 %v4641_v27  ;;  %3696 = vmatprep.mubr.msk.f32.mxu0 %vm4171_vm2, %v4170_v22 }
0x123e   :  { %2565 = vrot.lane.b32.xlu1 %v2560_v13, %s4172_s7  ;;  %v182_v13 = vadd.s32 4294967295, %v4435_v43 }
0x1240   :  { %vm183_vm8 = vcmp.ge.s32.totalorder %v182_v13, 0 }
0x1242   :  { %2384 = vrot.lane.b32.xlu1 %v4508_v42, %s4182_s20 }
0x12ba   :  { %v2551_v16 = vpop.xlane.xlu1 %2550 }
0x12bb   :  { %v2555_v42 = vmul.f32 0.03125, %v2551_v16 }
0x12bd   :  { %v2557_v23 = vsub.f32 %v4721_v4, %v2555_v42 }
0x12be   :  { %v2566_v50 = vpop.permute.xlu1 %2565 }
0x12bf   :  { %v2559_v26 = vmul.f32 %v2557_v23, %v2557_v23  ;;  %v2572_v31 = vsel %vm230_vm0, %v2566_v50, 0.0  ;;  %v3397_v50 = vsel %vm171_vm4, 1.0, %v4170_v22 }
0x12c2   :  { %v2385_v24 = vpop.permute.xlu1 %2384 }
0x1306   :  { %v2214_v38 = vpop.f32.mrb[26].mxu0 }
0x1307   :  { %v3678_v17 = vpop.f32.mrb[27].mxu0  ;;  %3682 = vmatmul.mubr.msk.f32.vlgmr.msra.gmra.mrb[20].mxu1 %vm590_vm3, %v2214_v38 }
0x1308   :  { %3690 = vmatpush3.msra.mxu1 %v2385_v24  ;;  %3691 = vmatprep.mubr.msk.f32.mxu1 %vm4171_vm2, %v4170_v22 }
0x130a   :  { %v2366_v27 = vpop.f32.mrb[28].mxu0 }
0x130b   :  { %v2370_v18 = vmul.f32 0.35355338, %v2366_v27  ;;  %v3688_v19 = vpop.f32.mrb[29].mxu0  ;;  %v2632_v27 = vrot.slane %v4756_v34, %v4438_v44 }
0x130d   :  { %v2371_v20 = vadd.f32 %v2370_v18, %v4650_v11  ;;  %v3398_v18 = vsel %vm177_vm5, 1.0, %v4170_v22 }
0x130f   :  { %v2372_v21 = vsel %vm590_vm3, %v2371_v20, -inf }
0x1310   :  { %2373 = vmax.xlane.f32.xlu0 %v2372_v21 }
0x1326   :  { %2563 = vrot.lane.b32.xlu0 %v2559_v26, %s4172_s7 }
0x139d   :  { %v2374_v15 = vpop.xlane.xlu0 %2373 }
0x139e   :  { %v2375_v28 = vsub.f32 %v2371_v20, %v2374_v15 }
0x13a0   :  { %v2376_v29 = vmul.f32 1.442695, %v2375_v28  ;;  %v188_v28 = vadd.s32 1, %v4435_v43 }
0x13a1   :  { %v2564_v3 = vpop.permute.xlu0 %2563 }
0x13a2   :  { %3910 = vpow2.f32 %v2376_v29  ;;  %v2569_v30 = vsel %vm230_vm0, %v2564_v3, 0.0  ;;  %v4800_v29 = vsub.s32 2, %v4435_v43  ;;  %v2655_v3 = vrot.slane %v4756_v34, %v4444_v53 }
0x13a3   :  { %2570 = vadd.xlane.f32.xlu0 %v2569_v30  ;;  %vm190_vm10 = vcmp.lt.s32.totalorder %v188_v28, 8 }
0x13a7   :  { %2573 = vadd.xlane.f32.xlu0 %v2572_v31 }
0x13ac   :  { %v3911_v11 = vpop.eup %3910 }
0x13ad   :  { %v2378_v32 = vsel %vm590_vm3, %v3911_v11, 0.0 }
0x13ae   :  { %2379 = vadd.xlane.f32.xlu1 %v2378_v32 }
0x13bd   :  { %2588 = vrot.lane.b32.xlu0 %v2586_v36, %s4183_s21  ;;  %v4807_v36 = vsel %vm183_vm8, 1.0, %v4170_v22 }
0x13bf   :  { %2598 = vrot.lane.b32.xlu1 %v2596_v37, %s4183_s21 }
0x13c1   :  { %2609 = vrot.lane.b32.xlu0 %v2607_v39, %s4183_s21 }
0x13da   :  { %v2287_v41 = vpop.f32.mrb[20].mxu1 }
0x13db   :  { %v4766_v46 = vadd.f32 %v2287_v41, %v4699_v25  ;;  %v3683_v49 = vpop.f32.mrb[21].mxu1 }
0x13dc   :  { %v2700_v49 = vsub.s32 4, %v4435_v43 }
0x1430   :  { %v2571_v47 = vpop.xlane.xlu0 %2570 }
0x1431   :  { %v2575_v48 = vmul.f32 0.03125, %v2571_v47  ;;  %v194_v47 = vadd.s32 2, %v4435_v43 }
0x1433   :  { %v2577_v51 = vadd.f32 1e-12, %v2575_v48  ;;  %v2678_v48 = vrot.slane %v4756_v34, %v4800_v29  ;;  %vm196_vm12 = vcmp.lt.s32.totalorder %v194_v47, 8 }
0x1434   :  { %v2574_v52 = vpop.xlane.xlu0 %2573  ;;  %v3401_v13 = vsel %vm196_vm12, 1.0, %v4170_v22 }
0x1435   :  { %3912 = vrsqrt.f32 %v2577_v51  ;;  %v2576_v54 = vmul.f32 0.03125, %v2574_v52  ;;  %v200_v52 = vadd.s32 3, %v4435_v43 }
0x1437   :  { %v2578_v55 = vadd.f32 1e-12, %v2576_v54  ;;  %vm202_vm14 = vcmp.lt.s32.totalorder %v200_v52, 8 }
0x1438   :  { %v2589_v58 = vpop.permute.xlu0 %2588 }
0x1439   :  { %3914 = vrsqrt.f32 %v2578_v55 }
0x143b   :  { %v2380_v56 = vpop.xlane.xlu1 %2379 }
0x143c   :  { %3916 = vrcp.f32 %v2380_v56 }
0x143f   :  { %v3913_v57 = vpop.eup %3912  ;;  %v2599_v63 = vpop.permute.xlu1 %2598 }
0x1440   :  { %v2581_v59 = vmul.f32 %v3913_v57, %v2557_v23 }
0x1442   :  { %v2591_v2 = vmul.f32 %v2589_v58, %v2581_v59 }
0x1443   :  { %v3915_v5 = vpop.eup %3914 }
0x1444   :  { %v2582_v25 = vmul.f32 %v3915_v5, %v4734_v40  ;;  %v4769_v7 = vadd.f32 %v2599_v63, %v2591_v2  ;;  %v2701_v5 = vrot.slane %v4756_v34, %v2700_v49 }
0x1446   :  { %v3917_v8 = vpop.eup %3916  ;;  %v2592_v0 = vmul.f32 %v2589_v58, %v2582_v25  ;;  %2616 = vrot.lane.b32.xlu1 %v4769_v7, %s4172_s7  ;;  %v4826_v58 = vsel %vm190_vm10, 1.0, %v4170_v22  ;;  %v2723_v25 = vsub.s32 5, %v4435_v43 }
0x1447   :  { %v2382_v1 = vmul.f32 %v3917_v8, %v3911_v11 }
0x1448   :  { %v4773_v9 = vadd.f32 %v2599_v63, %v2592_v0 }
0x1449   :  { %v2383_v10 = vmul.f32 %v2382_v1, %v4671_v6 }
0x144a   :  { %2618 = vrot.lane.b32.xlu1 %v4773_v9, %s4172_s7 }
0x144b   :  { %3692 = vmatmul.mubr.msk.f32.vlgmr.msra.gmra.mrb[22].mxu1 %vm590_vm3, %v2383_v10 }
0x14b8   :  { %v4781_v40 = vpop.permute.xlu1 %2616 }
0x14b9   :  { %v2622_v6 = vrot.slane %v4781_v40, 5  ;;  %v2645_v24 = vrot.slane %v4781_v40, 6  ;;  %v2668_v30 = vrot.slane %v4781_v40, 7  ;;  %v2691_v51 = vrot.slane %v4781_v40, 1 }
0x14ba   :  { %v2714_v8 = vrot.slane %v4781_v40, 2 }
0x14bc   :  { %v4784_v16 = vpop.permute.xlu1 %2618 }
0x14bd   :  { %v2623_v38 = vrot.slane %v4784_v16, 5  ;;  %v2646_v17 = vrot.slane %v4784_v16, 6  ;;  %v2669_v19 = vrot.slane %v4784_v16, 7  ;;  %v2692_v41 = vrot.slane %v4784_v16, 1 }
0x14be   :  { %v2715_v2 = vrot.slane %v4784_v16, 2  ;;  %v2738_v0 = vrot.slane %v4784_v16, 3  ;;  %v2724_v16 = vrot.slane %v4756_v34, %v2723_v25 }
0x14bf   :  { %v2626_v20 = vsel %vm2624_vm6, %v2623_v38, %v2622_v6  ;;  %v2625_v21 = vsel %vm2624_vm6, %v2622_v6, %v2623_v38  ;;  %v2649_v42 = vsel %vm2647_vm7, %v2646_v17, %v2645_v24  ;;  %v2648_v23 = vsel %vm2647_vm7, %v2645_v24, %v2646_v17 }
0x14c0   :  { %v2627_v26 = vmul.f32 %v3397_v50, %v2626_v20  ;;  %v2628_v15 = vmul.f32 %v3397_v50, %v2625_v21  ;;  %v2650_v32 = vmul.f32 %v3398_v18, %v2649_v42  ;;  %v2651_v33 = vmul.f32 %v3398_v18, %v2648_v23  ;;  %v2780_v23 = vld [vmem:[#allocation16] sm:$0xff] }
0x14c1   :  { %v2672_v37 = vsel %vm2670_vm9, %v2669_v19, %v2668_v30  ;;  %v2671_v39 = vsel %vm2670_vm9, %v2668_v30, %v2669_v19  ;;  %v2694_v59 = vsel %vm2693_vm11, %v2691_v51, %v2692_v41  ;;  %v2695_v63 = vsel %vm2693_vm11, %v2692_v41, %v2691_v51 }
0x14c2   :  { %v2633_v31 = vmul.f32 %v2632_v27, %v2627_v26  ;;  %v2634_v11 = vmul.f32 %v2632_v27, %v2628_v15  ;;  %v2656_v54 = vmul.f32 %v2655_v3, %v2650_v32  ;;  %v2657_v55 = vmul.f32 %v2655_v3, %v2651_v33  ;;  %v2781_v26 = vld [vmem:[#allocation16 + $0x8] sm:$0xff]  ;;  %v2782_v15 = vld [vmem:[#allocation16 + $0x10] sm:$0xff] }
0x14c3   :  { %v2673_v56 = vmul.f32 %v4807_v36, %v2672_v37  ;;  %v2674_v57 = vmul.f32 %v4807_v36, %v2671_v39  ;;  %v2696_v12 = vmul.f32 %v4826_v58, %v2694_v59  ;;  %v2697_v14 = vmul.f32 %v4826_v58, %v2695_v63 }
0x14c4   :  { %2637 = vrot.lane.b32.xlu1 %v2633_v31, %s4183_s21  ;;  %2639 = vrot.lane.b32.xlu0 %v2634_v11, %s4183_s21  ;;  %v2717_v50 = vsel %vm2716_vm13, %v2714_v8, %v2715_v2  ;;  %v2718_v6 = vsel %vm2716_vm13, %v2715_v2, %v2714_v8  ;;  %v2737_v38 = vrot.slane %v4781_v40, 3  ;;  %v3402_v24 = vsel %vm202_vm14, 1.0, %v4170_v22  ;;  %v2783_v11 = vld [vmem:[#allocation16 + $0x18] sm:$0xff] }
0x14c5   :  { %v2679_v1 = vmul.f32 %v2678_v48, %v2673_v56  ;;  %v2680_v10 = vmul.f32 %v2678_v48, %v2674_v57  ;;  %v2746_v27 = vsub.s32 6, %v4435_v43  ;;  %v2702_v18 = vmul.f32 %v2701_v5, %v2696_v12  ;;  %v2610_v48 = vpop.permute.xlu0 %2609 }
0x14c6   :  { %v2740_v17 = vsel %vm2739_vm15, %v2737_v38, %v2738_v0  ;;  %v2703_v19 = vmul.f32 %v2701_v5, %v2697_v14  ;;  %v2719_v20 = vmul.f32 %v3401_v13, %v2717_v50  ;;  %v2720_v21 = vmul.f32 %v3401_v13, %v2718_v6 }
0x14c7   :  { %v2741_v40 = vsel %vm2739_vm15, %v2738_v0, %v2737_v38  ;;  %v2742_v42 = vmul.f32 %v3402_v24, %v2740_v17  ;;  %v2747_v22 = vrot.slane %v4756_v34, %v2746_v27  ;;  %v3794_v31 = vpack.c.bf16 %v2781_v26, %v2780_v23  ;;  %v4867_v34 = vld [vmem:[#allocation8] sm:$0xff] }
0x14c8   :  { %2660 = vrot.lane.b32.xlu1 %v2656_v54, %s4183_s21  ;;  %2662 = vrot.lane.b32.xlu0 %v2657_v55, %s4183_s21  ;;  %v2725_v28 = vmul.f32 %v2724_v16, %v2719_v20  ;;  %v2726_v3 = vmul.f32 %v2724_v16, %v2720_v21  ;;  %v2743_v30 = vmul.f32 %v3402_v24, %v2741_v40 }
0x14c9   :  { %v3798_v32 = vpack.c.bf16 %v2783_v11, %v2782_v15  ;;  %3795 = vmatprep.subr.bf16.mxu1 %v3794_v31  ;;  %v2748_v33 = vmul.f32 %v2747_v22, %v2742_v42  ;;  %v2763_v39 = vrot.slane %v4867_v34, %v2606_v45  ;;  %v2612_v59 = vmul.f32 %v2610_v48, %v4769_v7 }
0x14ca   :  { %v2749_v37 = vmul.f32 %v2747_v22, %v2743_v30  ;;  %3797 = vmatpush3.bf16.msra.mxu1 %v3794_v31  ;;  %v2613_v63 = vmul.f32 %v2610_v48, %v4773_v9  ;;  %v2537_v23 = vrot.slane %v4867_v34, %v4800_v29  ;;  %v2869_v30 = vld [vmem:[%s5053_s11] sm:$0x7] }
0x14cb   :  { %3799 = vmatprep.subr.bf16.mxu1 %v3798_v32 }
0x14cc   :  { %2683 = vrot.lane.b32.xlu1 %v2679_v1, %s4183_s21  ;;  %2685 = vrot.lane.b32.xlu0 %v2680_v10, %s4183_s21  ;;  %v2538_v15 = vadd.f32 %v2537_v23, %v4666_v60 }
0x14ce   :  { %3801 = vmatpush3.bf16.msra.mxu1 %v3798_v32  ;;  %v2885_v31 = vrot.slane %v2538_v15, 7 }
0x14d0   :  { %2706 = vrot.lane.b32.xlu1 %v2702_v18, %s4183_s21  ;;  %2708 = vrot.lane.b32.xlu0 %v2703_v19, %s4183_s21 }
0x14d4   :  { %2729 = vrot.lane.b32.xlu1 %v2725_v28, %s4183_s21  ;;  %2731 = vrot.lane.b32.xlu0 %v2726_v3, %s4183_s21 }
0x14d8   :  { %2752 = vrot.lane.b32.xlu1 %v2748_v33, %s4183_s21  ;;  %2754 = vrot.lane.b32.xlu0 %v2749_v37, %s4183_s21  ;;  %v2882_v33 = vrot.slane %v2869_v30, %v4444_v53  ;;  %v2908_v37 = vrot.slane %v2869_v30, %v4800_v29 }
0x14dc   :  { %2765 = vrot.lane.b32.xlu1 %v2763_v39, %s4183_s21  ;;  %v2894_v39 = vrot.slane %v2869_v30, %v4438_v44 }
0x151e   :  { %v2456_v41 = vpop.f32.mrb[22].mxu1 }
0x151f   :  { %v3693_v47 = vpop.f32.mrb[23].mxu1  ;;  %3697 = vmatmul.mubr.msk.f32.vlgmr.msra.gmra.mrb[30].mxu0 %vm590_vm3, %v2456_v41 }
0x1536   :  { %v2638_v51 = vpop.permute.xlu1 %2637  ;;  %v2640_v52 = vpop.permute.xlu0 %2639 }
0x1537   :  { %v2643_v5 = vadd.f32 %v2638_v51, %v2612_v59  ;;  %v2644_v8 = vadd.f32 %v2640_v52, %v2613_v63  ;;  %v2916_v63 = vrot.slane %v4867_v34, %v2723_v25  ;;  %v2877_v25 = vld [vmem:[%s5054_s12 + $0x30] sm:$0xff] }
0x153a   :  { %v2661_v54 = vpop.permute.xlu1 %2660  ;;  %v2663_v55 = vpop.permute.xlu0 %2662 }
0x153b   :  { %v2666_v0 = vadd.f32 %v2661_v54, %v2643_v5  ;;  %v2667_v1 = vadd.f32 %v2663_v55, %v2644_v8  ;;  %v2883_v55 = vmul.f32 %v2882_v33, %v2538_v15 }
0x153e   :  { %v2684_v56 = vpop.permute.xlu1 %2683  ;;  %v2686_v57 = vpop.permute.xlu0 %2685 }
0x153f   :  { %v2689_v14 = vadd.f32 %v2684_v56, %v2666_v0  ;;  %v2690_v13 = vadd.f32 %v2686_v57, %v2667_v1 }
0x1542   :  { %v2707_v2 = vpop.permute.xlu1 %2706  ;;  %v2709_v45 = vpop.permute.xlu0 %2708 }
0x1543   :  { %v2712_v50 = vadd.f32 %v2707_v2, %v2689_v14  ;;  %v2713_v6 = vadd.f32 %v2709_v45, %v2690_v13 }
0x1546   :  { %v2730_v10 = vpop.permute.xlu1 %2729  ;;  %v2732_v12 = vpop.permute.xlu0 %2731 }
0x1547   :  { %v2735_v24 = vadd.f32 %v2730_v10, %v2712_v50  ;;  %v2736_v17 = vadd.f32 %v2732_v12, %v2713_v6  ;;  %v2875_v50 = vld [vmem:[%s5054_s12 + $0x20] sm:$0xff]  ;;  %v2876_v6 = vld [vmem:[%s5054_s12 + $0x28] sm:$0xff] }
0x154a   :  { %v2753_v38 = vpop.permute.xlu1 %2752  ;;  %v2755_v16 = vpop.permute.xlu0 %2754 }
0x154b   :  { %v2758_v18 = vadd.f32 %v2753_v38, %v2735_v24  ;;  %v2759_v7 = vadd.f32 %v2755_v16, %v2736_v17  ;;  %v3802_v38 = vpack.c.bf16 %v2876_v6, %v2875_v50  ;;  %v2878_v16 = vld [vmem:[%s5054_s12 + $0x38] sm:$0xff]  ;;  %v2871_v17 = vld [vmem:[%s5054_s12] sm:$0xff] }
0x154c   :  { %v3806_v24 = vpack.c.bf16 %v2878_v16, %v2877_v25 }
0x154d   :  { %3803 = vmatprep.subr.bf16.mxu0 %v3802_v38 }
0x154e   :  { %v2766_v19 = vpop.permute.xlu1 %2765  ;;  %3805 = vmatpush3.bf16.msra.mxu0 %v3802_v38 }
0x154f   :  { %v2768_v9 = vadd.f32 %v2766_v19, %v2758_v18  ;;  %v2769_v20 = vadd.f32 %v2766_v19, %v2759_v7  ;;  %3807 = vmatprep.subr.bf16.mxu0 %v3806_v24  ;;  %v2872_v18 = vld [vmem:[%s5054_s12 + $0x8] sm:$0xff]  ;;  %v2787_v19 = vrot.slane %v4867_v34, %v2700_v49 }
0x1550   :  { %v3810_v7 = vpack.c.bf16 %v2872_v18, %v2871_v17  ;;  %v210_v17 = vld [vmem:[%s5055_s13 + $0x20] sm:$0xff]  ;;  %v211_v18 = vld [vmem:[%s5055_s13 + $0x28] sm:$0xff] }
0x1551   :  { %2772 = vrot.lane.b32.xlu0 %v2768_v9, %s4172_s7  ;;  %2774 = vrot.lane.b32.xlu1 %v2769_v20, %s4172_s7 }
0x1552   :  { %3809 = vmatpush3.bf16.msra.mxu0 %v3806_v24 }
0x1553   :  { %3811 = vmatprep.subr.bf16.mxu0 %v3810_v7 }
0x15c3   :  { %v2775_v21 = vpop.permute.xlu1 %2774  ;;  %v2773_v40 = vpop.permute.xlu0 %2772 }
0x15c4   :  { %v2779_v42 = vmul.f32 %v2775_v21, %v4707_v35  ;;  %v2778_v22 = vmul.f32 %v2773_v40, %v4721_v4  ;;  %v2899_v4 = vrot.slane %v2538_v15, 1  ;;  %v2870_v40 = vld [vmem:[%s5053_s11 + $0x4] sm:$0x7] }
0x15c5   :  { %v2934_v30 = vrot.slane %v2870_v40, %v4438_v44 }
0x15c6   :  { %3707 = vmatprep.mubr.msk.f32.mxu1 %vm230_vm0, %v2778_v22 }
0x15c7   :  { %3708 = vmatmul.mubr.msk.f32.vlgmr.msra.gmra.mrb[24].mxu1 %vm230_vm0, %v2779_v42 }
0x15f2   :  { %v2529_v26 = vpop.f32.mrb[30].mxu0 }
0x15f3   :  { %v2533_v28 = vadd.f32 %v2529_v26, %v4766_v46  ;;  %v3698_v3 = vpop.f32.mrb[31].mxu0 }
0x15f4   :  { %v2948_v3 = vrot.slane %v2870_v40, %v4800_v29 }
0x15f5   :  { %v2539_v35 = vadd.f32 %v2537_v23, %v2533_v28  ;;  %v2922_v28 = vrot.slane %v2870_v40, %v4444_v53  ;;  %v223_v40 = vld [vmem:[%s5056_s14 + $0x48] sm:$0xff] }
0x15f7   :  { %v2886_v11 = vrot.slane %v2539_v35, 7  ;;  %v2900_v32 = vrot.slane %v2539_v35, 1  ;;  %v2884_v56 = vmul.f32 %v2882_v33, %v2539_v35 }
0x15f9   :  { %v2887_v60 = vsel %vm2670_vm9, %v2885_v31, %v2886_v11  ;;  %v2888_v46 = vsel %vm2670_vm9, %v2886_v11, %v2885_v31  ;;  %v2901_v41 = vsel %vm2693_vm11, %v2899_v4, %v2900_v32  ;;  %v2902_v47 = vsel %vm2693_vm11, %v2900_v32, %v2899_v4 }
0x15fa   :  { %v2889_v48 = vmul.f32 %v4807_v36, %v2888_v46  ;;  %v2890_v51 = vmul.f32 %v4807_v36, %v2887_v60  ;;  %v2904_v52 = vmul.f32 %v4826_v58, %v2902_v47  ;;  %v2903_v54 = vmul.f32 %v4826_v58, %v2901_v41 }
0x15fb   :  { %v2956_v41 = vrot.slane %v4867_v34, %v2746_v27  ;;  %v3127_v27 = vsub.s32 7, %v4435_v43 }
0x15fc   :  { %v2896_v57 = vmul.f32 %v2894_v39, %v2890_v51  ;;  %v2895_v59 = vmul.f32 %v2894_v39, %v2889_v48  ;;  %v2910_v45 = vmul.f32 %v2908_v37, %v2904_v52  ;;  %v2909_v8 = vmul.f32 %v2908_v37, %v2903_v54 }
0x15fe   :  { %v2898_v2 = vadd.f32 %v2896_v57, %v2884_v56  ;;  %v2897_v5 = vadd.f32 %v2895_v59, %v2883_v55  ;;  %v2874_v57 = vld [vmem:[%s5054_s12 + $0x18] sm:$0xff] }
0x1600   :  { %v2912_v0 = vadd.f32 %v2910_v45, %v2898_v2  ;;  %v2911_v1 = vadd.f32 %v2909_v8, %v2897_v5  ;;  %v3128_v45 = vrot.slane %v4867_v34, %v3127_v27 }
0x1602   :  { %v2918_v10 = vadd.f32 %v2916_v63, %v2912_v0  ;;  %v2917_v12 = vadd.f32 %v2916_v63, %v2911_v1 }
0x1604   :  { %v2960_v14 = vadd.f32 %v2918_v10, %v2539_v35  ;;  %v2959_v13 = vadd.f32 %v2917_v12, %v2538_v15 }
0x169a   :  { %v3709_v9 = vpop.f32.mrb[24].mxu1 }
0x169b   :  { %v2866_v20 = vadd.f32 %v3709_v9, %v2787_v19  ;;  %v2860_v21 = vpop.f32.mrb[25].mxu1  ;;  %v213_v9 = vld [vmem:[%s5055_s13 + $0x38] sm:$0xff] }
0x169c   :  { %v2861_v42 = vadd.f32 %v2860_v21, %v2787_v19  ;;  %v3818_v19 = vpack.c.bf16 %v211_v18, %v210_v17  ;;  %v222_v21 = vld [vmem:[%s5056_s14 + $0x40] sm:$0xff] }
0x169d   :  { %v2926_v22 = vrot.slane %v2866_v20, 7  ;;  %v2940_v23 = vrot.slane %v2866_v20, 1  ;;  %v2924_v37 = vmul.f32 %v2922_v28, %v2866_v20  ;;  %v3335_v18 = vld [vmem:[#allocation11] sm:$0x3] }
0x169e   :  { %v2925_v26 = vrot.slane %v2861_v42, 7  ;;  %v2939_v15 = vrot.slane %v2861_v42, 1  ;;  %v2923_v39 = vmul.f32 %v2922_v28, %v2861_v42  ;;  %3819 = vmatprep.subr.bf16.mxu1 %v3818_v19 }
0x169f   :  { %3821 = vmatpush3.bf16.msra.mxu1 %v3818_v19 }
0x16a0   :  { %v2927_v49 = vsel %vm2670_vm9, %v2925_v26, %v2926_v22  ;;  %v2928_v35 = vsel %vm2670_vm9, %v2926_v22, %v2925_v26  ;;  %v2941_v31 = vsel %vm2693_vm11, %v2939_v15, %v2940_v23  ;;  %v2942_v4 = vsel %vm2693_vm11, %v2940_v23, %v2939_v15 }
0x16a1   :  { %v2929_v11 = vmul.f32 %v4807_v36, %v2928_v35  ;;  %v2930_v32 = vmul.f32 %v4807_v36, %v2927_v49  ;;  %v2943_v29 = vmul.f32 %v4826_v58, %v2941_v31  ;;  %v2944_v33 = vmul.f32 %v4826_v58, %v2942_v4  ;;  %v2873_v58 = vld [vmem:[%s5054_s12 + $0x10] sm:$0xff]  ;;  %v225_v31 = vld [vmem:[%s5056_s14 + $0x58] sm:$0xff] }
0x16a2   :  { %v3814_v2 = vpack.c.bf16 %v2874_v57, %v2873_v58  ;;  %v224_v35 = vld [vmem:[%s5056_s14 + $0x50] sm:$0xff] }
0x16a3   :  { %v2935_v60 = vmul.f32 %v2934_v30, %v2929_v11  ;;  %v2936_v46 = vmul.f32 %v2934_v30, %v2930_v32  ;;  %v2950_v48 = vmul.f32 %v2948_v3, %v2944_v33  ;;  %v2949_v51 = vmul.f32 %v2948_v3, %v2943_v29  ;;  %v226_v29 = vld [vmem:[%s5056_s14 + $0x60] sm:$0xff]  ;;  %v227_v33 = vld [vmem:[%s5056_s14 + $0x68] sm:$0xff] }
0x16a4   :  { %v3830_v32 = vpack.c.bf16 %v225_v31, %v224_v35 }
0x16a5   :  { %v2937_v47 = vadd.f32 %v2935_v60, %v2923_v39  ;;  %v2938_v52 = vadd.f32 %v2936_v46, %v2924_v37  ;;  %v3834_v37 = vpack.c.bf16 %v227_v33, %v226_v29  ;;  %v228_v39 = vld [vmem:[%s5056_s14 + $0x70] sm:$0xff]  ;;  %v229_v60 = vld [vmem:[%s5056_s14 + $0x78] sm:$0xff]  ;;  %s4184_s14 = smov [#allocation17]  }
0x16a6   :  { %v3838_v46 = vpack.c.bf16 %v229_v60, %v228_v39  ;;  %s3381_s10 = sshll.u32 %s4184_s14, 4  ;;  %s3382_s10 = int_to_ptr.vmem [resolvable:$true] %s3381_s10 }
0x16a7   :  { %v2951_v54 = vadd.f32 %v2949_v51, %v2937_v47  ;;  %v2952_v55 = vadd.f32 %v2950_v48, %v2938_v52  ;;  %s4125_s28 = scalar_lea.vmem %s3382_s10, 256  ;;  %p4130_p3 = scmp.lt.s32.totalorder %s3382_s10, %s3382_s10 }
0x16a8   :  { %p4126_p2 = scmp.ne.s32.totalorder %s3382_s10, %s4125_s28  ;;  %p4131_p4 = scmp.lt.s32.totalorder %s4125_s28, %s4125_s28 }
0x16a9   :  { %v2957_v56 = vadd.f32 %v2956_v41, %v2951_v54  ;;  %v2958_v36 = vadd.f32 %v2956_v41, %v2952_v55  ;;  %v166_v41 = vld [vmem:[#allocation8 + $0x8] sm:$0xff] }
0x16aa   :  { %v3162_v47 = vrot.slane %v166_v41, %v4438_v44  ;;  %p4132_p5 = por %p4131_p4, %p4130_p3 }
0x16ab   :  { %v2961_v59 = vadd.f32 %v2957_v56, %v2861_v42  ;;  %v2962_v63 = vadd.f32 %v2958_v36, %v2866_v20  ;;  %v3826_v42 = vpack.c.bf16 %v223_v40, %v222_v21  ;;  %v3249_v36 = vrot.slane %v166_v41, %v4444_v53 }
0x16ac   :  { %v3371_v21 = vrot.slane %v3335_v18, %v4444_v53  ;;  %p4133_p6 = pnand %p4132_p5, %p4126_p2 }
0x16ad   :  { %3718 = vmatprep.mubr.msk.f32.mxu0 %vm230_vm0, %v2961_v59 }
0x16ae   :  { %3719 = vmatmul.mubr.msk.f32.vlgmr.msra.gmra.mrb[32].mxu0 %vm230_vm0, %v2962_v63 }
0x16af   :  { %3813 = vmatpush3.bf16.msra.mxu0 %v3810_v7  ;;  %3729 = vmatprep.mubr.msk.f32.mxu0 %vm230_vm0, %v2959_v13  ;;  %v212_v7 = vld [vmem:[%s5055_s13 + $0x30] sm:$0xff] }
0x16b0   :  { %3815 = vmatprep.subr.bf16.mxu0 %v3814_v2  ;;  %v3822_v20 = vpack.c.bf16 %v213_v9, %v212_v7  ;;  %v3365_v7 = vrot.slane %v3335_v18, %v4438_v44 }
0x16b2   :  { %3823 = vmatprep.subr.bf16.mxu1 %v3822_v20 }
0x16b3   :  { %3817 = vmatpush3.bf16.msra.mxu0 %v3814_v2  ;;  %3825 = vmatpush3.bf16.msra.mxu1 %v3822_v20 }
0x16b4   :  { %3827 = vmatprep.subr.bf16.mxu1 %v3826_v42 }
0x16b6   :  { %3730 = vmatmul.mubr.msk.f32.vlgmr.msra.gmra.mrb[32].mxu0 %vm230_vm0, %v2960_v14 }
0x1789   :  { %v3731_v5 = vpop.f32.mrb[32].mxu0 }
0x178a   :  { %v3130_v8 = vadd.f32 %v3731_v5, %v3128_v45  ;;  %v3116_v0 = vpop.f32.mrb[33].mxu0 }
0x178b   :  { %v3129_v1 = vadd.f32 %v3128_v45, %v3116_v0 }
0x178c   :  { %v4962_v10 = vadd.f32 %v3130_v8, %v4451_v62 }
0x178d   :  { %v4965_v12 = vadd.f32 %v3129_v1, %v4448_v61 }
0x178e   :  { %v3136_v13 = vsel %vm230_vm0, %v4962_v10, 0.0 }
0x178f   :  { %3137 = vadd.xlane.f32.xlu1 %v3136_v13  ;;  %v3133_v14 = vsel %vm230_vm0, %v4965_v12, 0.0 }
0x1790   :  { %3134 = vadd.xlane.f32.xlu0 %v3133_v14 }
0x181c   :  { %v3138_v43 = vpop.xlane.xlu1 %3137 }
0x181d   :  { %v3140_v34 = vmul.f32 0.03125, %v3138_v43  ;;  %v3135_v50 = vpop.xlane.xlu0 %3134 }
0x181e   :  { %v3139_v6 = vmul.f32 0.03125, %v3135_v50 }
0x181f   :  { %v3142_v25 = vsub.f32 %v4962_v10, %v3140_v34 }
0x1820   :  { %v3141_v62 = vsub.f32 %v4965_v12, %v3139_v6 }
0x1821   :  { %v3144_v16 = vmul.f32 %v3142_v25, %v3142_v25 }
0x1822   :  { %v3143_v38 = vmul.f32 %v3141_v62, %v3141_v62 }
0x1823   :  { %v3148_v24 = vsel %vm230_vm0, %v3144_v16, 0.0 }
0x1824   :  { %v3145_v61 = vsel %vm230_vm0, %v3143_v38, 0.0 }
0x1825   :  { %3146 = vadd.xlane.f32.xlu0 %v3145_v61 }
0x1829   :  { %3149 = vadd.xlane.f32.xlu0 %v3148_v24 }
0x18b2   :  { %v3147_v22 = vpop.xlane.xlu0 %3146 }
0x18b3   :  { %v3151_v23 = vmul.f32 0.03125, %v3147_v22 }
0x18b5   :  { %v3153_v26 = vadd.f32 1e-12, %v3151_v23 }
0x18b6   :  { %v3150_v15 = vpop.xlane.xlu0 %3149 }
0x18b7   :  { %3918 = vrsqrt.f32 %v3153_v26  ;;  %v3152_v28 = vmul.f32 0.03125, %v3150_v15 }
0x18b9   :  { %v3154_v3 = vadd.f32 1e-12, %v3152_v28 }
0x18bb   :  { %3920 = vrsqrt.f32 %v3154_v3 }
0x18c1   :  { %v3919_v30 = vpop.eup %3918 }
0x18c2   :  { %v3157_v49 = vmul.f32 %v3919_v30, %v3141_v62 }
0x18c4   :  { %3740 = vmatprep.mubr.msk.f32.mxu1 %vm230_vm0, %v3157_v49 }
0x18c5   :  { %v3921_v4 = vpop.eup %3920 }
0x18c6   :  { %v3158_v11 = vmul.f32 %v3921_v4, %v3142_v25 }
0x18c8   :  { %3741 = vmatmul.mubr.msk.f32.vlgmr.msra.gmra.mrb[26].mxu1 %vm230_vm0, %v3158_v11 }
0x18c9   :  { %3829 = vmatpush3.bf16.msra.mxu1 %v3826_v42 }
0x18ca   :  { %3831 = vmatprep.subr.bf16.mxu1 %v3830_v32 }
0x18cd   :  { %3833 = vmatpush3.bf16.msra.mxu1 %v3830_v32 }
0x18ce   :  { %3835 = vmatprep.subr.bf16.mxu1 %v3834_v37 }
0x18d1   :  { %3837 = vmatpush3.bf16.msra.mxu1 %v3834_v37 }
0x18d2   :  { %3839 = vmatprep.subr.bf16.mxu1 %v3838_v46 }
0x18d5   :  { %3841 = vmatpush3.bf16.msra.mxu1 %v3838_v46 }
0x199b   :  { %v3742_v48 = vpop.f32.mrb[26].mxu1 }
0x199c   :  { %v3241_v51 = vadd.f32 %v3742_v48, %v3162_v47  ;;  %v3235_v52 = vpop.f32.mrb[27].mxu1 }
0x199d   :  { %v3236_v54 = vadd.f32 %v3235_v52, %v3162_v47 }
0x199e   :  { %v3245_v56 = vmax.f32 %v3241_v51, 0.0 }
0x199f   :  { %v3244_v55 = vmax.f32 %v3236_v54, 0.0 }
0x19a1   :  { %3759 = vmatprep.mubr.msk.f32.mxu1 %vm349_vm1, %v3244_v55 }
0x19a2   :  { %3760 = vmatmul.mubr.msk.f32.vlgmr.msra.gmra.mrb[28].mxu1 %vm349_vm1, %v3245_v56 }
0x1a75   :  { %v3761_v58 = vpop.f32.mrb[28].mxu1 }
0x1a76   :  { %v3328_v57 = vadd.f32 %v3761_v58, %v3249_v36  ;;  %v3322_v59 = vpop.f32.mrb[29].mxu1 }
0x1a77   :  { %v3323_v63 = vadd.f32 %v3322_v59, %v3249_v36 }
0x1a78   :  { %v3332_v2 = vmul.f32 0.5, %v3328_v57 }
0x1a79   :  { %v3331_v27 = vmul.f32 0.5, %v3323_v63 }
0x1a7a   :  { %v3334_v45 = vadd.f32 %v3332_v2, %v4962_v10 }
0x1a7b   :  { %v3333_v5 = vadd.f32 %v3331_v27, %v4965_v12 }
0x1a7c   :  { %v3339_v8 = vsel %vm230_vm0, %v3334_v45, 0.0 }
0x1a7d   :  { %3340 = vadd.xlane.f32.xlu1 %v3339_v8  ;;  %v3336_v0 = vsel %vm230_vm0, %v3333_v5, 0.0 }
0x1a7e   :  { %3337 = vadd.xlane.f32.xlu0 %v3336_v0 }
0x1b0a   :  { %v3341_v1 = vpop.xlane.xlu1 %3340 }
0x1b0b   :  { %v3343_v13 = vmul.f32 0.03125, %v3341_v1  ;;  %v3338_v14 = vpop.xlane.xlu0 %3337 }
0x1b0c   :  { %v3342_v43 = vmul.f32 0.03125, %v3338_v14 }
0x1b0d   :  { %v3345_v34 = vsub.f32 %v3334_v45, %v3343_v13 }
0x1b0e   :  { %v3344_v50 = vsub.f32 %v3333_v5, %v3342_v43 }
0x1b0f   :  { %v3347_v6 = vmul.f32 %v3345_v34, %v3345_v34 }
0x1b10   :  { %v3346_v25 = vmul.f32 %v3344_v50, %v3344_v50 }
0x1b11   :  { %v3351_v62 = vsel %vm230_vm0, %v3347_v6, 0.0 }
0x1b12   :  { %3352 = vadd.xlane.f32.xlu1 %v3351_v62  ;;  %v3348_v10 = vsel %vm230_vm0, %v3346_v25, 0.0 }
0x1b13   :  { %3349 = vadd.xlane.f32.xlu0 %v3348_v10 }
0x1b9f   :  { %v3353_v12 = vpop.xlane.xlu1 %3352 }
0x1ba0   :  { %v3355_v38 = vmul.f32 0.03125, %v3353_v12  ;;  %v3350_v61 = vpop.xlane.xlu0 %3349 }
0x1ba1   :  { %v3354_v16 = vmul.f32 0.03125, %v3350_v61 }
0x1ba2   :  { %v3357_v24 = vadd.f32 1e-12, %v3355_v38 }
0x1ba3   :  { %v3356_v17 = vadd.f32 1e-12, %v3354_v16 }
0x1ba4   :  { %3922 = vrsqrt.f32 %v3357_v24 }
0x1ba5   :  { %3924 = vrsqrt.f32 %v3356_v17 }
0x1bae   :  { %v3923_v19 = vpop.eup %3922 }
0x1baf   :  { %v3925_v9 = vpop.eup %3924  ;;  %v3361_v20 = vmul.f32 %v3923_v19, %v3345_v34 }
0x1bb0   :  { %v3360_v40 = vmul.f32 %v3925_v9, %v3344_v50 }
0x1bb1   :  { %v3367_v42 = vmul.f32 %v3365_v7, %v3361_v20 }
0x1bb2   :  { %v3366_v22 = vmul.f32 %v3365_v7, %v3360_v40 }
0x1bb3   :  { %v3373_v23 = vadd.f32 %v3371_v21, %v3367_v42 }
0x1bb4   :  { %v3372_v26 = vadd.f32 %v3371_v21, %v3366_v22 }
0x1bb5   :  { %3375 = vst.msk [vmem:[#allocation17 + $0x8] sm:$0xff] %vm230_vm0, %v3373_v23 }
0x1bb6   :  { %3374 = vst.msk [vmem:[#allocation17] sm:$0xff] %vm230_vm0, %v3372_v26 }
0x1bb7   :  { %4136 = shalt.err (!%p4133_p6)
}
0x1bb8   :  { %s4137_s0 = scalar_lea.hbm %s5057_s15, 256 }
0x1bb9   :  { %p4138_p7 = scmp.ne.s32.totalorder %s5057_s15, %s4137_s0  ;;  %p4141_p8 = scmp.lt.u32.totalorder %s4137_s0, %s5057_s15 }
0x1bbb   :  { %p4143_p9 = pnand %p4141_p8, %p4138_p7 }
0x1bbd   :  { %4146 = shalt.err (!%p4143_p9)
}
0x1bbe   :  { %3387 = dma.vmem_to_hbm [thread:$0]  %s3382_s10, 256, %s5057_s15, [#allocation4], %s4162_s19, %s4162_s19, %s4163_s27  }
0x1bbf   :  { %4157 = dma.done.wait [#allocation4], 256  }
0x1bc0   :  { %4158 = vsyncadd [#allocation4], 4294967040 }
0x1bc1   :  { %3391 = vsyncpa [#allocation3], 1 }
0x1bc2   :  { %3392 = vsyncpa [#allocation6], 1 }
0x1bc3   :  { %3393 = vsyncpa [#allocation9], 1 }
0x1bc4   :  { %3394 = vsyncpa [#allocation12], 1 }
0x1bc5   :  { %3395 = vsyncpa [#allocation15], 1 }
0x1bc6   :  { %3396 = vsyncpa [#allocation4], 1 }

</bundles_post_ra>
